<compile_context>
chip_gen: v7x
topology: tpu7x:2x2x1
jax: 0.10.0
libtpu: 0.0.40
codegen_flags: <defaults>
</compile_context>

<pallas_src>
import math

import jax
import jax.numpy as jnp
from jax.experimental import pallas as pl
from jax.experimental.pallas import tpu as pltpu

LRELU_SLOPE = 0.2
RES_SCALE = 0.2


# ----------------------------------------------------------------------------
# Fused RRDB kernel
# ----------------------------------------------------------------------------
def _make_rrdb_kernel(H, W, nc, gc):
    HW = H * W
    taps = [(dy - 1, dx - 1) for dy in range(3) for dx in range(3)]  # dy-major

    def lrelu(v):
        return jnp.where(v >= 0.0, v, LRELU_SLOPE * v)

    def kernel(mask_ref, x_ref,
               w1_ref, b1_ref, w2_ref, b2_ref, w3_ref, b3_ref,
               w4_ref, b4_ref, w5_ref, b5_ref, w1x1_ref,
               out_ref, col_ref):
        masks = mask_ref[...]                                   # (9, HW) f32, {0,1}

        def append_im2col(feat, base_row):
            """feat: (Cf, HW) f32 -> write its 9 shifted/masked taps into col_ref."""
            cf = feat.shape[0]
            for t, (oy, ox) in enumerate(taps):
                s = oy * W + ox                                 # flattened source offset
                if s == 0:
                    shifted = feat
                else:
                    # shifted[p] = feat[(p + s) mod HW]; wrapped / out-of-image lanes
                    # are zeroed by the per-tap boundary mask (zero 'same' padding).
                    shifted = pltpu.roll(feat, shift=(-s) % HW, axis=1)
                col_ref[base_row + t * cf: base_row + (t + 1) * cf, :] = (
                    shifted * masks[t:t + 1, :])

        def conv(w_ref, b_ref, r, k_rows):
            w = w_ref[r]                                        # (Cout, k_rows) bf16
            cols = col_ref[0:k_rows, :].astype(jnp.bfloat16)    # (k_rows, HW)
            acc = jnp.dot(w, cols, preferred_element_type=jnp.float32)
            return acc + b_ref[r]                               # + (Cout, 1) f32 bias

        x_in = x_ref[...].astype(jnp.float32)                   # (nc, HW)
        out = x_in
        for r in range(3):                                      # RDB1..RDB3, unrolled
            x = out
            append_im2col(x, 0)
            k = 9 * nc
            x1 = lrelu(conv(w1_ref, b1_ref, r, k))
            append_im2col(x1, k)
            k += 9 * gc
            x2 = lrelu(conv(w2_ref, b2_ref, r, k))
            x2 = x2 + jnp.dot(w1x1_ref[r], x.astype(jnp.bfloat16),
                              preferred_element_type=jnp.float32)
            append_im2col(x2, k)
            k += 9 * gc
            x3 = lrelu(conv(w3_ref, b3_ref, r, k))
            append_im2col(x3, k)
            k += 9 * gc
            x4 = lrelu(conv(w4_ref, b4_ref, r, k)) + x2
            append_im2col(x4, k)
            k += 9 * gc
            x5 = conv(w5_ref, b5_ref, r, k)
            out = x5 * RES_SCALE + x                            # RDB output (VMEM-resident)
        # TODO(synk): GaussianNoise is training-only (identity at inference); omitted.
        out_ref[...] = (out * RES_SCALE + x_in).astype(out_ref.dtype)

    return kernel


# ----------------------------------------------------------------------------
# One-time preprocessing (hoisted out of the per-forward trace)
# ----------------------------------------------------------------------------
def make_tap_masks(H, W):
    """(9, H*W) {0,1} f32 masks reproducing zero 'same' padding for each 3x3 tap."""
    hh, ww = jnp.meshgrid(jnp.arange(H), jnp.arange(W), indexing="ij")
    hh = hh.reshape(1, -1)
    ww = ww.reshape(1, -1)
    rows = []
    for dy in range(3):
        for dx in range(3):
            oy, ox = dy - 1, dx - 1
            valid = ((hh + oy >= 0) & (hh + oy < H) &
                     (ww + ox >= 0) & (ww + ox < W))
            rows.append(valid)
    return jnp.concatenate(rows, axis=0).astype(jnp.float32)


def prepare_rrdb_params(params, nc, gc):
    """OIHW -> matmul-ready (Cout, 9*Cin) bf16, grouped per conv slot across RDBs.

    Column order matches the im2col row order: per input feature block
    (x, x1, x2, x3, x4), tap-major (dy, dx), then channel within the feature.
    """
    feat_channels = {1: [nc], 2: [nc, gc], 3: [nc, gc, gc],
                     4: [nc, gc, gc, gc], 5: [nc, gc, gc, gc, gc]}

    def pack_w(w_oihw, feats):
        o = w_oihw.shape[0]
        blocks, off = [], 0
        for cf in feats:
            blk = w_oihw[:, off:off + cf, :, :]                  # (O, cf, 3, 3)
            blk = jnp.transpose(blk, (0, 2, 3, 1)).reshape(o, 9 * cf)
            blocks.append(blk)
            off += cf
        return jnp.concatenate(blocks, axis=1)                   # (O, 9*Cin)

    rdbs = ("rdb1", "rdb2", "rdb3")
    packed = {}
    for i in range(1, 6):
        packed[f"w{i}"] = jnp.stack(
            [pack_w(params[n][f"conv{i}_w_oihw"], feat_channels[i]) for n in rdbs]
        ).astype(jnp.bfloat16)                                   # (3, Cout, 9*Cin)
        packed[f"b{i}"] = jnp.stack(
            [params[n][f"conv{i}_b"].reshape(-1, 1) for n in rdbs]
        ).astype(jnp.float32)                                    # (3, Cout, 1)
    packed["w1x1"] = jnp.stack(
        [params[n]["conv1x1_w_oihw"][:, :, 0, 0] for n in rdbs]
    ).astype(jnp.bfloat16)                                       # (3, gc, nc)
    return packed


# ----------------------------------------------------------------------------
# RRDB forward (single pallas_call)
# ----------------------------------------------------------------------------
def rrdb_forward(x_nchw, packed, masks):
    N, C, H, W = x_nchw.shape
    HW = H * W
    nc = C
    gc = packed["w1"].shape[1]
    x = x_nchw.reshape(N, C, HW)                                 # free reshape, NCHW native

    in_specs = [
        pl.BlockSpec((9, HW), lambda n: (0, 0)),                 # tap masks
        pl.BlockSpec((None, C, HW), lambda n: (n, 0, 0)),        # one image per step
    ]
    args = [masks, x]
    for i in range(1, 6):
        for key in (f"w{i}", f"b{i}"):
            arr = packed[key]
            in_specs.append(pl.BlockSpec(arr.shape, lambda n: (0, 0, 0)))
            args.append(arr)
    in_specs.append(pl.BlockSpec(packed["w1x1"].shape, lambda n: (0, 0, 0)))
    args.append(packed["w1x1"])

    out = pl.pallas_call(
        _make_rrdb_kernel(H, W, nc, gc),
        out_shape=jax.ShapeDtypeStruct((N, C, HW), x.dtype),
        grid=(N,),
        in_specs=in_specs,
        out_specs=pl.BlockSpec((None, C, HW), lambda n: (n, 0, 0)),
        scratch_shapes=[pltpu.VMEM((9 * (nc + 4 * gc), HW), jnp.float32)],
        compiler_params=pltpu.CompilerParams(dimension_semantics=("parallel",)),
    )(*args)
    return out.reshape(N, C, H, W)


# ----------------------------------------------------------------------------
# Pure-JAX references (NCHW; full-f32 and matched-precision variants)
# ----------------------------------------------------------------------------
def _conv2d_ref(x, w_oihw, b=None, padding=1, low_precision=False):
    if low_precision:
        x = x.astype(jnp.bfloat16)
        w_oihw = w_oihw.astype(jnp.bfloat16)
        prec = None
    else:
        prec = jax.lax.Precision.HIGHEST
    out = jax.lax.conv_general_dilated(
        x, w_oihw, window_strides=(1, 1),
        padding=((padding, padding), (padding, padding)),
        dimension_numbers=("NCHW", "OIHW", "NCHW"),
        preferred_element_type=jnp.float32,
        precision=prec)
    if b is not None:
        out = out + b.reshape(1, -1, 1, 1)
    return out


def _lrelu_ref(x):
    return jnp.where(x >= 0, x, LRELU_SLOPE * x)


def _rdb_reference(x, p, lp=False):
    x1 = _lrelu_ref(_conv2d_ref(x, p['conv1_w_oihw'], p['conv1_b'], low_precision=lp))
    x2 = _lrelu_ref(_conv2d_ref(jnp.concatenate([x, x1], 1),
                                p['conv2_w_oihw'], p['conv2_b'], low_precision=lp))
    x2 = x2 + _conv2d_ref(x, p['conv1x1_w_oihw'], None, padding=0, low_precision=lp)
    x3 = _lrelu_ref(_conv2d_ref(jnp.concatenate([x, x1, x2], 1),
                                p['conv3_w_oihw'], p['conv3_b'], low_precision=lp))
    x4 = _lrelu_ref(_conv2d_ref(jnp.concatenate([x, x1, x2, x3], 1),
                                p['conv4_w_oihw'], p['conv4_b'], low_precision=lp)) + x2
    x5 = _conv2d_ref(jnp.concatenate([x, x1, x2, x3, x4], 1),
                     p['conv5_w_oihw'], p['conv5_b'], low_precision=lp)
    return x5 * RES_SCALE + x


def rrdb_reference(x, params, low_precision=False):
    out = x
    for name in ('rdb1', 'rdb2', 'rdb3'):
        out = _rdb_reference(out, params[name], lp=low_precision)
    return out * RES_SCALE + x


# ----------------------------------------------------------------------------
# Parameter init (deterministic, PyTorch-ish scaling; exact init is irrelevant)
# ----------------------------------------------------------------------------
def init_rdb_params(key, nc, gc):
    keys = jax.random.split(key, 11)
    cins = [nc, nc + gc, nc + 2 * gc, nc + 3 * gc, nc + 4 * gc]
    couts = [gc, gc, gc, gc, nc]
    p = {}
    for i in range(5):
        fan_in = cins[i] * 9
        p[f'conv{i+1}_w_oihw'] = (jax.random.normal(keys[2 * i], (couts[i], cins[i], 3, 3),
                                                    jnp.float32) / math.sqrt(fan_in))
        p[f'conv{i+1}_b'] = 0.01 * jax.random.normal(keys[2 * i + 1], (couts[i],), jnp.float32)
    p['conv1x1_w_oihw'] = (jax.random.normal(keys[10], (gc, nc, 1, 1), jnp.float32)
                           / math.sqrt(nc))
    return p


# ----------------------------------------------------------------------------
if __name__ == "__main__":
    key = jax.random.PRNGKey(0)
    N, nc, gc, H, W = 2, 8, 8, 16, 16
    k_x, k1, k2, k3 = jax.random.split(key, 4)

    x = jax.random.normal(k_x, (N, nc, H, W), dtype=jnp.float32)
    params = {
        'rdb1': init_rdb_params(k1, nc, gc),
        'rdb2': init_rdb_params(k2, nc, gc),
        'rdb3': init_rdb_params(k3, nc, gc),
    }

    # One-time preprocessing (outside the jitted forward).
    packed = prepare_rrdb_params(params, nc, gc)
    masks = make_tap_masks(H, W)

    out = jax.jit(rrdb_forward)(x, packed, masks)
    out = jax.block_until_ready(out)
    assert out.shape == x.shape

    # Matched-precision reference (bf16 matmul operands, f32 accumulation) -> tight.
    ref_matched = rrdb_reference(x, params, low_precision=True)
    err_matched = float(jnp.max(jnp.abs(out - ref_matched)))
    assert err_matched < 1e-2, f"matched-precision max abs err {err_matched}"

    # Full-f32 reference -> loose sanity bound (bf16 quantization compounds over
    # 15 convs x 3 RDBs).
    ref_f32 = rrdb_reference(x, params, low_precision=False)
    err_f32 = float(jnp.max(jnp.abs(out - ref_f32)))
    assert err_f32 < 5e-2, f"f32 reference max abs err {err_f32}"

    print("KERNEL_OK")
</pallas_src>

<mosaic_0001>
module attributes {stable_mosaic.version = 11 : i64} {
  func.func @kernel(%arg0: i32, %arg1: memref<9x256xf32, #tpu.memory_space<vmem>>, %arg2: memref<1x8x256xf32, #tpu.memory_space<vmem>>, %arg3: memref<3x8x72xbf16, #tpu.memory_space<vmem>>, %arg4: memref<3x8x1xf32, #tpu.memory_space<vmem>>, %arg5: memref<3x8x144xbf16, #tpu.memory_space<vmem>>, %arg6: memref<3x8x1xf32, #tpu.memory_space<vmem>>, %arg7: memref<3x8x216xbf16, #tpu.memory_space<vmem>>, %arg8: memref<3x8x1xf32, #tpu.memory_space<vmem>>, %arg9: memref<3x8x288xbf16, #tpu.memory_space<vmem>>, %arg10: memref<3x8x1xf32, #tpu.memory_space<vmem>>, %arg11: memref<3x8x360xbf16, #tpu.memory_space<vmem>>, %arg12: memref<3x8x1xf32, #tpu.memory_space<vmem>>, %arg13: memref<3x8x8xbf16, #tpu.memory_space<vmem>>, %arg14: memref<1x8x256xf32, #tpu.memory_space<vmem>>, %arg15: memref<360x256xf32, #tpu.memory_space<vmem>>) attributes {dimension_semantics = [#tpu.dimension_semantics<parallel>], iteration_bounds = array<i64: 2>, scalar_prefetch = 0 : i64, scratch_operands = 1 : i64, tpu.core_type = #tpu.core_type<tc>, window_params = [{pipeline_mode = #tpu.pipeline_mode<synchronous>, transform_indices = @transform_0, window_bounds = array<i64: 9, 256>}, {transform_indices = @transform_1, window_bounds = array<i64: 1, 8, 256>}, {pipeline_mode = #tpu.pipeline_mode<synchronous>, transform_indices = @transform_2, window_bounds = array<i64: 3, 8, 72>}, {pipeline_mode = #tpu.pipeline_mode<synchronous>, transform_indices = @transform_3, window_bounds = array<i64: 3, 8, 1>}, {pipeline_mode = #tpu.pipeline_mode<synchronous>, transform_indices = @transform_4, window_bounds = array<i64: 3, 8, 144>}, {pipeline_mode = #tpu.pipeline_mode<synchronous>, transform_indices = @transform_5, window_bounds = array<i64: 3, 8, 1>}, {pipeline_mode = #tpu.pipeline_mode<synchronous>, transform_indices = @transform_6, window_bounds = array<i64: 3, 8, 216>}, {pipeline_mode = #tpu.pipeline_mode<synchronous>, transform_indices = @transform_7, window_bounds = array<i64: 3, 8, 1>}, {pipeline_mode = #tpu.pipeline_mode<synchronous>, transform_indices = @transform_8, window_bounds = array<i64: 3, 8, 288>}, {pipeline_mode = #tpu.pipeline_mode<synchronous>, transform_indices = @transform_9, window_bounds = array<i64: 3, 8, 1>}, {pipeline_mode = #tpu.pipeline_mode<synchronous>, transform_indices = @transform_10, window_bounds = array<i64: 3, 8, 360>}, {pipeline_mode = #tpu.pipeline_mode<synchronous>, transform_indices = @transform_11, window_bounds = array<i64: 3, 8, 1>}, {pipeline_mode = #tpu.pipeline_mode<synchronous>, transform_indices = @transform_12, window_bounds = array<i64: 3, 8, 8>}, {transform_indices = @transform_13, window_bounds = array<i64: 1, 8, 256>}]} {
    %c0 = arith.constant 0 : index
    %c0_0 = arith.constant 0 : index
    %0 = vector.load %arg1[%c0, %c0_0] : memref<9x256xf32, #tpu.memory_space<vmem>>, vector<9x256xf32>
    %c0_1 = arith.constant 0 : index
    %c0_2 = arith.constant 0 : index
    %c0_3 = arith.constant 0 : index
    %1 = vector.load %arg2[%c0_1, %c0_2, %c0_3] : memref<1x8x256xf32, #tpu.memory_space<vmem>>, vector<1x8x256xf32>
    %2 = vector.shape_cast %1 : vector<1x8x256xf32> to vector<8x256xf32>
    %c17_i32 = arith.constant 17 : i32
    %3 = tpu.dynamic_rotate %2 by %c17_i32 dim 1 : vector<8x256xf32>, i32 -> vector<8x256xf32>
    %4 = vector.extract_strided_slice %0 {offsets = [0, 0], sizes = [1, 256], strides = [1, 1]} : vector<9x256xf32> to vector<1x256xf32>
    %5 = vector.broadcast %4 : vector<1x256xf32> to vector<8x256xf32>
    %6 = arith.mulf %3, %5 : vector<8x256xf32>
    %c0_4 = arith.constant 0 : index
    %c0_5 = arith.constant 0 : index
    %7 = vector.load %arg15[%c0_4, %c0_5] : memref<360x256xf32, #tpu.memory_space<vmem>>, vector<8x256xf32>
    tpu.vector_store %arg15[%c0_4, %c0_5], %6 {strides = array<i32>} : memref<360x256xf32, #tpu.memory_space<vmem>>, vector<8x256xf32>,
    %c16_i32 = arith.constant 16 : i32
    %8 = tpu.dynamic_rotate %2 by %c16_i32 dim 1 : vector<8x256xf32>, i32 -> vector<8x256xf32>
    %9 = vector.extract_strided_slice %0 {offsets = [1, 0], sizes = [1, 256], strides = [1, 1]} : vector<9x256xf32> to vector<1x256xf32>
    %10 = vector.broadcast %9 : vector<1x256xf32> to vector<8x256xf32>
    %11 = arith.mulf %8, %10 : vector<8x256xf32>
    %c8 = arith.constant 8 : index
    %c0_6 = arith.constant 0 : index
    %12 = vector.load %arg15[%c8, %c0_6] : memref<360x256xf32, #tpu.memory_space<vmem>>, vector<8x256xf32>
    tpu.vector_store %arg15[%c8, %c0_6], %11 {strides = array<i32>} : memref<360x256xf32, #tpu.memory_space<vmem>>, vector<8x256xf32>,
    %c15_i32 = arith.constant 15 : i32
    %13 = tpu.dynamic_rotate %2 by %c15_i32 dim 1 : vector<8x256xf32>, i32 -> vector<8x256xf32>
    %14 = vector.extract_strided_slice %0 {offsets = [2, 0], sizes = [1, 256], strides = [1, 1]} : vector<9x256xf32> to vector<1x256xf32>
    %15 = vector.broadcast %14 : vector<1x256xf32> to vector<8x256xf32>
    %16 = arith.mulf %13, %15 : vector<8x256xf32>
    %c16 = arith.constant 16 : index
    %c0_7 = arith.constant 0 : index
    %17 = vector.load %arg15[%c16, %c0_7] : memref<360x256xf32, #tpu.memory_space<vmem>>, vector<8x256xf32>
    tpu.vector_store %arg15[%c16, %c0_7], %16 {strides = array<i32>} : memref<360x256xf32, #tpu.memory_space<vmem>>, vector<8x256xf32>,
    %c1_i32 = arith.constant 1 : i32
    %18 = tpu.dynamic_rotate %2 by %c1_i32 dim 1 : vector<8x256xf32>, i32 -> vector<8x256xf32>
    %19 = vector.extract_strided_slice %0 {offsets = [3, 0], sizes = [1, 256], strides = [1, 1]} : vector<9x256xf32> to vector<1x256xf32>
    %20 = vector.broadcast %19 : vector<1x256xf32> to vector<8x256xf32>
    %21 = arith.mulf %18, %20 : vector<8x256xf32>
    %c24 = arith.constant 24 : index
    %c0_8 = arith.constant 0 : index
    %22 = vector.load %arg15[%c24, %c0_8] : memref<360x256xf32, #tpu.memory_space<vmem>>, vector<8x256xf32>
    tpu.vector_store %arg15[%c24, %c0_8], %21 {strides = array<i32>} : memref<360x256xf32, #tpu.memory_space<vmem>>, vector<8x256xf32>,
    %23 = vector.extract_strided_slice %0 {offsets = [4, 0], sizes = [1, 256], strides = [1, 1]} : vector<9x256xf32> to vector<1x256xf32>
    %24 = vector.broadcast %23 : vector<1x256xf32> to vector<8x256xf32>
    %25 = arith.mulf %2, %24 : vector<8x256xf32>
    %c32 = arith.constant 32 : index
    %c0_9 = arith.constant 0 : index
    %26 = vector.load %arg15[%c32, %c0_9] : memref<360x256xf32, #tpu.memory_space<vmem>>, vector<8x256xf32>
    tpu.vector_store %arg15[%c32, %c0_9], %25 {strides = array<i32>} : memref<360x256xf32, #tpu.memory_space<vmem>>, vector<8x256xf32>,
    %c255_i32 = arith.constant 255 : i32
    %27 = tpu.dynamic_rotate %2 by %c255_i32 dim 1 : vector<8x256xf32>, i32 -> vector<8x256xf32>
    %28 = vector.extract_strided_slice %0 {offsets = [5, 0], sizes = [1, 256], strides = [1, 1]} : vector<9x256xf32> to vector<1x256xf32>
    %29 = vector.broadcast %28 : vector<1x256xf32> to vector<8x256xf32>
    %30 = arith.mulf %27, %29 : vector<8x256xf32>
    %c40 = arith.constant 40 : index
    %c0_10 = arith.constant 0 : index
    %31 = vector.load %arg15[%c40, %c0_10] : memref<360x256xf32, #tpu.memory_space<vmem>>, vector<8x256xf32>
    tpu.vector_store %arg15[%c40, %c0_10], %30 {strides = array<i32>} : memref<360x256xf32, #tpu.memory_space<vmem>>, vector<8x256xf32>,
    %c241_i32 = arith.constant 241 : i32
    %32 = tpu.dynamic_rotate %2 by %c241_i32 dim 1 : vector<8x256xf32>, i32 -> vector<8x256xf32>
    %33 = vector.extract_strided_slice %0 {offsets = [6, 0], sizes = [1, 256], strides = [1, 1]} : vector<9x256xf32> to vector<1x256xf32>
    %34 = vector.broadcast %33 : vector<1x256xf32> to vector<8x256xf32>
    %35 = arith.mulf %32, %34 : vector<8x256xf32>
    %c48 = arith.constant 48 : index
    %c0_11 = arith.constant 0 : index
    %36 = vector.load %arg15[%c48, %c0_11] : memref<360x256xf32, #tpu.memory_space<vmem>>, vector<8x256xf32>
    tpu.vector_store %arg15[%c48, %c0_11], %35 {strides = array<i32>} : memref<360x256xf32, #tpu.memory_space<vmem>>, vector<8x256xf32>,
    %c240_i32 = arith.constant 240 : i32
    %37 = tpu.dynamic_rotate %2 by %c240_i32 dim 1 : vector<8x256xf32>, i32 -> vector<8x256xf32>
    %38 = vector.extract_strided_slice %0 {offsets = [7, 0], sizes = [1, 256], strides = [1, 1]} : vector<9x256xf32> to vector<1x256xf32>
    %39 = vector.broadcast %38 : vector<1x256xf32> to vector<8x256xf32>
    %40 = arith.mulf %37, %39 : vector<8x256xf32>
    %c56 = arith.constant 56 : index
    %c0_12 = arith.constant 0 : index
    %41 = vector.load %arg15[%c56, %c0_12] : memref<360x256xf32, #tpu.memory_space<vmem>>, vector<8x256xf32>
    tpu.vector_store %arg15[%c56, %c0_12], %40 {strides = array<i32>} : memref<360x256xf32, #tpu.memory_space<vmem>>, vector<8x256xf32>,
    %c239_i32 = arith.constant 239 : i32
    %42 = tpu.dynamic_rotate %2 by %c239_i32 dim 1 : vector<8x256xf32>, i32 -> vector<8x256xf32>
    %43 = vector.extract_strided_slice %0 {offsets = [8, 0], sizes = [1, 256], strides = [1, 1]} : vector<9x256xf32> to vector<1x256xf32>
    %44 = vector.broadcast %43 : vector<1x256xf32> to vector<8x256xf32>
    %45 = arith.mulf %42, %44 : vector<8x256xf32>
    %c64 = arith.constant 64 : index
    %c0_13 = arith.constant 0 : index
    %46 = vector.load %arg15[%c64, %c0_13] : memref<360x256xf32, #tpu.memory_space<vmem>>, vector<8x256xf32>
    tpu.vector_store %arg15[%c64, %c0_13], %45 {strides = array<i32>} : memref<360x256xf32, #tpu.memory_space<vmem>>, vector<8x256xf32>,
    %c0_14 = arith.constant 0 : index
    %c0_15 = arith.constant 0 : index
    %c0_16 = arith.constant 0 : index
    %47 = vector.load %arg3[%c0_14, %c0_15, %c0_16] : memref<3x8x72xbf16, #tpu.memory_space<vmem>>, vector<1x8x72xbf16>
    %48 = vector.shape_cast %47 : vector<1x8x72xbf16> to vector<8x72xbf16>
    %c0_17 = arith.constant 0 : index
    %c0_18 = arith.constant 0 : index
    %49 = vector.load %arg15[%c0_17, %c0_18] : memref<360x256xf32, #tpu.memory_space<vmem>>, vector<72x256xf32>
    %50 = arith.truncf %49 : vector<72x256xf32> to vector<72x256xbf16>
    %cst = arith.constant dense<0.000000e+00> : vector<8x256xf32>
    %51 = tpu.matmul %48, %50, %cst {dimension_numbers = #tpu.dot_dimension_numbers<[1], [0], [0], [1], [0, 0, 1, 1], [], []>} : vector<8x72xbf16>, vector<72x256xbf16>, vector<8x256xf32> -> vector<8x256xf32>
    %c0_19 = arith.constant 0 : index
    %c0_20 = arith.constant 0 : index
    %c0_21 = arith.constant 0 : index
    %52 = vector.load %arg4[%c0_19, %c0_20, %c0_21] : memref<3x8x1xf32, #tpu.memory_space<vmem>>, vector<1x8x1xf32>
    %53 = vector.shape_cast %52 : vector<1x8x1xf32> to vector<8x1xf32>
    %54 = vector.broadcast %53 : vector<8x1xf32> to vector<8x256xf32>
    %55 = arith.addf %51, %54 : vector<8x256xf32>
    %cst_22 = arith.constant 0.000000e+00 : f32
    %56 = vector.broadcast %cst_22 : f32 to vector<8x256xf32>
    %57 = arith.cmpf oge, %55, %56 : vector<8x256xf32>
    %cst_23 = arith.constant 2.000000e-01 : f32
    %58 = vector.broadcast %cst_23 : f32 to vector<8x256xf32>
    %59 = arith.mulf %58, %55 : vector<8x256xf32>
    %60 = arith.select %57, %55, %59 : vector<8x256xi1>, vector<8x256xf32>
    %c17_i32_24 = arith.constant 17 : i32
    %61 = tpu.dynamic_rotate %60 by %c17_i32_24 dim 1 : vector<8x256xf32>, i32 -> vector<8x256xf32>
    %62 = vector.extract_strided_slice %0 {offsets = [0, 0], sizes = [1, 256], strides = [1, 1]} : vector<9x256xf32> to vector<1x256xf32>
    %63 = vector.broadcast %62 : vector<1x256xf32> to vector<8x256xf32>
    %64 = arith.mulf %61, %63 : vector<8x256xf32>
    %c72 = arith.constant 72 : index
    %c0_25 = arith.constant 0 : index
    %65 = vector.load %arg15[%c72, %c0_25] : memref<360x256xf32, #tpu.memory_space<vmem>>, vector<8x256xf32>
    tpu.vector_store %arg15[%c72, %c0_25], %64 {strides = array<i32>} : memref<360x256xf32, #tpu.memory_space<vmem>>, vector<8x256xf32>,
    %c16_i32_26 = arith.constant 16 : i32
    %66 = tpu.dynamic_rotate %60 by %c16_i32_26 dim 1 : vector<8x256xf32>, i32 -> vector<8x256xf32>
    %67 = vector.extract_strided_slice %0 {offsets = [1, 0], sizes = [1, 256], strides = [1, 1]} : vector<9x256xf32> to vector<1x256xf32>
    %68 = vector.broadcast %67 : vector<1x256xf32> to vector<8x256xf32>
    %69 = arith.mulf %66, %68 : vector<8x256xf32>
    %c80 = arith.constant 80 : index
    %c0_27 = arith.constant 0 : index
    %70 = vector.load %arg15[%c80, %c0_27] : memref<360x256xf32, #tpu.memory_space<vmem>>, vector<8x256xf32>
    tpu.vector_store %arg15[%c80, %c0_27], %69 {strides = array<i32>} : memref<360x256xf32, #tpu.memory_space<vmem>>, vector<8x256xf32>,
    %c15_i32_28 = arith.constant 15 : i32
    %71 = tpu.dynamic_rotate %60 by %c15_i32_28 dim 1 : vector<8x256xf32>, i32 -> vector<8x256xf32>
    %72 = vector.extract_strided_slice %0 {offsets = [2, 0], sizes = [1, 256], strides = [1, 1]} : vector<9x256xf32> to vector<1x256xf32>
    %73 = vector.broadcast %72 : vector<1x256xf32> to vector<8x256xf32>
    %74 = arith.mulf %71, %73 : vector<8x256xf32>
    %c88 = arith.constant 88 : index
    %c0_29 = arith.constant 0 : index
    %75 = vector.load %arg15[%c88, %c0_29] : memref<360x256xf32, #tpu.memory_space<vmem>>, vector<8x256xf32>
    tpu.vector_store %arg15[%c88, %c0_29], %74 {strides = array<i32>} : memref<360x256xf32, #tpu.memory_space<vmem>>, vector<8x256xf32>,
    %c1_i32_30 = arith.constant 1 : i32
    %76 = tpu.dynamic_rotate %60 by %c1_i32_30 dim 1 : vector<8x256xf32>, i32 -> vector<8x256xf32>
    %77 = vector.extract_strided_slice %0 {offsets = [3, 0], sizes = [1, 256], strides = [1, 1]} : vector<9x256xf32> to vector<1x256xf32>
    %78 = vector.broadcast %77 : vector<1x256xf32> to vector<8x256xf32>
    %79 = arith.mulf %76, %78 : vector<8x256xf32>
    %c96 = arith.constant 96 : index
    %c0_31 = arith.constant 0 : index
    %80 = vector.load %arg15[%c96, %c0_31] : memref<360x256xf32, #tpu.memory_space<vmem>>, vector<8x256xf32>
    tpu.vector_store %arg15[%c96, %c0_31], %79 {strides = array<i32>} : memref<360x256xf32, #tpu.memory_space<vmem>>, vector<8x256xf32>,
    %81 = vector.extract_strided_slice %0 {offsets = [4, 0], sizes = [1, 256], strides = [1, 1]} : vector<9x256xf32> to vector<1x256xf32>
    %82 = vector.broadcast %81 : vector<1x256xf32> to vector<8x256xf32>
    %83 = arith.mulf %60, %82 : vector<8x256xf32>
    %c104 = arith.constant 104 : index
    %c0_32 = arith.constant 0 : index
    %84 = vector.load %arg15[%c104, %c0_32] : memref<360x256xf32, #tpu.memory_space<vmem>>, vector<8x256xf32>
    tpu.vector_store %arg15[%c104, %c0_32], %83 {strides = array<i32>} : memref<360x256xf32, #tpu.memory_space<vmem>>, vector<8x256xf32>,
    %c255_i32_33 = arith.constant 255 : i32
    %85 = tpu.dynamic_rotate %60 by %c255_i32_33 dim 1 : vector<8x256xf32>, i32 -> vector<8x256xf32>
    %86 = vector.extract_strided_slice %0 {offsets = [5, 0], sizes = [1, 256], strides = [1, 1]} : vector<9x256xf32> to vector<1x256xf32>
    %87 = vector.broadcast %86 : vector<1x256xf32> to vector<8x256xf32>
    %88 = arith.mulf %85, %87 : vector<8x256xf32>
    %c112 = arith.constant 112 : index
    %c0_34 = arith.constant 0 : index
    %89 = vector.load %arg15[%c112, %c0_34] : memref<360x256xf32, #tpu.memory_space<vmem>>, vector<8x256xf32>
    tpu.vector_store %arg15[%c112, %c0_34], %88 {strides = array<i32>} : memref<360x256xf32, #tpu.memory_space<vmem>>, vector<8x256xf32>,
    %c241_i32_35 = arith.constant 241 : i32
    %90 = tpu.dynamic_rotate %60 by %c241_i32_35 dim 1 : vector<8x256xf32>, i32 -> vector<8x256xf32>
    %91 = vector.extract_strided_slice %0 {offsets = [6, 0], sizes = [1, 256], strides = [1, 1]} : vector<9x256xf32> to vector<1x256xf32>
    %92 = vector.broadcast %91 : vector<1x256xf32> to vector<8x256xf32>
    %93 = arith.mulf %90, %92 : vector<8x256xf32>
    %c120 = arith.constant 120 : index
    %c0_36 = arith.constant 0 : index
    %94 = vector.load %arg15[%c120, %c0_36] : memref<360x256xf32, #tpu.memory_space<vmem>>, vector<8x256xf32>
    tpu.vector_store %arg15[%c120, %c0_36], %93 {strides = array<i32>} : memref<360x256xf32, #tpu.memory_space<vmem>>, vector<8x256xf32>,
    %c240_i32_37 = arith.constant 240 : i32
    %95 = tpu.dynamic_rotate %60 by %c240_i32_37 dim 1 : vector<8x256xf32>, i32 -> vector<8x256xf32>
    %96 = vector.extract_strided_slice %0 {offsets = [7, 0], sizes = [1, 256], strides = [1, 1]} : vector<9x256xf32> to vector<1x256xf32>
    %97 = vector.broadcast %96 : vector<1x256xf32> to vector<8x256xf32>
    %98 = arith.mulf %95, %97 : vector<8x256xf32>
    %c128 = arith.constant 128 : index
    %c0_38 = arith.constant 0 : index
    %99 = vector.load %arg15[%c128, %c0_38] : memref<360x256xf32, #tpu.memory_space<vmem>>, vector<8x256xf32>
    tpu.vector_store %arg15[%c128, %c0_38], %98 {strides = array<i32>} : memref<360x256xf32, #tpu.memory_space<vmem>>, vector<8x256xf32>,
    %c239_i32_39 = arith.constant 239 : i32
    %100 = tpu.dynamic_rotate %60 by %c239_i32_39 dim 1 : vector<8x256xf32>, i32 -> vector<8x256xf32>
    %101 = vector.extract_strided_slice %0 {offsets = [8, 0], sizes = [1, 256], strides = [1, 1]} : vector<9x256xf32> to vector<1x256xf32>
    %102 = vector.broadcast %101 : vector<1x256xf32> to vector<8x256xf32>
    %103 = arith.mulf %100, %102 : vector<8x256xf32>
    %c136 = arith.constant 136 : index
    %c0_40 = arith.constant 0 : index
    %104 = vector.load %arg15[%c136, %c0_40] : memref<360x256xf32, #tpu.memory_space<vmem>>, vector<8x256xf32>
    tpu.vector_store %arg15[%c136, %c0_40], %103 {strides = array<i32>} : memref<360x256xf32, #tpu.memory_space<vmem>>, vector<8x256xf32>,
    %c0_41 = arith.constant 0 : index
    %c0_42 = arith.constant 0 : index
    %c0_43 = arith.constant 0 : index
    %105 = vector.load %arg5[%c0_41, %c0_42, %c0_43] : memref<3x8x144xbf16, #tpu.memory_space<vmem>>, vector<1x8x144xbf16>
    %106 = vector.shape_cast %105 : vector<1x8x144xbf16> to vector<8x144xbf16>
    %c0_44 = arith.constant 0 : index
    %c0_45 = arith.constant 0 : index
    %107 = vector.load %arg15[%c0_44, %c0_45] : memref<360x256xf32, #tpu.memory_space<vmem>>, vector<144x256xf32>
    %108 = arith.truncf %107 : vector<144x256xf32> to vector<144x256xbf16>
    %cst_46 = arith.constant dense<0.000000e+00> : vector<8x256xf32>
    %109 = tpu.matmul %106, %108, %cst_46 {dimension_numbers = #tpu.dot_dimension_numbers<[1], [0], [0], [1], [0, 0, 1, 1], [], []>} : vector<8x144xbf16>, vector<144x256xbf16>, vector<8x256xf32> -> vector<8x256xf32>
    %c0_47 = arith.constant 0 : index
    %c0_48 = arith.constant 0 : index
    %c0_49 = arith.constant 0 : index
    %110 = vector.load %arg6[%c0_47, %c0_48, %c0_49] : memref<3x8x1xf32, #tpu.memory_space<vmem>>, vector<1x8x1xf32>
    %111 = vector.shape_cast %110 : vector<1x8x1xf32> to vector<8x1xf32>
    %112 = vector.broadcast %111 : vector<8x1xf32> to vector<8x256xf32>
    %113 = arith.addf %109, %112 : vector<8x256xf32>
    %cst_50 = arith.constant 0.000000e+00 : f32
    %114 = vector.broadcast %cst_50 : f32 to vector<8x256xf32>
    %115 = arith.cmpf oge, %113, %114 : vector<8x256xf32>
    %cst_51 = arith.constant 2.000000e-01 : f32
    %116 = vector.broadcast %cst_51 : f32 to vector<8x256xf32>
    %117 = arith.mulf %116, %113 : vector<8x256xf32>
    %118 = arith.select %115, %113, %117 : vector<8x256xi1>, vector<8x256xf32>
    %c0_52 = arith.constant 0 : index
    %c0_53 = arith.constant 0 : index
    %c0_54 = arith.constant 0 : index
    %119 = vector.load %arg13[%c0_52, %c0_53, %c0_54] : memref<3x8x8xbf16, #tpu.memory_space<vmem>>, vector<1x8x8xbf16>
    %120 = vector.shape_cast %119 : vector<1x8x8xbf16> to vector<8x8xbf16>
    %121 = arith.truncf %2 : vector<8x256xf32> to vector<8x256xbf16>
    %cst_55 = arith.constant dense<0.000000e+00> : vector<8x256xf32>
    %122 = tpu.matmul %120, %121, %cst_55 {dimension_numbers = #tpu.dot_dimension_numbers<[1], [0], [0], [1], [0, 0, 1, 1], [], []>} : vector<8x8xbf16>, vector<8x256xbf16>, vector<8x256xf32> -> vector<8x256xf32>
    %123 = arith.addf %118, %122 : vector<8x256xf32>
    %c17_i32_56 = arith.constant 17 : i32
    %124 = tpu.dynamic_rotate %123 by %c17_i32_56 dim 1 : vector<8x256xf32>, i32 -> vector<8x256xf32>
    %125 = vector.extract_strided_slice %0 {offsets = [0, 0], sizes = [1, 256], strides = [1, 1]} : vector<9x256xf32> to vector<1x256xf32>
    %126 = vector.broadcast %125 : vector<1x256xf32> to vector<8x256xf32>
    %127 = arith.mulf %124, %126 : vector<8x256xf32>
    %c144 = arith.constant 144 : index
    %c0_57 = arith.constant 0 : index
    %128 = vector.load %arg15[%c144, %c0_57] : memref<360x256xf32, #tpu.memory_space<vmem>>, vector<8x256xf32>
    tpu.vector_store %arg15[%c144, %c0_57], %127 {strides = array<i32>} : memref<360x256xf32, #tpu.memory_space<vmem>>, vector<8x256xf32>,
    %c16_i32_58 = arith.constant 16 : i32
    %129 = tpu.dynamic_rotate %123 by %c16_i32_58 dim 1 : vector<8x256xf32>, i32 -> vector<8x256xf32>
    %130 = vector.extract_strided_slice %0 {offsets = [1, 0], sizes = [1, 256], strides = [1, 1]} : vector<9x256xf32> to vector<1x256xf32>
    %131 = vector.broadcast %130 : vector<1x256xf32> to vector<8x256xf32>
    %132 = arith.mulf %129, %131 : vector<8x256xf32>
    %c152 = arith.constant 152 : index
    %c0_59 = arith.constant 0 : index
    %133 = vector.load %arg15[%c152, %c0_59] : memref<360x256xf32, #tpu.memory_space<vmem>>, vector<8x256xf32>
    tpu.vector_store %arg15[%c152, %c0_59], %132 {strides = array<i32>} : memref<360x256xf32, #tpu.memory_space<vmem>>, vector<8x256xf32>,
    %c15_i32_60 = arith.constant 15 : i32
    %134 = tpu.dynamic_rotate %123 by %c15_i32_60 dim 1 : vector<8x256xf32>, i32 -> vector<8x256xf32>
    %135 = vector.extract_strided_slice %0 {offsets = [2, 0], sizes = [1, 256], strides = [1, 1]} : vector<9x256xf32> to vector<1x256xf32>
    %136 = vector.broadcast %135 : vector<1x256xf32> to vector<8x256xf32>
    %137 = arith.mulf %134, %136 : vector<8x256xf32>
    %c160 = arith.constant 160 : index
    %c0_61 = arith.constant 0 : index
    %138 = vector.load %arg15[%c160, %c0_61] : memref<360x256xf32, #tpu.memory_space<vmem>>, vector<8x256xf32>
    tpu.vector_store %arg15[%c160, %c0_61], %137 {strides = array<i32>} : memref<360x256xf32, #tpu.memory_space<vmem>>, vector<8x256xf32>,
    %c1_i32_62 = arith.constant 1 : i32
    %139 = tpu.dynamic_rotate %123 by %c1_i32_62 dim 1 : vector<8x256xf32>, i32 -> vector<8x256xf32>
    %140 = vector.extract_strided_slice %0 {offsets = [3, 0], sizes = [1, 256], strides = [1, 1]} : vector<9x256xf32> to vector<1x256xf32>
    %141 = vector.broadcast %140 : vector<1x256xf32> to vector<8x256xf32>
    %142 = arith.mulf %139, %141 : vector<8x256xf32>
    %c168 = arith.constant 168 : index
    %c0_63 = arith.constant 0 : index
    %143 = vector.load %arg15[%c168, %c0_63] : memref<360x256xf32, #tpu.memory_space<vmem>>, vector<8x256xf32>
    tpu.vector_store %arg15[%c168, %c0_63], %142 {strides = array<i32>} : memref<360x256xf32, #tpu.memory_space<vmem>>, vector<8x256xf32>,
    %144 = vector.extract_strided_slice %0 {offsets = [4, 0], sizes = [1, 256], strides = [1, 1]} : vector<9x256xf32> to vector<1x256xf32>
    %145 = vector.broadcast %144 : vector<1x256xf32> to vector<8x256xf32>
    %146 = arith.mulf %123, %145 : vector<8x256xf32>
    %c176 = arith.constant 176 : index
    %c0_64 = arith.constant 0 : index
    %147 = vector.load %arg15[%c176, %c0_64] : memref<360x256xf32, #tpu.memory_space<vmem>>, vector<8x256xf32>
    tpu.vector_store %arg15[%c176, %c0_64], %146 {strides = array<i32>} : memref<360x256xf32, #tpu.memory_space<vmem>>, vector<8x256xf32>,
    %c255_i32_65 = arith.constant 255 : i32
    %148 = tpu.dynamic_rotate %123 by %c255_i32_65 dim 1 : vector<8x256xf32>, i32 -> vector<8x256xf32>
    %149 = vector.extract_strided_slice %0 {offsets = [5, 0], sizes = [1, 256], strides = [1, 1]} : vector<9x256xf32> to vector<1x256xf32>
    %150 = vector.broadcast %149 : vector<1x256xf32> to vector<8x256xf32>
    %151 = arith.mulf %148, %150 : vector<8x256xf32>
    %c184 = arith.constant 184 : index
    %c0_66 = arith.constant 0 : index
    %152 = vector.load %arg15[%c184, %c0_66] : memref<360x256xf32, #tpu.memory_space<vmem>>, vector<8x256xf32>
    tpu.vector_store %arg15[%c184, %c0_66], %151 {strides = array<i32>} : memref<360x256xf32, #tpu.memory_space<vmem>>, vector<8x256xf32>,
    %c241_i32_67 = arith.constant 241 : i32
    %153 = tpu.dynamic_rotate %123 by %c241_i32_67 dim 1 : vector<8x256xf32>, i32 -> vector<8x256xf32>
    %154 = vector.extract_strided_slice %0 {offsets = [6, 0], sizes = [1, 256], strides = [1, 1]} : vector<9x256xf32> to vector<1x256xf32>
    %155 = vector.broadcast %154 : vector<1x256xf32> to vector<8x256xf32>
    %156 = arith.mulf %153, %155 : vector<8x256xf32>
    %c192 = arith.constant 192 : index
    %c0_68 = arith.constant 0 : index
    %157 = vector.load %arg15[%c192, %c0_68] : memref<360x256xf32, #tpu.memory_space<vmem>>, vector<8x256xf32>
    tpu.vector_store %arg15[%c192, %c0_68], %156 {strides = array<i32>} : memref<360x256xf32, #tpu.memory_space<vmem>>, vector<8x256xf32>,
    %c240_i32_69 = arith.constant 240 : i32
    %158 = tpu.dynamic_rotate %123 by %c240_i32_69 dim 1 : vector<8x256xf32>, i32 -> vector<8x256xf32>
    %159 = vector.extract_strided_slice %0 {offsets = [7, 0], sizes = [1, 256], strides = [1, 1]} : vector<9x256xf32> to vector<1x256xf32>
    %160 = vector.broadcast %159 : vector<1x256xf32> to vector<8x256xf32>
    %161 = arith.mulf %158, %160 : vector<8x256xf32>
    %c200 = arith.constant 200 : index
    %c0_70 = arith.constant 0 : index
    %162 = vector.load %arg15[%c200, %c0_70] : memref<360x256xf32, #tpu.memory_space<vmem>>, vector<8x256xf32>
    tpu.vector_store %arg15[%c200, %c0_70], %161 {strides = array<i32>} : memref<360x256xf32, #tpu.memory_space<vmem>>, vector<8x256xf32>,
    %c239_i32_71 = arith.constant 239 : i32
    %163 = tpu.dynamic_rotate %123 by %c239_i32_71 dim 1 : vector<8x256xf32>, i32 -> vector<8x256xf32>
    %164 = vector.extract_strided_slice %0 {offsets = [8, 0], sizes = [1, 256], strides = [1, 1]} : vector<9x256xf32> to vector<1x256xf32>
    %165 = vector.broadcast %164 : vector<1x256xf32> to vector<8x256xf32>
    %166 = arith.mulf %163, %165 : vector<8x256xf32>
    %c208 = arith.constant 208 : index
    %c0_72 = arith.constant 0 : index
    %167 = vector.load %arg15[%c208, %c0_72] : memref<360x256xf32, #tpu.memory_space<vmem>>, vector<8x256xf32>
    tpu.vector_store %arg15[%c208, %c0_72], %166 {strides = array<i32>} : memref<360x256xf32, #tpu.memory_space<vmem>>, vector<8x256xf32>,
    %c0_73 = arith.constant 0 : index
    %c0_74 = arith.constant 0 : index
    %c0_75 = arith.constant 0 : index
    %168 = vector.load %arg7[%c0_73, %c0_74, %c0_75] : memref<3x8x216xbf16, #tpu.memory_space<vmem>>, vector<1x8x216xbf16>
    %169 = vector.shape_cast %168 : vector<1x8x216xbf16> to vector<8x216xbf16>
    %c0_76 = arith.constant 0 : index
    %c0_77 = arith.constant 0 : index
    %170 = vector.load %arg15[%c0_76, %c0_77] : memref<360x256xf32, #tpu.memory_space<vmem>>, vector<216x256xf32>
    %171 = arith.truncf %170 : vector<216x256xf32> to vector<216x256xbf16>
    %cst_78 = arith.constant dense<0.000000e+00> : vector<8x256xf32>
    %172 = tpu.matmul %169, %171, %cst_78 {dimension_numbers = #tpu.dot_dimension_numbers<[1], [0], [0], [1], [0, 0, 1, 1], [], []>} : vector<8x216xbf16>, vector<216x256xbf16>, vector<8x256xf32> -> vector<8x256xf32>
    %c0_79 = arith.constant 0 : index
    %c0_80 = arith.constant 0 : index
    %c0_81 = arith.constant 0 : index
    %173 = vector.load %arg8[%c0_79, %c0_80, %c0_81] : memref<3x8x1xf32, #tpu.memory_space<vmem>>, vector<1x8x1xf32>
    %174 = vector.shape_cast %173 : vector<1x8x1xf32> to vector<8x1xf32>
    %175 = vector.broadcast %174 : vector<8x1xf32> to vector<8x256xf32>
    %176 = arith.addf %172, %175 : vector<8x256xf32>
    %cst_82 = arith.constant 0.000000e+00 : f32
    %177 = vector.broadcast %cst_82 : f32 to vector<8x256xf32>
    %178 = arith.cmpf oge, %176, %177 : vector<8x256xf32>
    %cst_83 = arith.constant 2.000000e-01 : f32
    %179 = vector.broadcast %cst_83 : f32 to vector<8x256xf32>
    %180 = arith.mulf %179, %176 : vector<8x256xf32>
    %181 = arith.select %178, %176, %180 : vector<8x256xi1>, vector<8x256xf32>
    %c17_i32_84 = arith.constant 17 : i32
    %182 = tpu.dynamic_rotate %181 by %c17_i32_84 dim 1 : vector<8x256xf32>, i32 -> vector<8x256xf32>
    %183 = vector.extract_strided_slice %0 {offsets = [0, 0], sizes = [1, 256], strides = [1, 1]} : vector<9x256xf32> to vector<1x256xf32>
    %184 = vector.broadcast %183 : vector<1x256xf32> to vector<8x256xf32>
    %185 = arith.mulf %182, %184 : vector<8x256xf32>
    %c216 = arith.constant 216 : index
    %c0_85 = arith.constant 0 : index
    %186 = vector.load %arg15[%c216, %c0_85] : memref<360x256xf32, #tpu.memory_space<vmem>>, vector<8x256xf32>
    tpu.vector_store %arg15[%c216, %c0_85], %185 {strides = array<i32>} : memref<360x256xf32, #tpu.memory_space<vmem>>, vector<8x256xf32>,
    %c16_i32_86 = arith.constant 16 : i32
    %187 = tpu.dynamic_rotate %181 by %c16_i32_86 dim 1 : vector<8x256xf32>, i32 -> vector<8x256xf32>
    %188 = vector.extract_strided_slice %0 {offsets = [1, 0], sizes = [1, 256], strides = [1, 1]} : vector<9x256xf32> to vector<1x256xf32>
    %189 = vector.broadcast %188 : vector<1x256xf32> to vector<8x256xf32>
    %190 = arith.mulf %187, %189 : vector<8x256xf32>
    %c224 = arith.constant 224 : index
    %c0_87 = arith.constant 0 : index
    %191 = vector.load %arg15[%c224, %c0_87] : memref<360x256xf32, #tpu.memory_space<vmem>>, vector<8x256xf32>
    tpu.vector_store %arg15[%c224, %c0_87], %190 {strides = array<i32>} : memref<360x256xf32, #tpu.memory_space<vmem>>, vector<8x256xf32>,
    %c15_i32_88 = arith.constant 15 : i32
    %192 = tpu.dynamic_rotate %181 by %c15_i32_88 dim 1 : vector<8x256xf32>, i32 -> vector<8x256xf32>
    %193 = vector.extract_strided_slice %0 {offsets = [2, 0], sizes = [1, 256], strides = [1, 1]} : vector<9x256xf32> to vector<1x256xf32>
    %194 = vector.broadcast %193 : vector<1x256xf32> to vector<8x256xf32>
    %195 = arith.mulf %192, %194 : vector<8x256xf32>
    %c232 = arith.constant 232 : index
    %c0_89 = arith.constant 0 : index
    %196 = vector.load %arg15[%c232, %c0_89] : memref<360x256xf32, #tpu.memory_space<vmem>>, vector<8x256xf32>
    tpu.vector_store %arg15[%c232, %c0_89], %195 {strides = array<i32>} : memref<360x256xf32, #tpu.memory_space<vmem>>, vector<8x256xf32>,
    %c1_i32_90 = arith.constant 1 : i32
    %197 = tpu.dynamic_rotate %181 by %c1_i32_90 dim 1 : vector<8x256xf32>, i32 -> vector<8x256xf32>
    %198 = vector.extract_strided_slice %0 {offsets = [3, 0], sizes = [1, 256], strides = [1, 1]} : vector<9x256xf32> to vector<1x256xf32>
    %199 = vector.broadcast %198 : vector<1x256xf32> to vector<8x256xf32>
    %200 = arith.mulf %197, %199 : vector<8x256xf32>
    %c240 = arith.constant 240 : index
    %c0_91 = arith.constant 0 : index
    %201 = vector.load %arg15[%c240, %c0_91] : memref<360x256xf32, #tpu.memory_space<vmem>>, vector<8x256xf32>
    tpu.vector_store %arg15[%c240, %c0_91], %200 {strides = array<i32>} : memref<360x256xf32, #tpu.memory_space<vmem>>, vector<8x256xf32>,
    %202 = vector.extract_strided_slice %0 {offsets = [4, 0], sizes = [1, 256], strides = [1, 1]} : vector<9x256xf32> to vector<1x256xf32>
    %203 = vector.broadcast %202 : vector<1x256xf32> to vector<8x256xf32>
    %204 = arith.mulf %181, %203 : vector<8x256xf32>
    %c248 = arith.constant 248 : index
    %c0_92 = arith.constant 0 : index
    %205 = vector.load %arg15[%c248, %c0_92] : memref<360x256xf32, #tpu.memory_space<vmem>>, vector<8x256xf32>
    tpu.vector_store %arg15[%c248, %c0_92], %204 {strides = array<i32>} : memref<360x256xf32, #tpu.memory_space<vmem>>, vector<8x256xf32>,
    %c255_i32_93 = arith.constant 255 : i32
    %206 = tpu.dynamic_rotate %181 by %c255_i32_93 dim 1 : vector<8x256xf32>, i32 -> vector<8x256xf32>
    %207 = vector.extract_strided_slice %0 {offsets = [5, 0], sizes = [1, 256], strides = [1, 1]} : vector<9x256xf32> to vector<1x256xf32>
    %208 = vector.broadcast %207 : vector<1x256xf32> to vector<8x256xf32>
    %209 = arith.mulf %206, %208 : vector<8x256xf32>
    %c256 = arith.constant 256 : index
    %c0_94 = arith.constant 0 : index
    %210 = vector.load %arg15[%c256, %c0_94] : memref<360x256xf32, #tpu.memory_space<vmem>>, vector<8x256xf32>
    tpu.vector_store %arg15[%c256, %c0_94], %209 {strides = array<i32>} : memref<360x256xf32, #tpu.memory_space<vmem>>, vector<8x256xf32>,
    %c241_i32_95 = arith.constant 241 : i32
    %211 = tpu.dynamic_rotate %181 by %c241_i32_95 dim 1 : vector<8x256xf32>, i32 -> vector<8x256xf32>
    %212 = vector.extract_strided_slice %0 {offsets = [6, 0], sizes = [1, 256], strides = [1, 1]} : vector<9x256xf32> to vector<1x256xf32>
    %213 = vector.broadcast %212 : vector<1x256xf32> to vector<8x256xf32>
    %214 = arith.mulf %211, %213 : vector<8x256xf32>
    %c264 = arith.constant 264 : index
    %c0_96 = arith.constant 0 : index
    %215 = vector.load %arg15[%c264, %c0_96] : memref<360x256xf32, #tpu.memory_space<vmem>>, vector<8x256xf32>
    tpu.vector_store %arg15[%c264, %c0_96], %214 {strides = array<i32>} : memref<360x256xf32, #tpu.memory_space<vmem>>, vector<8x256xf32>,
    %c240_i32_97 = arith.constant 240 : i32
    %216 = tpu.dynamic_rotate %181 by %c240_i32_97 dim 1 : vector<8x256xf32>, i32 -> vector<8x256xf32>
    %217 = vector.extract_strided_slice %0 {offsets = [7, 0], sizes = [1, 256], strides = [1, 1]} : vector<9x256xf32> to vector<1x256xf32>
    %218 = vector.broadcast %217 : vector<1x256xf32> to vector<8x256xf32>
    %219 = arith.mulf %216, %218 : vector<8x256xf32>
    %c272 = arith.constant 272 : index
    %c0_98 = arith.constant 0 : index
    %220 = vector.load %arg15[%c272, %c0_98] : memref<360x256xf32, #tpu.memory_space<vmem>>, vector<8x256xf32>
    tpu.vector_store %arg15[%c272, %c0_98], %219 {strides = array<i32>} : memref<360x256xf32, #tpu.memory_space<vmem>>, vector<8x256xf32>,
    %c239_i32_99 = arith.constant 239 : i32
    %221 = tpu.dynamic_rotate %181 by %c239_i32_99 dim 1 : vector<8x256xf32>, i32 -> vector<8x256xf32>
    %222 = vector.extract_strided_slice %0 {offsets = [8, 0], sizes = [1, 256], strides = [1, 1]} : vector<9x256xf32> to vector<1x256xf32>
    %223 = vector.broadcast %222 : vector<1x256xf32> to vector<8x256xf32>
    %224 = arith.mulf %221, %223 : vector<8x256xf32>
    %c280 = arith.constant 280 : index
    %c0_100 = arith.constant 0 : index
    %225 = vector.load %arg15[%c280, %c0_100] : memref<360x256xf32, #tpu.memory_space<vmem>>, vector<8x256xf32>
    tpu.vector_store %arg15[%c280, %c0_100], %224 {strides = array<i32>} : memref<360x256xf32, #tpu.memory_space<vmem>>, vector<8x256xf32>,
    %c0_101 = arith.constant 0 : index
    %c0_102 = arith.constant 0 : index
    %c0_103 = arith.constant 0 : index
    %226 = vector.load %arg9[%c0_101, %c0_102, %c0_103] : memref<3x8x288xbf16, #tpu.memory_space<vmem>>, vector<1x8x288xbf16>
    %227 = vector.shape_cast %226 : vector<1x8x288xbf16> to vector<8x288xbf16>
    %c0_104 = arith.constant 0 : index
    %c0_105 = arith.constant 0 : index
    %228 = vector.load %arg15[%c0_104, %c0_105] : memref<360x256xf32, #tpu.memory_space<vmem>>, vector<288x256xf32>
    %229 = arith.truncf %228 : vector<288x256xf32> to vector<288x256xbf16>
    %cst_106 = arith.constant dense<0.000000e+00> : vector<8x256xf32>
    %230 = tpu.matmul %227, %229, %cst_106 {dimension_numbers = #tpu.dot_dimension_numbers<[1], [0], [0], [1], [0, 0, 1, 1], [], []>} : vector<8x288xbf16>, vector<288x256xbf16>, vector<8x256xf32> -> vector<8x256xf32>
    %c0_107 = arith.constant 0 : index
    %c0_108 = arith.constant 0 : index
    %c0_109 = arith.constant 0 : index
    %231 = vector.load %arg10[%c0_107, %c0_108, %c0_109] : memref<3x8x1xf32, #tpu.memory_space<vmem>>, vector<1x8x1xf32>
    %232 = vector.shape_cast %231 : vector<1x8x1xf32> to vector<8x1xf32>
    %233 = vector.broadcast %232 : vector<8x1xf32> to vector<8x256xf32>
    %234 = arith.addf %230, %233 : vector<8x256xf32>
    %cst_110 = arith.constant 0.000000e+00 : f32
    %235 = vector.broadcast %cst_110 : f32 to vector<8x256xf32>
    %236 = arith.cmpf oge, %234, %235 : vector<8x256xf32>
    %cst_111 = arith.constant 2.000000e-01 : f32
    %237 = vector.broadcast %cst_111 : f32 to vector<8x256xf32>
    %238 = arith.mulf %237, %234 : vector<8x256xf32>
    %239 = arith.select %236, %234, %238 : vector<8x256xi1>, vector<8x256xf32>
    %240 = arith.addf %239, %123 : vector<8x256xf32>
    %c17_i32_112 = arith.constant 17 : i32
    %241 = tpu.dynamic_rotate %240 by %c17_i32_112 dim 1 : vector<8x256xf32>, i32 -> vector<8x256xf32>
    %242 = vector.extract_strided_slice %0 {offsets = [0, 0], sizes = [1, 256], strides = [1, 1]} : vector<9x256xf32> to vector<1x256xf32>
    %243 = vector.broadcast %242 : vector<1x256xf32> to vector<8x256xf32>
    %244 = arith.mulf %241, %243 : vector<8x256xf32>
    %c288 = arith.constant 288 : index
    %c0_113 = arith.constant 0 : index
    %245 = vector.load %arg15[%c288, %c0_113] : memref<360x256xf32, #tpu.memory_space<vmem>>, vector<8x256xf32>
    tpu.vector_store %arg15[%c288, %c0_113], %244 {strides = array<i32>} : memref<360x256xf32, #tpu.memory_space<vmem>>, vector<8x256xf32>,
    %c16_i32_114 = arith.constant 16 : i32
    %246 = tpu.dynamic_rotate %240 by %c16_i32_114 dim 1 : vector<8x256xf32>, i32 -> vector<8x256xf32>
    %247 = vector.extract_strided_slice %0 {offsets = [1, 0], sizes = [1, 256], strides = [1, 1]} : vector<9x256xf32> to vector<1x256xf32>
    %248 = vector.broadcast %247 : vector<1x256xf32> to vector<8x256xf32>
    %249 = arith.mulf %246, %248 : vector<8x256xf32>
    %c296 = arith.constant 296 : index
    %c0_115 = arith.constant 0 : index
    %250 = vector.load %arg15[%c296, %c0_115] : memref<360x256xf32, #tpu.memory_space<vmem>>, vector<8x256xf32>
    tpu.vector_store %arg15[%c296, %c0_115], %249 {strides = array<i32>} : memref<360x256xf32, #tpu.memory_space<vmem>>, vector<8x256xf32>,
    %c15_i32_116 = arith.constant 15 : i32
    %251 = tpu.dynamic_rotate %240 by %c15_i32_116 dim 1 : vector<8x256xf32>, i32 -> vector<8x256xf32>
    %252 = vector.extract_strided_slice %0 {offsets = [2, 0], sizes = [1, 256], strides = [1, 1]} : vector<9x256xf32> to vector<1x256xf32>
    %253 = vector.broadcast %252 : vector<1x256xf32> to vector<8x256xf32>
    %254 = arith.mulf %251, %253 : vector<8x256xf32>
    %c304 = arith.constant 304 : index
    %c0_117 = arith.constant 0 : index
    %255 = vector.load %arg15[%c304, %c0_117] : memref<360x256xf32, #tpu.memory_space<vmem>>, vector<8x256xf32>
    tpu.vector_store %arg15[%c304, %c0_117], %254 {strides = array<i32>} : memref<360x256xf32, #tpu.memory_space<vmem>>, vector<8x256xf32>,
    %c1_i32_118 = arith.constant 1 : i32
    %256 = tpu.dynamic_rotate %240 by %c1_i32_118 dim 1 : vector<8x256xf32>, i32 -> vector<8x256xf32>
    %257 = vector.extract_strided_slice %0 {offsets = [3, 0], sizes = [1, 256], strides = [1, 1]} : vector<9x256xf32> to vector<1x256xf32>
    %258 = vector.broadcast %257 : vector<1x256xf32> to vector<8x256xf32>
    %259 = arith.mulf %256, %258 : vector<8x256xf32>
    %c312 = arith.constant 312 : index
    %c0_119 = arith.constant 0 : index
    %260 = vector.load %arg15[%c312, %c0_119] : memref<360x256xf32, #tpu.memory_space<vmem>>, vector<8x256xf32>
    tpu.vector_store %arg15[%c312, %c0_119], %259 {strides = array<i32>} : memref<360x256xf32, #tpu.memory_space<vmem>>, vector<8x256xf32>,
    %261 = vector.extract_strided_slice %0 {offsets = [4, 0], sizes = [1, 256], strides = [1, 1]} : vector<9x256xf32> to vector<1x256xf32>
    %262 = vector.broadcast %261 : vector<1x256xf32> to vector<8x256xf32>
    %263 = arith.mulf %240, %262 : vector<8x256xf32>
    %c320 = arith.constant 320 : index
    %c0_120 = arith.constant 0 : index
    %264 = vector.load %arg15[%c320, %c0_120] : memref<360x256xf32, #tpu.memory_space<vmem>>, vector<8x256xf32>
    tpu.vector_store %arg15[%c320, %c0_120], %263 {strides = array<i32>} : memref<360x256xf32, #tpu.memory_space<vmem>>, vector<8x256xf32>,
    %c255_i32_121 = arith.constant 255 : i32
    %265 = tpu.dynamic_rotate %240 by %c255_i32_121 dim 1 : vector<8x256xf32>, i32 -> vector<8x256xf32>
    %266 = vector.extract_strided_slice %0 {offsets = [5, 0], sizes = [1, 256], strides = [1, 1]} : vector<9x256xf32> to vector<1x256xf32>
    %267 = vector.broadcast %266 : vector<1x256xf32> to vector<8x256xf32>
    %268 = arith.mulf %265, %267 : vector<8x256xf32>
    %c328 = arith.constant 328 : index
    %c0_122 = arith.constant 0 : index
    %269 = vector.load %arg15[%c328, %c0_122] : memref<360x256xf32, #tpu.memory_space<vmem>>, vector<8x256xf32>
    tpu.vector_store %arg15[%c328, %c0_122], %268 {strides = array<i32>} : memref<360x256xf32, #tpu.memory_space<vmem>>, vector<8x256xf32>,
    %c241_i32_123 = arith.constant 241 : i32
    %270 = tpu.dynamic_rotate %240 by %c241_i32_123 dim 1 : vector<8x256xf32>, i32 -> vector<8x256xf32>
    %271 = vector.extract_strided_slice %0 {offsets = [6, 0], sizes = [1, 256], strides = [1, 1]} : vector<9x256xf32> to vector<1x256xf32>
    %272 = vector.broadcast %271 : vector<1x256xf32> to vector<8x256xf32>
    %273 = arith.mulf %270, %272 : vector<8x256xf32>
    %c336 = arith.constant 336 : index
    %c0_124 = arith.constant 0 : index
    %274 = vector.load %arg15[%c336, %c0_124] : memref<360x256xf32, #tpu.memory_space<vmem>>, vector<8x256xf32>
    tpu.vector_store %arg15[%c336, %c0_124], %273 {strides = array<i32>} : memref<360x256xf32, #tpu.memory_space<vmem>>, vector<8x256xf32>,
    %c240_i32_125 = arith.constant 240 : i32
    %275 = tpu.dynamic_rotate %240 by %c240_i32_125 dim 1 : vector<8x256xf32>, i32 -> vector<8x256xf32>
    %276 = vector.extract_strided_slice %0 {offsets = [7, 0], sizes = [1, 256], strides = [1, 1]} : vector<9x256xf32> to vector<1x256xf32>
    %277 = vector.broadcast %276 : vector<1x256xf32> to vector<8x256xf32>
    %278 = arith.mulf %275, %277 : vector<8x256xf32>
    %c344 = arith.constant 344 : index
    %c0_126 = arith.constant 0 : index
    %279 = vector.load %arg15[%c344, %c0_126] : memref<360x256xf32, #tpu.memory_space<vmem>>, vector<8x256xf32>
    tpu.vector_store %arg15[%c344, %c0_126], %278 {strides = array<i32>} : memref<360x256xf32, #tpu.memory_space<vmem>>, vector<8x256xf32>,
    %c239_i32_127 = arith.constant 239 : i32
    %280 = tpu.dynamic_rotate %240 by %c239_i32_127 dim 1 : vector<8x256xf32>, i32 -> vector<8x256xf32>
    %281 = vector.extract_strided_slice %0 {offsets = [8, 0], sizes = [1, 256], strides = [1, 1]} : vector<9x256xf32> to vector<1x256xf32>
    %282 = vector.broadcast %281 : vector<1x256xf32> to vector<8x256xf32>
    %283 = arith.mulf %280, %282 : vector<8x256xf32>
    %c352 = arith.constant 352 : index
    %c0_128 = arith.constant 0 : index
    %284 = vector.load %arg15[%c352, %c0_128] : memref<360x256xf32, #tpu.memory_space<vmem>>, vector<8x256xf32>
    tpu.vector_store %arg15[%c352, %c0_128], %283 {strides = array<i32>} : memref<360x256xf32, #tpu.memory_space<vmem>>, vector<8x256xf32>,
    %c0_129 = arith.constant 0 : index
    %c0_130 = arith.constant 0 : index
    %c0_131 = arith.constant 0 : index
    %285 = vector.load %arg11[%c0_129, %c0_130, %c0_131] : memref<3x8x360xbf16, #tpu.memory_space<vmem>>, vector<1x8x360xbf16>
    %286 = vector.shape_cast %285 : vector<1x8x360xbf16> to vector<8x360xbf16>
    %c0_132 = arith.constant 0 : index
    %c0_133 = arith.constant 0 : index
    %287 = vector.load %arg15[%c0_132, %c0_133] : memref<360x256xf32, #tpu.memory_space<vmem>>, vector<360x256xf32>
    %288 = arith.truncf %287 : vector<360x256xf32> to vector<360x256xbf16>
    %cst_134 = arith.constant dense<0.000000e+00> : vector<8x256xf32>
    %289 = tpu.matmul %286, %288, %cst_134 {dimension_numbers = #tpu.dot_dimension_numbers<[1], [0], [0], [1], [0, 0, 1, 1], [], []>} : vector<8x360xbf16>, vector<360x256xbf16>, vector<8x256xf32> -> vector<8x256xf32>
    %c0_135 = arith.constant 0 : index
    %c0_136 = arith.constant 0 : index
    %c0_137 = arith.constant 0 : index
    %290 = vector.load %arg12[%c0_135, %c0_136, %c0_137] : memref<3x8x1xf32, #tpu.memory_space<vmem>>, vector<1x8x1xf32>
    %291 = vector.shape_cast %290 : vector<1x8x1xf32> to vector<8x1xf32>
    %292 = vector.broadcast %291 : vector<8x1xf32> to vector<8x256xf32>
    %293 = arith.addf %289, %292 : vector<8x256xf32>
    %cst_138 = arith.constant 2.000000e-01 : f32
    %294 = vector.broadcast %cst_138 : f32 to vector<8x256xf32>
    %295 = arith.mulf %293, %294 : vector<8x256xf32>
    %296 = arith.addf %295, %2 : vector<8x256xf32>
    %c17_i32_139 = arith.constant 17 : i32
    %297 = tpu.dynamic_rotate %296 by %c17_i32_139 dim 1 : vector<8x256xf32>, i32 -> vector<8x256xf32>
    %298 = vector.extract_strided_slice %0 {offsets = [0, 0], sizes = [1, 256], strides = [1, 1]} : vector<9x256xf32> to vector<1x256xf32>
    %299 = vector.broadcast %298 : vector<1x256xf32> to vector<8x256xf32>
    %300 = arith.mulf %297, %299 : vector<8x256xf32>
    %c0_140 = arith.constant 0 : index
    %c0_141 = arith.constant 0 : index
    %301 = vector.load %arg15[%c0_140, %c0_141] : memref<360x256xf32, #tpu.memory_space<vmem>>, vector<8x256xf32>
    tpu.vector_store %arg15[%c0_140, %c0_141], %300 {strides = array<i32>} : memref<360x256xf32, #tpu.memory_space<vmem>>, vector<8x256xf32>,
    %c16_i32_142 = arith.constant 16 : i32
    %302 = tpu.dynamic_rotate %296 by %c16_i32_142 dim 1 : vector<8x256xf32>, i32 -> vector<8x256xf32>
    %303 = vector.extract_strided_slice %0 {offsets = [1, 0], sizes = [1, 256], strides = [1, 1]} : vector<9x256xf32> to vector<1x256xf32>
    %304 = vector.broadcast %303 : vector<1x256xf32> to vector<8x256xf32>
    %305 = arith.mulf %302, %304 : vector<8x256xf32>
    %c8_143 = arith.constant 8 : index
    %c0_144 = arith.constant 0 : index
    %306 = vector.load %arg15[%c8_143, %c0_144] : memref<360x256xf32, #tpu.memory_space<vmem>>, vector<8x256xf32>
    tpu.vector_store %arg15[%c8_143, %c0_144], %305 {strides = array<i32>} : memref<360x256xf32, #tpu.memory_space<vmem>>, vector<8x256xf32>,
    %c15_i32_145 = arith.constant 15 : i32
    %307 = tpu.dynamic_rotate %296 by %c15_i32_145 dim 1 : vector<8x256xf32>, i32 -> vector<8x256xf32>
    %308 = vector.extract_strided_slice %0 {offsets = [2, 0], sizes = [1, 256], strides = [1, 1]} : vector<9x256xf32> to vector<1x256xf32>
    %309 = vector.broadcast %308 : vector<1x256xf32> to vector<8x256xf32>
    %310 = arith.mulf %307, %309 : vector<8x256xf32>
    %c16_146 = arith.constant 16 : index
    %c0_147 = arith.constant 0 : index
    %311 = vector.load %arg15[%c16_146, %c0_147] : memref<360x256xf32, #tpu.memory_space<vmem>>, vector<8x256xf32>
    tpu.vector_store %arg15[%c16_146, %c0_147], %310 {strides = array<i32>} : memref<360x256xf32, #tpu.memory_space<vmem>>, vector<8x256xf32>,
    %c1_i32_148 = arith.constant 1 : i32
    %312 = tpu.dynamic_rotate %296 by %c1_i32_148 dim 1 : vector<8x256xf32>, i32 -> vector<8x256xf32>
    %313 = vector.extract_strided_slice %0 {offsets = [3, 0], sizes = [1, 256], strides = [1, 1]} : vector<9x256xf32> to vector<1x256xf32>
    %314 = vector.broadcast %313 : vector<1x256xf32> to vector<8x256xf32>
    %315 = arith.mulf %312, %314 : vector<8x256xf32>
    %c24_149 = arith.constant 24 : index
    %c0_150 = arith.constant 0 : index
    %316 = vector.load %arg15[%c24_149, %c0_150] : memref<360x256xf32, #tpu.memory_space<vmem>>, vector<8x256xf32>
    tpu.vector_store %arg15[%c24_149, %c0_150], %315 {strides = array<i32>} : memref<360x256xf32, #tpu.memory_space<vmem>>, vector<8x256xf32>,
    %317 = vector.extract_strided_slice %0 {offsets = [4, 0], sizes = [1, 256], strides = [1, 1]} : vector<9x256xf32> to vector<1x256xf32>
    %318 = vector.broadcast %317 : vector<1x256xf32> to vector<8x256xf32>
    %319 = arith.mulf %296, %318 : vector<8x256xf32>
    %c32_151 = arith.constant 32 : index
    %c0_152 = arith.constant 0 : index
    %320 = vector.load %arg15[%c32_151, %c0_152] : memref<360x256xf32, #tpu.memory_space<vmem>>, vector<8x256xf32>
    tpu.vector_store %arg15[%c32_151, %c0_152], %319 {strides = array<i32>} : memref<360x256xf32, #tpu.memory_space<vmem>>, vector<8x256xf32>,
    %c255_i32_153 = arith.constant 255 : i32
    %321 = tpu.dynamic_rotate %296 by %c255_i32_153 dim 1 : vector<8x256xf32>, i32 -> vector<8x256xf32>
    %322 = vector.extract_strided_slice %0 {offsets = [5, 0], sizes = [1, 256], strides = [1, 1]} : vector<9x256xf32> to vector<1x256xf32>
    %323 = vector.broadcast %322 : vector<1x256xf32> to vector<8x256xf32>
    %324 = arith.mulf %321, %323 : vector<8x256xf32>
    %c40_154 = arith.constant 40 : index
    %c0_155 = arith.constant 0 : index
    %325 = vector.load %arg15[%c40_154, %c0_155] : memref<360x256xf32, #tpu.memory_space<vmem>>, vector<8x256xf32>
    tpu.vector_store %arg15[%c40_154, %c0_155], %324 {strides = array<i32>} : memref<360x256xf32, #tpu.memory_space<vmem>>, vector<8x256xf32>,
    %c241_i32_156 = arith.constant 241 : i32
    %326 = tpu.dynamic_rotate %296 by %c241_i32_156 dim 1 : vector<8x256xf32>, i32 -> vector<8x256xf32>
    %327 = vector.extract_strided_slice %0 {offsets = [6, 0], sizes = [1, 256], strides = [1, 1]} : vector<9x256xf32> to vector<1x256xf32>
    %328 = vector.broadcast %327 : vector<1x256xf32> to vector<8x256xf32>
    %329 = arith.mulf %326, %328 : vector<8x256xf32>
    %c48_157 = arith.constant 48 : index
    %c0_158 = arith.constant 0 : index
    %330 = vector.load %arg15[%c48_157, %c0_158] : memref<360x256xf32, #tpu.memory_space<vmem>>, vector<8x256xf32>
    tpu.vector_store %arg15[%c48_157, %c0_158], %329 {strides = array<i32>} : memref<360x256xf32, #tpu.memory_space<vmem>>, vector<8x256xf32>,
    %c240_i32_159 = arith.constant 240 : i32
    %331 = tpu.dynamic_rotate %296 by %c240_i32_159 dim 1 : vector<8x256xf32>, i32 -> vector<8x256xf32>
    %332 = vector.extract_strided_slice %0 {offsets = [7, 0], sizes = [1, 256], strides = [1, 1]} : vector<9x256xf32> to vector<1x256xf32>
    %333 = vector.broadcast %332 : vector<1x256xf32> to vector<8x256xf32>
    %334 = arith.mulf %331, %333 : vector<8x256xf32>
    %c56_160 = arith.constant 56 : index
    %c0_161 = arith.constant 0 : index
    %335 = vector.load %arg15[%c56_160, %c0_161] : memref<360x256xf32, #tpu.memory_space<vmem>>, vector<8x256xf32>
    tpu.vector_store %arg15[%c56_160, %c0_161], %334 {strides = array<i32>} : memref<360x256xf32, #tpu.memory_space<vmem>>, vector<8x256xf32>,
    %c239_i32_162 = arith.constant 239 : i32
    %336 = tpu.dynamic_rotate %296 by %c239_i32_162 dim 1 : vector<8x256xf32>, i32 -> vector<8x256xf32>
    %337 = vector.extract_strided_slice %0 {offsets = [8, 0], sizes = [1, 256], strides = [1, 1]} : vector<9x256xf32> to vector<1x256xf32>
    %338 = vector.broadcast %337 : vector<1x256xf32> to vector<8x256xf32>
    %339 = arith.mulf %336, %338 : vector<8x256xf32>
    %c64_163 = arith.constant 64 : index
    %c0_164 = arith.constant 0 : index
    %340 = vector.load %arg15[%c64_163, %c0_164] : memref<360x256xf32, #tpu.memory_space<vmem>>, vector<8x256xf32>
    tpu.vector_store %arg15[%c64_163, %c0_164], %339 {strides = array<i32>} : memref<360x256xf32, #tpu.memory_space<vmem>>, vector<8x256xf32>,
    %c1 = arith.constant 1 : index
    %c0_165 = arith.constant 0 : index
    %c0_166 = arith.constant 0 : index
    %341 = vector.load %arg3[%c1, %c0_165, %c0_166] : memref<3x8x72xbf16, #tpu.memory_space<vmem>>, vector<1x8x72xbf16>
    %342 = vector.shape_cast %341 : vector<1x8x72xbf16> to vector<8x72xbf16>
    %c0_167 = arith.constant 0 : index
    %c0_168 = arith.constant 0 : index
    %343 = vector.load %arg15[%c0_167, %c0_168] : memref<360x256xf32, #tpu.memory_space<vmem>>, vector<72x256xf32>
    %344 = arith.truncf %343 : vector<72x256xf32> to vector<72x256xbf16>
    %cst_169 = arith.constant dense<0.000000e+00> : vector<8x256xf32>
    %345 = tpu.matmul %342, %344, %cst_169 {dimension_numbers = #tpu.dot_dimension_numbers<[1], [0], [0], [1], [0, 0, 1, 1], [], []>} : vector<8x72xbf16>, vector<72x256xbf16>, vector<8x256xf32> -> vector<8x256xf32>
    %c1_170 = arith.constant 1 : index
    %c0_171 = arith.constant 0 : index
    %c0_172 = arith.constant 0 : index
    %346 = vector.load %arg4[%c1_170, %c0_171, %c0_172] : memref<3x8x1xf32, #tpu.memory_space<vmem>>, vector<1x8x1xf32>
    %347 = vector.shape_cast %346 : vector<1x8x1xf32> to vector<8x1xf32>
    %348 = vector.broadcast %347 : vector<8x1xf32> to vector<8x256xf32>
    %349 = arith.addf %345, %348 : vector<8x256xf32>
    %cst_173 = arith.constant 0.000000e+00 : f32
    %350 = vector.broadcast %cst_173 : f32 to vector<8x256xf32>
    %351 = arith.cmpf oge, %349, %350 : vector<8x256xf32>
    %cst_174 = arith.constant 2.000000e-01 : f32
    %352 = vector.broadcast %cst_174 : f32 to vector<8x256xf32>
    %353 = arith.mulf %352, %349 : vector<8x256xf32>
    %354 = arith.select %351, %349, %353 : vector<8x256xi1>, vector<8x256xf32>
    %c17_i32_175 = arith.constant 17 : i32
    %355 = tpu.dynamic_rotate %354 by %c17_i32_175 dim 1 : vector<8x256xf32>, i32 -> vector<8x256xf32>
    %356 = vector.extract_strided_slice %0 {offsets = [0, 0], sizes = [1, 256], strides = [1, 1]} : vector<9x256xf32> to vector<1x256xf32>
    %357 = vector.broadcast %356 : vector<1x256xf32> to vector<8x256xf32>
    %358 = arith.mulf %355, %357 : vector<8x256xf32>
    %c72_176 = arith.constant 72 : index
    %c0_177 = arith.constant 0 : index
    %359 = vector.load %arg15[%c72_176, %c0_177] : memref<360x256xf32, #tpu.memory_space<vmem>>, vector<8x256xf32>
    tpu.vector_store %arg15[%c72_176, %c0_177], %358 {strides = array<i32>} : memref<360x256xf32, #tpu.memory_space<vmem>>, vector<8x256xf32>,
    %c16_i32_178 = arith.constant 16 : i32
    %360 = tpu.dynamic_rotate %354 by %c16_i32_178 dim 1 : vector<8x256xf32>, i32 -> vector<8x256xf32>
    %361 = vector.extract_strided_slice %0 {offsets = [1, 0], sizes = [1, 256], strides = [1, 1]} : vector<9x256xf32> to vector<1x256xf32>
    %362 = vector.broadcast %361 : vector<1x256xf32> to vector<8x256xf32>
    %363 = arith.mulf %360, %362 : vector<8x256xf32>
    %c80_179 = arith.constant 80 : index
    %c0_180 = arith.constant 0 : index
    %364 = vector.load %arg15[%c80_179, %c0_180] : memref<360x256xf32, #tpu.memory_space<vmem>>, vector<8x256xf32>
    tpu.vector_store %arg15[%c80_179, %c0_180], %363 {strides = array<i32>} : memref<360x256xf32, #tpu.memory_space<vmem>>, vector<8x256xf32>,
    %c15_i32_181 = arith.constant 15 : i32
    %365 = tpu.dynamic_rotate %354 by %c15_i32_181 dim 1 : vector<8x256xf32>, i32 -> vector<8x256xf32>
    %366 = vector.extract_strided_slice %0 {offsets = [2, 0], sizes = [1, 256], strides = [1, 1]} : vector<9x256xf32> to vector<1x256xf32>
    %367 = vector.broadcast %366 : vector<1x256xf32> to vector<8x256xf32>
    %368 = arith.mulf %365, %367 : vector<8x256xf32>
    %c88_182 = arith.constant 88 : index
    %c0_183 = arith.constant 0 : index
    %369 = vector.load %arg15[%c88_182, %c0_183] : memref<360x256xf32, #tpu.memory_space<vmem>>, vector<8x256xf32>
    tpu.vector_store %arg15[%c88_182, %c0_183], %368 {strides = array<i32>} : memref<360x256xf32, #tpu.memory_space<vmem>>, vector<8x256xf32>,
    %c1_i32_184 = arith.constant 1 : i32
    %370 = tpu.dynamic_rotate %354 by %c1_i32_184 dim 1 : vector<8x256xf32>, i32 -> vector<8x256xf32>
    %371 = vector.extract_strided_slice %0 {offsets = [3, 0], sizes = [1, 256], strides = [1, 1]} : vector<9x256xf32> to vector<1x256xf32>
    %372 = vector.broadcast %371 : vector<1x256xf32> to vector<8x256xf32>
    %373 = arith.mulf %370, %372 : vector<8x256xf32>
    %c96_185 = arith.constant 96 : index
    %c0_186 = arith.constant 0 : index
    %374 = vector.load %arg15[%c96_185, %c0_186] : memref<360x256xf32, #tpu.memory_space<vmem>>, vector<8x256xf32>
    tpu.vector_store %arg15[%c96_185, %c0_186], %373 {strides = array<i32>} : memref<360x256xf32, #tpu.memory_space<vmem>>, vector<8x256xf32>,
    %375 = vector.extract_strided_slice %0 {offsets = [4, 0], sizes = [1, 256], strides = [1, 1]} : vector<9x256xf32> to vector<1x256xf32>
    %376 = vector.broadcast %375 : vector<1x256xf32> to vector<8x256xf32>
    %377 = arith.mulf %354, %376 : vector<8x256xf32>
    %c104_187 = arith.constant 104 : index
    %c0_188 = arith.constant 0 : index
    %378 = vector.load %arg15[%c104_187, %c0_188] : memref<360x256xf32, #tpu.memory_space<vmem>>, vector<8x256xf32>
    tpu.vector_store %arg15[%c104_187, %c0_188], %377 {strides = array<i32>} : memref<360x256xf32, #tpu.memory_space<vmem>>, vector<8x256xf32>,
    %c255_i32_189 = arith.constant 255 : i32
    %379 = tpu.dynamic_rotate %354 by %c255_i32_189 dim 1 : vector<8x256xf32>, i32 -> vector<8x256xf32>
    %380 = vector.extract_strided_slice %0 {offsets = [5, 0], sizes = [1, 256], strides = [1, 1]} : vector<9x256xf32> to vector<1x256xf32>
    %381 = vector.broadcast %380 : vector<1x256xf32> to vector<8x256xf32>
    %382 = arith.mulf %379, %381 : vector<8x256xf32>
    %c112_190 = arith.constant 112 : index
    %c0_191 = arith.constant 0 : index
    %383 = vector.load %arg15[%c112_190, %c0_191] : memref<360x256xf32, #tpu.memory_space<vmem>>, vector<8x256xf32>
    tpu.vector_store %arg15[%c112_190, %c0_191], %382 {strides = array<i32>} : memref<360x256xf32, #tpu.memory_space<vmem>>, vector<8x256xf32>,
    %c241_i32_192 = arith.constant 241 : i32
    %384 = tpu.dynamic_rotate %354 by %c241_i32_192 dim 1 : vector<8x256xf32>, i32 -> vector<8x256xf32>
    %385 = vector.extract_strided_slice %0 {offsets = [6, 0], sizes = [1, 256], strides = [1, 1]} : vector<9x256xf32> to vector<1x256xf32>
    %386 = vector.broadcast %385 : vector<1x256xf32> to vector<8x256xf32>
    %387 = arith.mulf %384, %386 : vector<8x256xf32>
    %c120_193 = arith.constant 120 : index
    %c0_194 = arith.constant 0 : index
    %388 = vector.load %arg15[%c120_193, %c0_194] : memref<360x256xf32, #tpu.memory_space<vmem>>, vector<8x256xf32>
    tpu.vector_store %arg15[%c120_193, %c0_194], %387 {strides = array<i32>} : memref<360x256xf32, #tpu.memory_space<vmem>>, vector<8x256xf32>,
    %c240_i32_195 = arith.constant 240 : i32
    %389 = tpu.dynamic_rotate %354 by %c240_i32_195 dim 1 : vector<8x256xf32>, i32 -> vector<8x256xf32>
    %390 = vector.extract_strided_slice %0 {offsets = [7, 0], sizes = [1, 256], strides = [1, 1]} : vector<9x256xf32> to vector<1x256xf32>
    %391 = vector.broadcast %390 : vector<1x256xf32> to vector<8x256xf32>
    %392 = arith.mulf %389, %391 : vector<8x256xf32>
    %c128_196 = arith.constant 128 : index
    %c0_197 = arith.constant 0 : index
    %393 = vector.load %arg15[%c128_196, %c0_197] : memref<360x256xf32, #tpu.memory_space<vmem>>, vector<8x256xf32>
    tpu.vector_store %arg15[%c128_196, %c0_197], %392 {strides = array<i32>} : memref<360x256xf32, #tpu.memory_space<vmem>>, vector<8x256xf32>,
    %c239_i32_198 = arith.constant 239 : i32
    %394 = tpu.dynamic_rotate %354 by %c239_i32_198 dim 1 : vector<8x256xf32>, i32 -> vector<8x256xf32>
    %395 = vector.extract_strided_slice %0 {offsets = [8, 0], sizes = [1, 256], strides = [1, 1]} : vector<9x256xf32> to vector<1x256xf32>
    %396 = vector.broadcast %395 : vector<1x256xf32> to vector<8x256xf32>
    %397 = arith.mulf %394, %396 : vector<8x256xf32>
    %c136_199 = arith.constant 136 : index
    %c0_200 = arith.constant 0 : index
    %398 = vector.load %arg15[%c136_199, %c0_200] : memref<360x256xf32, #tpu.memory_space<vmem>>, vector<8x256xf32>
    tpu.vector_store %arg15[%c136_199, %c0_200], %397 {strides = array<i32>} : memref<360x256xf32, #tpu.memory_space<vmem>>, vector<8x256xf32>,
    %c1_201 = arith.constant 1 : index
    %c0_202 = arith.constant 0 : index
    %c0_203 = arith.constant 0 : index
    %399 = vector.load %arg5[%c1_201, %c0_202, %c0_203] : memref<3x8x144xbf16, #tpu.memory_space<vmem>>, vector<1x8x144xbf16>
    %400 = vector.shape_cast %399 : vector<1x8x144xbf16> to vector<8x144xbf16>
    %c0_204 = arith.constant 0 : index
    %c0_205 = arith.constant 0 : index
    %401 = vector.load %arg15[%c0_204, %c0_205] : memref<360x256xf32, #tpu.memory_space<vmem>>, vector<144x256xf32>
    %402 = arith.truncf %401 : vector<144x256xf32> to vector<144x256xbf16>
    %cst_206 = arith.constant dense<0.000000e+00> : vector<8x256xf32>
    %403 = tpu.matmul %400, %402, %cst_206 {dimension_numbers = #tpu.dot_dimension_numbers<[1], [0], [0], [1], [0, 0, 1, 1], [], []>} : vector<8x144xbf16>, vector<144x256xbf16>, vector<8x256xf32> -> vector<8x256xf32>
    %c1_207 = arith.constant 1 : index
    %c0_208 = arith.constant 0 : index
    %c0_209 = arith.constant 0 : index
    %404 = vector.load %arg6[%c1_207, %c0_208, %c0_209] : memref<3x8x1xf32, #tpu.memory_space<vmem>>, vector<1x8x1xf32>
    %405 = vector.shape_cast %404 : vector<1x8x1xf32> to vector<8x1xf32>
    %406 = vector.broadcast %405 : vector<8x1xf32> to vector<8x256xf32>
    %407 = arith.addf %403, %406 : vector<8x256xf32>
    %cst_210 = arith.constant 0.000000e+00 : f32
    %408 = vector.broadcast %cst_210 : f32 to vector<8x256xf32>
    %409 = arith.cmpf oge, %407, %408 : vector<8x256xf32>
    %cst_211 = arith.constant 2.000000e-01 : f32
    %410 = vector.broadcast %cst_211 : f32 to vector<8x256xf32>
    %411 = arith.mulf %410, %407 : vector<8x256xf32>
    %412 = arith.select %409, %407, %411 : vector<8x256xi1>, vector<8x256xf32>
    %c1_212 = arith.constant 1 : index
    %c0_213 = arith.constant 0 : index
    %c0_214 = arith.constant 0 : index
    %413 = vector.load %arg13[%c1_212, %c0_213, %c0_214] : memref<3x8x8xbf16, #tpu.memory_space<vmem>>, vector<1x8x8xbf16>
    %414 = vector.shape_cast %413 : vector<1x8x8xbf16> to vector<8x8xbf16>
    %415 = arith.truncf %296 : vector<8x256xf32> to vector<8x256xbf16>
    %cst_215 = arith.constant dense<0.000000e+00> : vector<8x256xf32>
    %416 = tpu.matmul %414, %415, %cst_215 {dimension_numbers = #tpu.dot_dimension_numbers<[1], [0], [0], [1], [0, 0, 1, 1], [], []>} : vector<8x8xbf16>, vector<8x256xbf16>, vector<8x256xf32> -> vector<8x256xf32>
    %417 = arith.addf %412, %416 : vector<8x256xf32>
    %c17_i32_216 = arith.constant 17 : i32
    %418 = tpu.dynamic_rotate %417 by %c17_i32_216 dim 1 : vector<8x256xf32>, i32 -> vector<8x256xf32>
    %419 = vector.extract_strided_slice %0 {offsets = [0, 0], sizes = [1, 256], strides = [1, 1]} : vector<9x256xf32> to vector<1x256xf32>
    %420 = vector.broadcast %419 : vector<1x256xf32> to vector<8x256xf32>
    %421 = arith.mulf %418, %420 : vector<8x256xf32>
    %c144_217 = arith.constant 144 : index
    %c0_218 = arith.constant 0 : index
    %422 = vector.load %arg15[%c144_217, %c0_218] : memref<360x256xf32, #tpu.memory_space<vmem>>, vector<8x256xf32>
    tpu.vector_store %arg15[%c144_217, %c0_218], %421 {strides = array<i32>} : memref<360x256xf32, #tpu.memory_space<vmem>>, vector<8x256xf32>,
    %c16_i32_219 = arith.constant 16 : i32
    %423 = tpu.dynamic_rotate %417 by %c16_i32_219 dim 1 : vector<8x256xf32>, i32 -> vector<8x256xf32>
    %424 = vector.extract_strided_slice %0 {offsets = [1, 0], sizes = [1, 256], strides = [1, 1]} : vector<9x256xf32> to vector<1x256xf32>
    %425 = vector.broadcast %424 : vector<1x256xf32> to vector<8x256xf32>
    %426 = arith.mulf %423, %425 : vector<8x256xf32>
    %c152_220 = arith.constant 152 : index
    %c0_221 = arith.constant 0 : index
    %427 = vector.load %arg15[%c152_220, %c0_221] : memref<360x256xf32, #tpu.memory_space<vmem>>, vector<8x256xf32>
    tpu.vector_store %arg15[%c152_220, %c0_221], %426 {strides = array<i32>} : memref<360x256xf32, #tpu.memory_space<vmem>>, vector<8x256xf32>,
    %c15_i32_222 = arith.constant 15 : i32
    %428 = tpu.dynamic_rotate %417 by %c15_i32_222 dim 1 : vector<8x256xf32>, i32 -> vector<8x256xf32>
    %429 = vector.extract_strided_slice %0 {offsets = [2, 0], sizes = [1, 256], strides = [1, 1]} : vector<9x256xf32> to vector<1x256xf32>
    %430 = vector.broadcast %429 : vector<1x256xf32> to vector<8x256xf32>
    %431 = arith.mulf %428, %430 : vector<8x256xf32>
    %c160_223 = arith.constant 160 : index
    %c0_224 = arith.constant 0 : index
    %432 = vector.load %arg15[%c160_223, %c0_224] : memref<360x256xf32, #tpu.memory_space<vmem>>, vector<8x256xf32>
    tpu.vector_store %arg15[%c160_223, %c0_224], %431 {strides = array<i32>} : memref<360x256xf32, #tpu.memory_space<vmem>>, vector<8x256xf32>,
    %c1_i32_225 = arith.constant 1 : i32
    %433 = tpu.dynamic_rotate %417 by %c1_i32_225 dim 1 : vector<8x256xf32>, i32 -> vector<8x256xf32>
    %434 = vector.extract_strided_slice %0 {offsets = [3, 0], sizes = [1, 256], strides = [1, 1]} : vector<9x256xf32> to vector<1x256xf32>
    %435 = vector.broadcast %434 : vector<1x256xf32> to vector<8x256xf32>
    %436 = arith.mulf %433, %435 : vector<8x256xf32>
    %c168_226 = arith.constant 168 : index
    %c0_227 = arith.constant 0 : index
    %437 = vector.load %arg15[%c168_226, %c0_227] : memref<360x256xf32, #tpu.memory_space<vmem>>, vector<8x256xf32>
    tpu.vector_store %arg15[%c168_226, %c0_227], %436 {strides = array<i32>} : memref<360x256xf32, #tpu.memory_space<vmem>>, vector<8x256xf32>,
    %438 = vector.extract_strided_slice %0 {offsets = [4, 0], sizes = [1, 256], strides = [1, 1]} : vector<9x256xf32> to vector<1x256xf32>
    %439 = vector.broadcast %438 : vector<1x256xf32> to vector<8x256xf32>
    %440 = arith.mulf %417, %439 : vector<8x256xf32>
    %c176_228 = arith.constant 176 : index
    %c0_229 = arith.constant 0 : index
    %441 = vector.load %arg15[%c176_228, %c0_229] : memref<360x256xf32, #tpu.memory_space<vmem>>, vector<8x256xf32>
    tpu.vector_store %arg15[%c176_228, %c0_229], %440 {strides = array<i32>} : memref<360x256xf32, #tpu.memory_space<vmem>>, vector<8x256xf32>,
    %c255_i32_230 = arith.constant 255 : i32
    %442 = tpu.dynamic_rotate %417 by %c255_i32_230 dim 1 : vector<8x256xf32>, i32 -> vector<8x256xf32>
    %443 = vector.extract_strided_slice %0 {offsets = [5, 0], sizes = [1, 256], strides = [1, 1]} : vector<9x256xf32> to vector<1x256xf32>
    %444 = vector.broadcast %443 : vector<1x256xf32> to vector<8x256xf32>
    %445 = arith.mulf %442, %444 : vector<8x256xf32>
    %c184_231 = arith.constant 184 : index
    %c0_232 = arith.constant 0 : index
    %446 = vector.load %arg15[%c184_231, %c0_232] : memref<360x256xf32, #tpu.memory_space<vmem>>, vector<8x256xf32>
    tpu.vector_store %arg15[%c184_231, %c0_232], %445 {strides = array<i32>} : memref<360x256xf32, #tpu.memory_space<vmem>>, vector<8x256xf32>,
    %c241_i32_233 = arith.constant 241 : i32
    %447 = tpu.dynamic_rotate %417 by %c241_i32_233 dim 1 : vector<8x256xf32>, i32 -> vector<8x256xf32>
    %448 = vector.extract_strided_slice %0 {offsets = [6, 0], sizes = [1, 256], strides = [1, 1]} : vector<9x256xf32> to vector<1x256xf32>
    %449 = vector.broadcast %448 : vector<1x256xf32> to vector<8x256xf32>
    %450 = arith.mulf %447, %449 : vector<8x256xf32>
    %c192_234 = arith.constant 192 : index
    %c0_235 = arith.constant 0 : index
    %451 = vector.load %arg15[%c192_234, %c0_235] : memref<360x256xf32, #tpu.memory_space<vmem>>, vector<8x256xf32>
    tpu.vector_store %arg15[%c192_234, %c0_235], %450 {strides = array<i32>} : memref<360x256xf32, #tpu.memory_space<vmem>>, vector<8x256xf32>,
    %c240_i32_236 = arith.constant 240 : i32
    %452 = tpu.dynamic_rotate %417 by %c240_i32_236 dim 1 : vector<8x256xf32>, i32 -> vector<8x256xf32>
    %453 = vector.extract_strided_slice %0 {offsets = [7, 0], sizes = [1, 256], strides = [1, 1]} : vector<9x256xf32> to vector<1x256xf32>
    %454 = vector.broadcast %453 : vector<1x256xf32> to vector<8x256xf32>
    %455 = arith.mulf %452, %454 : vector<8x256xf32>
    %c200_237 = arith.constant 200 : index
    %c0_238 = arith.constant 0 : index
    %456 = vector.load %arg15[%c200_237, %c0_238] : memref<360x256xf32, #tpu.memory_space<vmem>>, vector<8x256xf32>
    tpu.vector_store %arg15[%c200_237, %c0_238], %455 {strides = array<i32>} : memref<360x256xf32, #tpu.memory_space<vmem>>, vector<8x256xf32>,
    %c239_i32_239 = arith.constant 239 : i32
    %457 = tpu.dynamic_rotate %417 by %c239_i32_239 dim 1 : vector<8x256xf32>, i32 -> vector<8x256xf32>
    %458 = vector.extract_strided_slice %0 {offsets = [8, 0], sizes = [1, 256], strides = [1, 1]} : vector<9x256xf32> to vector<1x256xf32>
    %459 = vector.broadcast %458 : vector<1x256xf32> to vector<8x256xf32>
    %460 = arith.mulf %457, %459 : vector<8x256xf32>
    %c208_240 = arith.constant 208 : index
    %c0_241 = arith.constant 0 : index
    %461 = vector.load %arg15[%c208_240, %c0_241] : memref<360x256xf32, #tpu.memory_space<vmem>>, vector<8x256xf32>
    tpu.vector_store %arg15[%c208_240, %c0_241], %460 {strides = array<i32>} : memref<360x256xf32, #tpu.memory_space<vmem>>, vector<8x256xf32>,
    %c1_242 = arith.constant 1 : index
    %c0_243 = arith.constant 0 : index
    %c0_244 = arith.constant 0 : index
    %462 = vector.load %arg7[%c1_242, %c0_243, %c0_244] : memref<3x8x216xbf16, #tpu.memory_space<vmem>>, vector<1x8x216xbf16>
    %463 = vector.shape_cast %462 : vector<1x8x216xbf16> to vector<8x216xbf16>
    %c0_245 = arith.constant 0 : index
    %c0_246 = arith.constant 0 : index
    %464 = vector.load %arg15[%c0_245, %c0_246] : memref<360x256xf32, #tpu.memory_space<vmem>>, vector<216x256xf32>
    %465 = arith.truncf %464 : vector<216x256xf32> to vector<216x256xbf16>
    %cst_247 = arith.constant dense<0.000000e+00> : vector<8x256xf32>
    %466 = tpu.matmul %463, %465, %cst_247 {dimension_numbers = #tpu.dot_dimension_numbers<[1], [0], [0], [1], [0, 0, 1, 1], [], []>} : vector<8x216xbf16>, vector<216x256xbf16>, vector<8x256xf32> -> vector<8x256xf32>
    %c1_248 = arith.constant 1 : index
    %c0_249 = arith.constant 0 : index
    %c0_250 = arith.constant 0 : index
    %467 = vector.load %arg8[%c1_248, %c0_249, %c0_250] : memref<3x8x1xf32, #tpu.memory_space<vmem>>, vector<1x8x1xf32>
    %468 = vector.shape_cast %467 : vector<1x8x1xf32> to vector<8x1xf32>
    %469 = vector.broadcast %468 : vector<8x1xf32> to vector<8x256xf32>
    %470 = arith.addf %466, %469 : vector<8x256xf32>
    %cst_251 = arith.constant 0.000000e+00 : f32
    %471 = vector.broadcast %cst_251 : f32 to vector<8x256xf32>
    %472 = arith.cmpf oge, %470, %471 : vector<8x256xf32>
    %cst_252 = arith.constant 2.000000e-01 : f32
    %473 = vector.broadcast %cst_252 : f32 to vector<8x256xf32>
    %474 = arith.mulf %473, %470 : vector<8x256xf32>
    %475 = arith.select %472, %470, %474 : vector<8x256xi1>, vector<8x256xf32>
    %c17_i32_253 = arith.constant 17 : i32
    %476 = tpu.dynamic_rotate %475 by %c17_i32_253 dim 1 : vector<8x256xf32>, i32 -> vector<8x256xf32>
    %477 = vector.extract_strided_slice %0 {offsets = [0, 0], sizes = [1, 256], strides = [1, 1]} : vector<9x256xf32> to vector<1x256xf32>
    %478 = vector.broadcast %477 : vector<1x256xf32> to vector<8x256xf32>
    %479 = arith.mulf %476, %478 : vector<8x256xf32>
    %c216_254 = arith.constant 216 : index
    %c0_255 = arith.constant 0 : index
    %480 = vector.load %arg15[%c216_254, %c0_255] : memref<360x256xf32, #tpu.memory_space<vmem>>, vector<8x256xf32>
    tpu.vector_store %arg15[%c216_254, %c0_255], %479 {strides = array<i32>} : memref<360x256xf32, #tpu.memory_space<vmem>>, vector<8x256xf32>,
    %c16_i32_256 = arith.constant 16 : i32
    %481 = tpu.dynamic_rotate %475 by %c16_i32_256 dim 1 : vector<8x256xf32>, i32 -> vector<8x256xf32>
    %482 = vector.extract_strided_slice %0 {offsets = [1, 0], sizes = [1, 256], strides = [1, 1]} : vector<9x256xf32> to vector<1x256xf32>
    %483 = vector.broadcast %482 : vector<1x256xf32> to vector<8x256xf32>
    %484 = arith.mulf %481, %483 : vector<8x256xf32>
    %c224_257 = arith.constant 224 : index
    %c0_258 = arith.constant 0 : index
    %485 = vector.load %arg15[%c224_257, %c0_258] : memref<360x256xf32, #tpu.memory_space<vmem>>, vector<8x256xf32>
    tpu.vector_store %arg15[%c224_257, %c0_258], %484 {strides = array<i32>} : memref<360x256xf32, #tpu.memory_space<vmem>>, vector<8x256xf32>,
    %c15_i32_259 = arith.constant 15 : i32
    %486 = tpu.dynamic_rotate %475 by %c15_i32_259 dim 1 : vector<8x256xf32>, i32 -> vector<8x256xf32>
    %487 = vector.extract_strided_slice %0 {offsets = [2, 0], sizes = [1, 256], strides = [1, 1]} : vector<9x256xf32> to vector<1x256xf32>
    %488 = vector.broadcast %487 : vector<1x256xf32> to vector<8x256xf32>
    %489 = arith.mulf %486, %488 : vector<8x256xf32>
    %c232_260 = arith.constant 232 : index
    %c0_261 = arith.constant 0 : index
    %490 = vector.load %arg15[%c232_260, %c0_261] : memref<360x256xf32, #tpu.memory_space<vmem>>, vector<8x256xf32>
    tpu.vector_store %arg15[%c232_260, %c0_261], %489 {strides = array<i32>} : memref<360x256xf32, #tpu.memory_space<vmem>>, vector<8x256xf32>,
    %c1_i32_262 = arith.constant 1 : i32
    %491 = tpu.dynamic_rotate %475 by %c1_i32_262 dim 1 : vector<8x256xf32>, i32 -> vector<8x256xf32>
    %492 = vector.extract_strided_slice %0 {offsets = [3, 0], sizes = [1, 256], strides = [1, 1]} : vector<9x256xf32> to vector<1x256xf32>
    %493 = vector.broadcast %492 : vector<1x256xf32> to vector<8x256xf32>
    %494 = arith.mulf %491, %493 : vector<8x256xf32>
    %c240_263 = arith.constant 240 : index
    %c0_264 = arith.constant 0 : index
    %495 = vector.load %arg15[%c240_263, %c0_264] : memref<360x256xf32, #tpu.memory_space<vmem>>, vector<8x256xf32>
    tpu.vector_store %arg15[%c240_263, %c0_264], %494 {strides = array<i32>} : memref<360x256xf32, #tpu.memory_space<vmem>>, vector<8x256xf32>,
    %496 = vector.extract_strided_slice %0 {offsets = [4, 0], sizes = [1, 256], strides = [1, 1]} : vector<9x256xf32> to vector<1x256xf32>
    %497 = vector.broadcast %496 : vector<1x256xf32> to vector<8x256xf32>
    %498 = arith.mulf %475, %497 : vector<8x256xf32>
    %c248_265 = arith.constant 248 : index
    %c0_266 = arith.constant 0 : index
    %499 = vector.load %arg15[%c248_265, %c0_266] : memref<360x256xf32, #tpu.memory_space<vmem>>, vector<8x256xf32>
    tpu.vector_store %arg15[%c248_265, %c0_266], %498 {strides = array<i32>} : memref<360x256xf32, #tpu.memory_space<vmem>>, vector<8x256xf32>,
    %c255_i32_267 = arith.constant 255 : i32
    %500 = tpu.dynamic_rotate %475 by %c255_i32_267 dim 1 : vector<8x256xf32>, i32 -> vector<8x256xf32>
    %501 = vector.extract_strided_slice %0 {offsets = [5, 0], sizes = [1, 256], strides = [1, 1]} : vector<9x256xf32> to vector<1x256xf32>
    %502 = vector.broadcast %501 : vector<1x256xf32> to vector<8x256xf32>
    %503 = arith.mulf %500, %502 : vector<8x256xf32>
    %c256_268 = arith.constant 256 : index
    %c0_269 = arith.constant 0 : index
    %504 = vector.load %arg15[%c256_268, %c0_269] : memref<360x256xf32, #tpu.memory_space<vmem>>, vector<8x256xf32>
    tpu.vector_store %arg15[%c256_268, %c0_269], %503 {strides = array<i32>} : memref<360x256xf32, #tpu.memory_space<vmem>>, vector<8x256xf32>,
    %c241_i32_270 = arith.constant 241 : i32
    %505 = tpu.dynamic_rotate %475 by %c241_i32_270 dim 1 : vector<8x256xf32>, i32 -> vector<8x256xf32>
    %506 = vector.extract_strided_slice %0 {offsets = [6, 0], sizes = [1, 256], strides = [1, 1]} : vector<9x256xf32> to vector<1x256xf32>
    %507 = vector.broadcast %506 : vector<1x256xf32> to vector<8x256xf32>
    %508 = arith.mulf %505, %507 : vector<8x256xf32>
    %c264_271 = arith.constant 264 : index
    %c0_272 = arith.constant 0 : index
    %509 = vector.load %arg15[%c264_271, %c0_272] : memref<360x256xf32, #tpu.memory_space<vmem>>, vector<8x256xf32>
    tpu.vector_store %arg15[%c264_271, %c0_272], %508 {strides = array<i32>} : memref<360x256xf32, #tpu.memory_space<vmem>>, vector<8x256xf32>,
    %c240_i32_273 = arith.constant 240 : i32
    %510 = tpu.dynamic_rotate %475 by %c240_i32_273 dim 1 : vector<8x256xf32>, i32 -> vector<8x256xf32>
    %511 = vector.extract_strided_slice %0 {offsets = [7, 0], sizes = [1, 256], strides = [1, 1]} : vector<9x256xf32> to vector<1x256xf32>
    %512 = vector.broadcast %511 : vector<1x256xf32> to vector<8x256xf32>
    %513 = arith.mulf %510, %512 : vector<8x256xf32>
    %c272_274 = arith.constant 272 : index
    %c0_275 = arith.constant 0 : index
    %514 = vector.load %arg15[%c272_274, %c0_275] : memref<360x256xf32, #tpu.memory_space<vmem>>, vector<8x256xf32>
    tpu.vector_store %arg15[%c272_274, %c0_275], %513 {strides = array<i32>} : memref<360x256xf32, #tpu.memory_space<vmem>>, vector<8x256xf32>,
    %c239_i32_276 = arith.constant 239 : i32
    %515 = tpu.dynamic_rotate %475 by %c239_i32_276 dim 1 : vector<8x256xf32>, i32 -> vector<8x256xf32>
    %516 = vector.extract_strided_slice %0 {offsets = [8, 0], sizes = [1, 256], strides = [1, 1]} : vector<9x256xf32> to vector<1x256xf32>
    %517 = vector.broadcast %516 : vector<1x256xf32> to vector<8x256xf32>
    %518 = arith.mulf %515, %517 : vector<8x256xf32>
    %c280_277 = arith.constant 280 : index
    %c0_278 = arith.constant 0 : index
    %519 = vector.load %arg15[%c280_277, %c0_278] : memref<360x256xf32, #tpu.memory_space<vmem>>, vector<8x256xf32>
    tpu.vector_store %arg15[%c280_277, %c0_278], %518 {strides = array<i32>} : memref<360x256xf32, #tpu.memory_space<vmem>>, vector<8x256xf32>,
    %c1_279 = arith.constant 1 : index
    %c0_280 = arith.constant 0 : index
    %c0_281 = arith.constant 0 : index
    %520 = vector.load %arg9[%c1_279, %c0_280, %c0_281] : memref<3x8x288xbf16, #tpu.memory_space<vmem>>, vector<1x8x288xbf16>
    %521 = vector.shape_cast %520 : vector<1x8x288xbf16> to vector<8x288xbf16>
    %c0_282 = arith.constant 0 : index
    %c0_283 = arith.constant 0 : index
    %522 = vector.load %arg15[%c0_282, %c0_283] : memref<360x256xf32, #tpu.memory_space<vmem>>, vector<288x256xf32>
    %523 = arith.truncf %522 : vector<288x256xf32> to vector<288x256xbf16>
    %cst_284 = arith.constant dense<0.000000e+00> : vector<8x256xf32>
    %524 = tpu.matmul %521, %523, %cst_284 {dimension_numbers = #tpu.dot_dimension_numbers<[1], [0], [0], [1], [0, 0, 1, 1], [], []>} : vector<8x288xbf16>, vector<288x256xbf16>, vector<8x256xf32> -> vector<8x256xf32>
    %c1_285 = arith.constant 1 : index
    %c0_286 = arith.constant 0 : index
    %c0_287 = arith.constant 0 : index
    %525 = vector.load %arg10[%c1_285, %c0_286, %c0_287] : memref<3x8x1xf32, #tpu.memory_space<vmem>>, vector<1x8x1xf32>
    %526 = vector.shape_cast %525 : vector<1x8x1xf32> to vector<8x1xf32>
    %527 = vector.broadcast %526 : vector<8x1xf32> to vector<8x256xf32>
    %528 = arith.addf %524, %527 : vector<8x256xf32>
    %cst_288 = arith.constant 0.000000e+00 : f32
    %529 = vector.broadcast %cst_288 : f32 to vector<8x256xf32>
    %530 = arith.cmpf oge, %528, %529 : vector<8x256xf32>
    %cst_289 = arith.constant 2.000000e-01 : f32
    %531 = vector.broadcast %cst_289 : f32 to vector<8x256xf32>
    %532 = arith.mulf %531, %528 : vector<8x256xf32>
    %533 = arith.select %530, %528, %532 : vector<8x256xi1>, vector<8x256xf32>
    %534 = arith.addf %533, %417 : vector<8x256xf32>
    %c17_i32_290 = arith.constant 17 : i32
    %535 = tpu.dynamic_rotate %534 by %c17_i32_290 dim 1 : vector<8x256xf32>, i32 -> vector<8x256xf32>
    %536 = vector.extract_strided_slice %0 {offsets = [0, 0], sizes = [1, 256], strides = [1, 1]} : vector<9x256xf32> to vector<1x256xf32>
    %537 = vector.broadcast %536 : vector<1x256xf32> to vector<8x256xf32>
    %538 = arith.mulf %535, %537 : vector<8x256xf32>
    %c288_291 = arith.constant 288 : index
    %c0_292 = arith.constant 0 : index
    %539 = vector.load %arg15[%c288_291, %c0_292] : memref<360x256xf32, #tpu.memory_space<vmem>>, vector<8x256xf32>
    tpu.vector_store %arg15[%c288_291, %c0_292], %538 {strides = array<i32>} : memref<360x256xf32, #tpu.memory_space<vmem>>, vector<8x256xf32>,
    %c16_i32_293 = arith.constant 16 : i32
    %540 = tpu.dynamic_rotate %534 by %c16_i32_293 dim 1 : vector<8x256xf32>, i32 -> vector<8x256xf32>
    %541 = vector.extract_strided_slice %0 {offsets = [1, 0], sizes = [1, 256], strides = [1, 1]} : vector<9x256xf32> to vector<1x256xf32>
    %542 = vector.broadcast %541 : vector<1x256xf32> to vector<8x256xf32>
    %543 = arith.mulf %540, %542 : vector<8x256xf32>
    %c296_294 = arith.constant 296 : index
    %c0_295 = arith.constant 0 : index
    %544 = vector.load %arg15[%c296_294, %c0_295] : memref<360x256xf32, #tpu.memory_space<vmem>>, vector<8x256xf32>
    tpu.vector_store %arg15[%c296_294, %c0_295], %543 {strides = array<i32>} : memref<360x256xf32, #tpu.memory_space<vmem>>, vector<8x256xf32>,
    %c15_i32_296 = arith.constant 15 : i32
    %545 = tpu.dynamic_rotate %534 by %c15_i32_296 dim 1 : vector<8x256xf32>, i32 -> vector<8x256xf32>
    %546 = vector.extract_strided_slice %0 {offsets = [2, 0], sizes = [1, 256], strides = [1, 1]} : vector<9x256xf32> to vector<1x256xf32>
    %547 = vector.broadcast %546 : vector<1x256xf32> to vector<8x256xf32>
    %548 = arith.mulf %545, %547 : vector<8x256xf32>
    %c304_297 = arith.constant 304 : index
    %c0_298 = arith.constant 0 : index
    %549 = vector.load %arg15[%c304_297, %c0_298] : memref<360x256xf32, #tpu.memory_space<vmem>>, vector<8x256xf32>
    tpu.vector_store %arg15[%c304_297, %c0_298], %548 {strides = array<i32>} : memref<360x256xf32, #tpu.memory_space<vmem>>, vector<8x256xf32>,
    %c1_i32_299 = arith.constant 1 : i32
    %550 = tpu.dynamic_rotate %534 by %c1_i32_299 dim 1 : vector<8x256xf32>, i32 -> vector<8x256xf32>
    %551 = vector.extract_strided_slice %0 {offsets = [3, 0], sizes = [1, 256], strides = [1, 1]} : vector<9x256xf32> to vector<1x256xf32>
    %552 = vector.broadcast %551 : vector<1x256xf32> to vector<8x256xf32>
    %553 = arith.mulf %550, %552 : vector<8x256xf32>
    %c312_300 = arith.constant 312 : index
    %c0_301 = arith.constant 0 : index
    %554 = vector.load %arg15[%c312_300, %c0_301] : memref<360x256xf32, #tpu.memory_space<vmem>>, vector<8x256xf32>
    tpu.vector_store %arg15[%c312_300, %c0_301], %553 {strides = array<i32>} : memref<360x256xf32, #tpu.memory_space<vmem>>, vector<8x256xf32>,
    %555 = vector.extract_strided_slice %0 {offsets = [4, 0], sizes = [1, 256], strides = [1, 1]} : vector<9x256xf32> to vector<1x256xf32>
    %556 = vector.broadcast %555 : vector<1x256xf32> to vector<8x256xf32>
    %557 = arith.mulf %534, %556 : vector<8x256xf32>
    %c320_302 = arith.constant 320 : index
    %c0_303 = arith.constant 0 : index
    %558 = vector.load %arg15[%c320_302, %c0_303] : memref<360x256xf32, #tpu.memory_space<vmem>>, vector<8x256xf32>
    tpu.vector_store %arg15[%c320_302, %c0_303], %557 {strides = array<i32>} : memref<360x256xf32, #tpu.memory_space<vmem>>, vector<8x256xf32>,
    %c255_i32_304 = arith.constant 255 : i32
    %559 = tpu.dynamic_rotate %534 by %c255_i32_304 dim 1 : vector<8x256xf32>, i32 -> vector<8x256xf32>
    %560 = vector.extract_strided_slice %0 {offsets = [5, 0], sizes = [1, 256], strides = [1, 1]} : vector<9x256xf32> to vector<1x256xf32>
    %561 = vector.broadcast %560 : vector<1x256xf32> to vector<8x256xf32>
    %562 = arith.mulf %559, %561 : vector<8x256xf32>
    %c328_305 = arith.constant 328 : index
    %c0_306 = arith.constant 0 : index
    %563 = vector.load %arg15[%c328_305, %c0_306] : memref<360x256xf32, #tpu.memory_space<vmem>>, vector<8x256xf32>
    tpu.vector_store %arg15[%c328_305, %c0_306], %562 {strides = array<i32>} : memref<360x256xf32, #tpu.memory_space<vmem>>, vector<8x256xf32>,
    %c241_i32_307 = arith.constant 241 : i32
    %564 = tpu.dynamic_rotate %534 by %c241_i32_307 dim 1 : vector<8x256xf32>, i32 -> vector<8x256xf32>
    %565 = vector.extract_strided_slice %0 {offsets = [6, 0], sizes = [1, 256], strides = [1, 1]} : vector<9x256xf32> to vector<1x256xf32>
    %566 = vector.broadcast %565 : vector<1x256xf32> to vector<8x256xf32>
    %567 = arith.mulf %564, %566 : vector<8x256xf32>
    %c336_308 = arith.constant 336 : index
    %c0_309 = arith.constant 0 : index
    %568 = vector.load %arg15[%c336_308, %c0_309] : memref<360x256xf32, #tpu.memory_space<vmem>>, vector<8x256xf32>
    tpu.vector_store %arg15[%c336_308, %c0_309], %567 {strides = array<i32>} : memref<360x256xf32, #tpu.memory_space<vmem>>, vector<8x256xf32>,
    %c240_i32_310 = arith.constant 240 : i32
    %569 = tpu.dynamic_rotate %534 by %c240_i32_310 dim 1 : vector<8x256xf32>, i32 -> vector<8x256xf32>
    %570 = vector.extract_strided_slice %0 {offsets = [7, 0], sizes = [1, 256], strides = [1, 1]} : vector<9x256xf32> to vector<1x256xf32>
    %571 = vector.broadcast %570 : vector<1x256xf32> to vector<8x256xf32>
    %572 = arith.mulf %569, %571 : vector<8x256xf32>
    %c344_311 = arith.constant 344 : index
    %c0_312 = arith.constant 0 : index
    %573 = vector.load %arg15[%c344_311, %c0_312] : memref<360x256xf32, #tpu.memory_space<vmem>>, vector<8x256xf32>
    tpu.vector_store %arg15[%c344_311, %c0_312], %572 {strides = array<i32>} : memref<360x256xf32, #tpu.memory_space<vmem>>, vector<8x256xf32>,
    %c239_i32_313 = arith.constant 239 : i32
    %574 = tpu.dynamic_rotate %534 by %c239_i32_313 dim 1 : vector<8x256xf32>, i32 -> vector<8x256xf32>
    %575 = vector.extract_strided_slice %0 {offsets = [8, 0], sizes = [1, 256], strides = [1, 1]} : vector<9x256xf32> to vector<1x256xf32>
    %576 = vector.broadcast %575 : vector<1x256xf32> to vector<8x256xf32>
    %577 = arith.mulf %574, %576 : vector<8x256xf32>
    %c352_314 = arith.constant 352 : index
    %c0_315 = arith.constant 0 : index
    %578 = vector.load %arg15[%c352_314, %c0_315] : memref<360x256xf32, #tpu.memory_space<vmem>>, vector<8x256xf32>
    tpu.vector_store %arg15[%c352_314, %c0_315], %577 {strides = array<i32>} : memref<360x256xf32, #tpu.memory_space<vmem>>, vector<8x256xf32>,
    %c1_316 = arith.constant 1 : index
    %c0_317 = arith.constant 0 : index
    %c0_318 = arith.constant 0 : index
    %579 = vector.load %arg11[%c1_316, %c0_317, %c0_318] : memref<3x8x360xbf16, #tpu.memory_space<vmem>>, vector<1x8x360xbf16>
    %580 = vector.shape_cast %579 : vector<1x8x360xbf16> to vector<8x360xbf16>
    %c0_319 = arith.constant 0 : index
    %c0_320 = arith.constant 0 : index
    %581 = vector.load %arg15[%c0_319, %c0_320] : memref<360x256xf32, #tpu.memory_space<vmem>>, vector<360x256xf32>
    %582 = arith.truncf %581 : vector<360x256xf32> to vector<360x256xbf16>
    %cst_321 = arith.constant dense<0.000000e+00> : vector<8x256xf32>
    %583 = tpu.matmul %580, %582, %cst_321 {dimension_numbers = #tpu.dot_dimension_numbers<[1], [0], [0], [1], [0, 0, 1, 1], [], []>} : vector<8x360xbf16>, vector<360x256xbf16>, vector<8x256xf32> -> vector<8x256xf32>
    %c1_322 = arith.constant 1 : index
    %c0_323 = arith.constant 0 : index
    %c0_324 = arith.constant 0 : index
    %584 = vector.load %arg12[%c1_322, %c0_323, %c0_324] : memref<3x8x1xf32, #tpu.memory_space<vmem>>, vector<1x8x1xf32>
    %585 = vector.shape_cast %584 : vector<1x8x1xf32> to vector<8x1xf32>
    %586 = vector.broadcast %585 : vector<8x1xf32> to vector<8x256xf32>
    %587 = arith.addf %583, %586 : vector<8x256xf32>
    %cst_325 = arith.constant 2.000000e-01 : f32
    %588 = vector.broadcast %cst_325 : f32 to vector<8x256xf32>
    %589 = arith.mulf %587, %588 : vector<8x256xf32>
    %590 = arith.addf %589, %296 : vector<8x256xf32>
    %c17_i32_326 = arith.constant 17 : i32
    %591 = tpu.dynamic_rotate %590 by %c17_i32_326 dim 1 : vector<8x256xf32>, i32 -> vector<8x256xf32>
    %592 = vector.extract_strided_slice %0 {offsets = [0, 0], sizes = [1, 256], strides = [1, 1]} : vector<9x256xf32> to vector<1x256xf32>
    %593 = vector.broadcast %592 : vector<1x256xf32> to vector<8x256xf32>
    %594 = arith.mulf %591, %593 : vector<8x256xf32>
    %c0_327 = arith.constant 0 : index
    %c0_328 = arith.constant 0 : index
    %595 = vector.load %arg15[%c0_327, %c0_328] : memref<360x256xf32, #tpu.memory_space<vmem>>, vector<8x256xf32>
    tpu.vector_store %arg15[%c0_327, %c0_328], %594 {strides = array<i32>} : memref<360x256xf32, #tpu.memory_space<vmem>>, vector<8x256xf32>,
    %c16_i32_329 = arith.constant 16 : i32
    %596 = tpu.dynamic_rotate %590 by %c16_i32_329 dim 1 : vector<8x256xf32>, i32 -> vector<8x256xf32>
    %597 = vector.extract_strided_slice %0 {offsets = [1, 0], sizes = [1, 256], strides = [1, 1]} : vector<9x256xf32> to vector<1x256xf32>
    %598 = vector.broadcast %597 : vector<1x256xf32> to vector<8x256xf32>
    %599 = arith.mulf %596, %598 : vector<8x256xf32>
    %c8_330 = arith.constant 8 : index
    %c0_331 = arith.constant 0 : index
    %600 = vector.load %arg15[%c8_330, %c0_331] : memref<360x256xf32, #tpu.memory_space<vmem>>, vector<8x256xf32>
    tpu.vector_store %arg15[%c8_330, %c0_331], %599 {strides = array<i32>} : memref<360x256xf32, #tpu.memory_space<vmem>>, vector<8x256xf32>,
    %c15_i32_332 = arith.constant 15 : i32
    %601 = tpu.dynamic_rotate %590 by %c15_i32_332 dim 1 : vector<8x256xf32>, i32 -> vector<8x256xf32>
    %602 = vector.extract_strided_slice %0 {offsets = [2, 0], sizes = [1, 256], strides = [1, 1]} : vector<9x256xf32> to vector<1x256xf32>
    %603 = vector.broadcast %602 : vector<1x256xf32> to vector<8x256xf32>
    %604 = arith.mulf %601, %603 : vector<8x256xf32>
    %c16_333 = arith.constant 16 : index
    %c0_334 = arith.constant 0 : index
    %605 = vector.load %arg15[%c16_333, %c0_334] : memref<360x256xf32, #tpu.memory_space<vmem>>, vector<8x256xf32>
    tpu.vector_store %arg15[%c16_333, %c0_334], %604 {strides = array<i32>} : memref<360x256xf32, #tpu.memory_space<vmem>>, vector<8x256xf32>,
    %c1_i32_335 = arith.constant 1 : i32
    %606 = tpu.dynamic_rotate %590 by %c1_i32_335 dim 1 : vector<8x256xf32>, i32 -> vector<8x256xf32>
    %607 = vector.extract_strided_slice %0 {offsets = [3, 0], sizes = [1, 256], strides = [1, 1]} : vector<9x256xf32> to vector<1x256xf32>
    %608 = vector.broadcast %607 : vector<1x256xf32> to vector<8x256xf32>
    %609 = arith.mulf %606, %608 : vector<8x256xf32>
    %c24_336 = arith.constant 24 : index
    %c0_337 = arith.constant 0 : index
    %610 = vector.load %arg15[%c24_336, %c0_337] : memref<360x256xf32, #tpu.memory_space<vmem>>, vector<8x256xf32>
    tpu.vector_store %arg15[%c24_336, %c0_337], %609 {strides = array<i32>} : memref<360x256xf32, #tpu.memory_space<vmem>>, vector<8x256xf32>,
    %611 = vector.extract_strided_slice %0 {offsets = [4, 0], sizes = [1, 256], strides = [1, 1]} : vector<9x256xf32> to vector<1x256xf32>
    %612 = vector.broadcast %611 : vector<1x256xf32> to vector<8x256xf32>
    %613 = arith.mulf %590, %612 : vector<8x256xf32>
    %c32_338 = arith.constant 32 : index
    %c0_339 = arith.constant 0 : index
    %614 = vector.load %arg15[%c32_338, %c0_339] : memref<360x256xf32, #tpu.memory_space<vmem>>, vector<8x256xf32>
    tpu.vector_store %arg15[%c32_338, %c0_339], %613 {strides = array<i32>} : memref<360x256xf32, #tpu.memory_space<vmem>>, vector<8x256xf32>,
    %c255_i32_340 = arith.constant 255 : i32
    %615 = tpu.dynamic_rotate %590 by %c255_i32_340 dim 1 : vector<8x256xf32>, i32 -> vector<8x256xf32>
    %616 = vector.extract_strided_slice %0 {offsets = [5, 0], sizes = [1, 256], strides = [1, 1]} : vector<9x256xf32> to vector<1x256xf32>
    %617 = vector.broadcast %616 : vector<1x256xf32> to vector<8x256xf32>
    %618 = arith.mulf %615, %617 : vector<8x256xf32>
    %c40_341 = arith.constant 40 : index
    %c0_342 = arith.constant 0 : index
    %619 = vector.load %arg15[%c40_341, %c0_342] : memref<360x256xf32, #tpu.memory_space<vmem>>, vector<8x256xf32>
    tpu.vector_store %arg15[%c40_341, %c0_342], %618 {strides = array<i32>} : memref<360x256xf32, #tpu.memory_space<vmem>>, vector<8x256xf32>,
    %c241_i32_343 = arith.constant 241 : i32
    %620 = tpu.dynamic_rotate %590 by %c241_i32_343 dim 1 : vector<8x256xf32>, i32 -> vector<8x256xf32>
    %621 = vector.extract_strided_slice %0 {offsets = [6, 0], sizes = [1, 256], strides = [1, 1]} : vector<9x256xf32> to vector<1x256xf32>
    %622 = vector.broadcast %621 : vector<1x256xf32> to vector<8x256xf32>
    %623 = arith.mulf %620, %622 : vector<8x256xf32>
    %c48_344 = arith.constant 48 : index
    %c0_345 = arith.constant 0 : index
    %624 = vector.load %arg15[%c48_344, %c0_345] : memref<360x256xf32, #tpu.memory_space<vmem>>, vector<8x256xf32>
    tpu.vector_store %arg15[%c48_344, %c0_345], %623 {strides = array<i32>} : memref<360x256xf32, #tpu.memory_space<vmem>>, vector<8x256xf32>,
    %c240_i32_346 = arith.constant 240 : i32
    %625 = tpu.dynamic_rotate %590 by %c240_i32_346 dim 1 : vector<8x256xf32>, i32 -> vector<8x256xf32>
    %626 = vector.extract_strided_slice %0 {offsets = [7, 0], sizes = [1, 256], strides = [1, 1]} : vector<9x256xf32> to vector<1x256xf32>
    %627 = vector.broadcast %626 : vector<1x256xf32> to vector<8x256xf32>
    %628 = arith.mulf %625, %627 : vector<8x256xf32>
    %c56_347 = arith.constant 56 : index
    %c0_348 = arith.constant 0 : index
    %629 = vector.load %arg15[%c56_347, %c0_348] : memref<360x256xf32, #tpu.memory_space<vmem>>, vector<8x256xf32>
    tpu.vector_store %arg15[%c56_347, %c0_348], %628 {strides = array<i32>} : memref<360x256xf32, #tpu.memory_space<vmem>>, vector<8x256xf32>,
    %c239_i32_349 = arith.constant 239 : i32
    %630 = tpu.dynamic_rotate %590 by %c239_i32_349 dim 1 : vector<8x256xf32>, i32 -> vector<8x256xf32>
    %631 = vector.extract_strided_slice %0 {offsets = [8, 0], sizes = [1, 256], strides = [1, 1]} : vector<9x256xf32> to vector<1x256xf32>
    %632 = vector.broadcast %631 : vector<1x256xf32> to vector<8x256xf32>
    %633 = arith.mulf %630, %632 : vector<8x256xf32>
    %c64_350 = arith.constant 64 : index
    %c0_351 = arith.constant 0 : index
    %634 = vector.load %arg15[%c64_350, %c0_351] : memref<360x256xf32, #tpu.memory_space<vmem>>, vector<8x256xf32>
    tpu.vector_store %arg15[%c64_350, %c0_351], %633 {strides = array<i32>} : memref<360x256xf32, #tpu.memory_space<vmem>>, vector<8x256xf32>,
    %c2 = arith.constant 2 : index
    %c0_352 = arith.constant 0 : index
    %c0_353 = arith.constant 0 : index
    %635 = vector.load %arg3[%c2, %c0_352, %c0_353] : memref<3x8x72xbf16, #tpu.memory_space<vmem>>, vector<1x8x72xbf16>
    %636 = vector.shape_cast %635 : vector<1x8x72xbf16> to vector<8x72xbf16>
    %c0_354 = arith.constant 0 : index
    %c0_355 = arith.constant 0 : index
    %637 = vector.load %arg15[%c0_354, %c0_355] : memref<360x256xf32, #tpu.memory_space<vmem>>, vector<72x256xf32>
    %638 = arith.truncf %637 : vector<72x256xf32> to vector<72x256xbf16>
    %cst_356 = arith.constant dense<0.000000e+00> : vector<8x256xf32>
    %639 = tpu.matmul %636, %638, %cst_356 {dimension_numbers = #tpu.dot_dimension_numbers<[1], [0], [0], [1], [0, 0, 1, 1], [], []>} : vector<8x72xbf16>, vector<72x256xbf16>, vector<8x256xf32> -> vector<8x256xf32>
    %c2_357 = arith.constant 2 : index
    %c0_358 = arith.constant 0 : index
    %c0_359 = arith.constant 0 : index
    %640 = vector.load %arg4[%c2_357, %c0_358, %c0_359] : memref<3x8x1xf32, #tpu.memory_space<vmem>>, vector<1x8x1xf32>
    %641 = vector.shape_cast %640 : vector<1x8x1xf32> to vector<8x1xf32>
    %642 = vector.broadcast %641 : vector<8x1xf32> to vector<8x256xf32>
    %643 = arith.addf %639, %642 : vector<8x256xf32>
    %cst_360 = arith.constant 0.000000e+00 : f32
    %644 = vector.broadcast %cst_360 : f32 to vector<8x256xf32>
    %645 = arith.cmpf oge, %643, %644 : vector<8x256xf32>
    %cst_361 = arith.constant 2.000000e-01 : f32
    %646 = vector.broadcast %cst_361 : f32 to vector<8x256xf32>
    %647 = arith.mulf %646, %643 : vector<8x256xf32>
    %648 = arith.select %645, %643, %647 : vector<8x256xi1>, vector<8x256xf32>
    %c17_i32_362 = arith.constant 17 : i32
    %649 = tpu.dynamic_rotate %648 by %c17_i32_362 dim 1 : vector<8x256xf32>, i32 -> vector<8x256xf32>
    %650 = vector.extract_strided_slice %0 {offsets = [0, 0], sizes = [1, 256], strides = [1, 1]} : vector<9x256xf32> to vector<1x256xf32>
    %651 = vector.broadcast %650 : vector<1x256xf32> to vector<8x256xf32>
    %652 = arith.mulf %649, %651 : vector<8x256xf32>
    %c72_363 = arith.constant 72 : index
    %c0_364 = arith.constant 0 : index
    %653 = vector.load %arg15[%c72_363, %c0_364] : memref<360x256xf32, #tpu.memory_space<vmem>>, vector<8x256xf32>
    tpu.vector_store %arg15[%c72_363, %c0_364], %652 {strides = array<i32>} : memref<360x256xf32, #tpu.memory_space<vmem>>, vector<8x256xf32>,
    %c16_i32_365 = arith.constant 16 : i32
    %654 = tpu.dynamic_rotate %648 by %c16_i32_365 dim 1 : vector<8x256xf32>, i32 -> vector<8x256xf32>
    %655 = vector.extract_strided_slice %0 {offsets = [1, 0], sizes = [1, 256], strides = [1, 1]} : vector<9x256xf32> to vector<1x256xf32>
    %656 = vector.broadcast %655 : vector<1x256xf32> to vector<8x256xf32>
    %657 = arith.mulf %654, %656 : vector<8x256xf32>
    %c80_366 = arith.constant 80 : index
    %c0_367 = arith.constant 0 : index
    %658 = vector.load %arg15[%c80_366, %c0_367] : memref<360x256xf32, #tpu.memory_space<vmem>>, vector<8x256xf32>
    tpu.vector_store %arg15[%c80_366, %c0_367], %657 {strides = array<i32>} : memref<360x256xf32, #tpu.memory_space<vmem>>, vector<8x256xf32>,
    %c15_i32_368 = arith.constant 15 : i32
    %659 = tpu.dynamic_rotate %648 by %c15_i32_368 dim 1 : vector<8x256xf32>, i32 -> vector<8x256xf32>
    %660 = vector.extract_strided_slice %0 {offsets = [2, 0], sizes = [1, 256], strides = [1, 1]} : vector<9x256xf32> to vector<1x256xf32>
    %661 = vector.broadcast %660 : vector<1x256xf32> to vector<8x256xf32>
    %662 = arith.mulf %659, %661 : vector<8x256xf32>
    %c88_369 = arith.constant 88 : index
    %c0_370 = arith.constant 0 : index
    %663 = vector.load %arg15[%c88_369, %c0_370] : memref<360x256xf32, #tpu.memory_space<vmem>>, vector<8x256xf32>
    tpu.vector_store %arg15[%c88_369, %c0_370], %662 {strides = array<i32>} : memref<360x256xf32, #tpu.memory_space<vmem>>, vector<8x256xf32>,
    %c1_i32_371 = arith.constant 1 : i32
    %664 = tpu.dynamic_rotate %648 by %c1_i32_371 dim 1 : vector<8x256xf32>, i32 -> vector<8x256xf32>
    %665 = vector.extract_strided_slice %0 {offsets = [3, 0], sizes = [1, 256], strides = [1, 1]} : vector<9x256xf32> to vector<1x256xf32>
    %666 = vector.broadcast %665 : vector<1x256xf32> to vector<8x256xf32>
    %667 = arith.mulf %664, %666 : vector<8x256xf32>
    %c96_372 = arith.constant 96 : index
    %c0_373 = arith.constant 0 : index
    %668 = vector.load %arg15[%c96_372, %c0_373] : memref<360x256xf32, #tpu.memory_space<vmem>>, vector<8x256xf32>
    tpu.vector_store %arg15[%c96_372, %c0_373], %667 {strides = array<i32>} : memref<360x256xf32, #tpu.memory_space<vmem>>, vector<8x256xf32>,
    %669 = vector.extract_strided_slice %0 {offsets = [4, 0], sizes = [1, 256], strides = [1, 1]} : vector<9x256xf32> to vector<1x256xf32>
    %670 = vector.broadcast %669 : vector<1x256xf32> to vector<8x256xf32>
    %671 = arith.mulf %648, %670 : vector<8x256xf32>
    %c104_374 = arith.constant 104 : index
    %c0_375 = arith.constant 0 : index
    %672 = vector.load %arg15[%c104_374, %c0_375] : memref<360x256xf32, #tpu.memory_space<vmem>>, vector<8x256xf32>
    tpu.vector_store %arg15[%c104_374, %c0_375], %671 {strides = array<i32>} : memref<360x256xf32, #tpu.memory_space<vmem>>, vector<8x256xf32>,
    %c255_i32_376 = arith.constant 255 : i32
    %673 = tpu.dynamic_rotate %648 by %c255_i32_376 dim 1 : vector<8x256xf32>, i32 -> vector<8x256xf32>
    %674 = vector.extract_strided_slice %0 {offsets = [5, 0], sizes = [1, 256], strides = [1, 1]} : vector<9x256xf32> to vector<1x256xf32>
    %675 = vector.broadcast %674 : vector<1x256xf32> to vector<8x256xf32>
    %676 = arith.mulf %673, %675 : vector<8x256xf32>
    %c112_377 = arith.constant 112 : index
    %c0_378 = arith.constant 0 : index
    %677 = vector.load %arg15[%c112_377, %c0_378] : memref<360x256xf32, #tpu.memory_space<vmem>>, vector<8x256xf32>
    tpu.vector_store %arg15[%c112_377, %c0_378], %676 {strides = array<i32>} : memref<360x256xf32, #tpu.memory_space<vmem>>, vector<8x256xf32>,
    %c241_i32_379 = arith.constant 241 : i32
    %678 = tpu.dynamic_rotate %648 by %c241_i32_379 dim 1 : vector<8x256xf32>, i32 -> vector<8x256xf32>
    %679 = vector.extract_strided_slice %0 {offsets = [6, 0], sizes = [1, 256], strides = [1, 1]} : vector<9x256xf32> to vector<1x256xf32>
    %680 = vector.broadcast %679 : vector<1x256xf32> to vector<8x256xf32>
    %681 = arith.mulf %678, %680 : vector<8x256xf32>
    %c120_380 = arith.constant 120 : index
    %c0_381 = arith.constant 0 : index
    %682 = vector.load %arg15[%c120_380, %c0_381] : memref<360x256xf32, #tpu.memory_space<vmem>>, vector<8x256xf32>
    tpu.vector_store %arg15[%c120_380, %c0_381], %681 {strides = array<i32>} : memref<360x256xf32, #tpu.memory_space<vmem>>, vector<8x256xf32>,
    %c240_i32_382 = arith.constant 240 : i32
    %683 = tpu.dynamic_rotate %648 by %c240_i32_382 dim 1 : vector<8x256xf32>, i32 -> vector<8x256xf32>
    %684 = vector.extract_strided_slice %0 {offsets = [7, 0], sizes = [1, 256], strides = [1, 1]} : vector<9x256xf32> to vector<1x256xf32>
    %685 = vector.broadcast %684 : vector<1x256xf32> to vector<8x256xf32>
    %686 = arith.mulf %683, %685 : vector<8x256xf32>
    %c128_383 = arith.constant 128 : index
    %c0_384 = arith.constant 0 : index
    %687 = vector.load %arg15[%c128_383, %c0_384] : memref<360x256xf32, #tpu.memory_space<vmem>>, vector<8x256xf32>
    tpu.vector_store %arg15[%c128_383, %c0_384], %686 {strides = array<i32>} : memref<360x256xf32, #tpu.memory_space<vmem>>, vector<8x256xf32>,
    %c239_i32_385 = arith.constant 239 : i32
    %688 = tpu.dynamic_rotate %648 by %c239_i32_385 dim 1 : vector<8x256xf32>, i32 -> vector<8x256xf32>
    %689 = vector.extract_strided_slice %0 {offsets = [8, 0], sizes = [1, 256], strides = [1, 1]} : vector<9x256xf32> to vector<1x256xf32>
    %690 = vector.broadcast %689 : vector<1x256xf32> to vector<8x256xf32>
    %691 = arith.mulf %688, %690 : vector<8x256xf32>
    %c136_386 = arith.constant 136 : index
    %c0_387 = arith.constant 0 : index
    %692 = vector.load %arg15[%c136_386, %c0_387] : memref<360x256xf32, #tpu.memory_space<vmem>>, vector<8x256xf32>
    tpu.vector_store %arg15[%c136_386, %c0_387], %691 {strides = array<i32>} : memref<360x256xf32, #tpu.memory_space<vmem>>, vector<8x256xf32>,
    %c2_388 = arith.constant 2 : index
    %c0_389 = arith.constant 0 : index
    %c0_390 = arith.constant 0 : index
    %693 = vector.load %arg5[%c2_388, %c0_389, %c0_390] : memref<3x8x144xbf16, #tpu.memory_space<vmem>>, vector<1x8x144xbf16>
    %694 = vector.shape_cast %693 : vector<1x8x144xbf16> to vector<8x144xbf16>
    %c0_391 = arith.constant 0 : index
    %c0_392 = arith.constant 0 : index
    %695 = vector.load %arg15[%c0_391, %c0_392] : memref<360x256xf32, #tpu.memory_space<vmem>>, vector<144x256xf32>
    %696 = arith.truncf %695 : vector<144x256xf32> to vector<144x256xbf16>
    %cst_393 = arith.constant dense<0.000000e+00> : vector<8x256xf32>
    %697 = tpu.matmul %694, %696, %cst_393 {dimension_numbers = #tpu.dot_dimension_numbers<[1], [0], [0], [1], [0, 0, 1, 1], [], []>} : vector<8x144xbf16>, vector<144x256xbf16>, vector<8x256xf32> -> vector<8x256xf32>
    %c2_394 = arith.constant 2 : index
    %c0_395 = arith.constant 0 : index
    %c0_396 = arith.constant 0 : index
    %698 = vector.load %arg6[%c2_394, %c0_395, %c0_396] : memref<3x8x1xf32, #tpu.memory_space<vmem>>, vector<1x8x1xf32>
    %699 = vector.shape_cast %698 : vector<1x8x1xf32> to vector<8x1xf32>
    %700 = vector.broadcast %699 : vector<8x1xf32> to vector<8x256xf32>
    %701 = arith.addf %697, %700 : vector<8x256xf32>
    %cst_397 = arith.constant 0.000000e+00 : f32
    %702 = vector.broadcast %cst_397 : f32 to vector<8x256xf32>
    %703 = arith.cmpf oge, %701, %702 : vector<8x256xf32>
    %cst_398 = arith.constant 2.000000e-01 : f32
    %704 = vector.broadcast %cst_398 : f32 to vector<8x256xf32>
    %705 = arith.mulf %704, %701 : vector<8x256xf32>
    %706 = arith.select %703, %701, %705 : vector<8x256xi1>, vector<8x256xf32>
    %c2_399 = arith.constant 2 : index
    %c0_400 = arith.constant 0 : index
    %c0_401 = arith.constant 0 : index
    %707 = vector.load %arg13[%c2_399, %c0_400, %c0_401] : memref<3x8x8xbf16, #tpu.memory_space<vmem>>, vector<1x8x8xbf16>
    %708 = vector.shape_cast %707 : vector<1x8x8xbf16> to vector<8x8xbf16>
    %709 = arith.truncf %590 : vector<8x256xf32> to vector<8x256xbf16>
    %cst_402 = arith.constant dense<0.000000e+00> : vector<8x256xf32>
    %710 = tpu.matmul %708, %709, %cst_402 {dimension_numbers = #tpu.dot_dimension_numbers<[1], [0], [0], [1], [0, 0, 1, 1], [], []>} : vector<8x8xbf16>, vector<8x256xbf16>, vector<8x256xf32> -> vector<8x256xf32>
    %711 = arith.addf %706, %710 : vector<8x256xf32>
    %c17_i32_403 = arith.constant 17 : i32
    %712 = tpu.dynamic_rotate %711 by %c17_i32_403 dim 1 : vector<8x256xf32>, i32 -> vector<8x256xf32>
    %713 = vector.extract_strided_slice %0 {offsets = [0, 0], sizes = [1, 256], strides = [1, 1]} : vector<9x256xf32> to vector<1x256xf32>
    %714 = vector.broadcast %713 : vector<1x256xf32> to vector<8x256xf32>
    %715 = arith.mulf %712, %714 : vector<8x256xf32>
    %c144_404 = arith.constant 144 : index
    %c0_405 = arith.constant 0 : index
    %716 = vector.load %arg15[%c144_404, %c0_405] : memref<360x256xf32, #tpu.memory_space<vmem>>, vector<8x256xf32>
    tpu.vector_store %arg15[%c144_404, %c0_405], %715 {strides = array<i32>} : memref<360x256xf32, #tpu.memory_space<vmem>>, vector<8x256xf32>,
    %c16_i32_406 = arith.constant 16 : i32
    %717 = tpu.dynamic_rotate %711 by %c16_i32_406 dim 1 : vector<8x256xf32>, i32 -> vector<8x256xf32>
    %718 = vector.extract_strided_slice %0 {offsets = [1, 0], sizes = [1, 256], strides = [1, 1]} : vector<9x256xf32> to vector<1x256xf32>
    %719 = vector.broadcast %718 : vector<1x256xf32> to vector<8x256xf32>
    %720 = arith.mulf %717, %719 : vector<8x256xf32>
    %c152_407 = arith.constant 152 : index
    %c0_408 = arith.constant 0 : index
    %721 = vector.load %arg15[%c152_407, %c0_408] : memref<360x256xf32, #tpu.memory_space<vmem>>, vector<8x256xf32>
    tpu.vector_store %arg15[%c152_407, %c0_408], %720 {strides = array<i32>} : memref<360x256xf32, #tpu.memory_space<vmem>>, vector<8x256xf32>,
    %c15_i32_409 = arith.constant 15 : i32
    %722 = tpu.dynamic_rotate %711 by %c15_i32_409 dim 1 : vector<8x256xf32>, i32 -> vector<8x256xf32>
    %723 = vector.extract_strided_slice %0 {offsets = [2, 0], sizes = [1, 256], strides = [1, 1]} : vector<9x256xf32> to vector<1x256xf32>
    %724 = vector.broadcast %723 : vector<1x256xf32> to vector<8x256xf32>
    %725 = arith.mulf %722, %724 : vector<8x256xf32>
    %c160_410 = arith.constant 160 : index
    %c0_411 = arith.constant 0 : index
    %726 = vector.load %arg15[%c160_410, %c0_411] : memref<360x256xf32, #tpu.memory_space<vmem>>, vector<8x256xf32>
    tpu.vector_store %arg15[%c160_410, %c0_411], %725 {strides = array<i32>} : memref<360x256xf32, #tpu.memory_space<vmem>>, vector<8x256xf32>,
    %c1_i32_412 = arith.constant 1 : i32
    %727 = tpu.dynamic_rotate %711 by %c1_i32_412 dim 1 : vector<8x256xf32>, i32 -> vector<8x256xf32>
    %728 = vector.extract_strided_slice %0 {offsets = [3, 0], sizes = [1, 256], strides = [1, 1]} : vector<9x256xf32> to vector<1x256xf32>
    %729 = vector.broadcast %728 : vector<1x256xf32> to vector<8x256xf32>
    %730 = arith.mulf %727, %729 : vector<8x256xf32>
    %c168_413 = arith.constant 168 : index
    %c0_414 = arith.constant 0 : index
    %731 = vector.load %arg15[%c168_413, %c0_414] : memref<360x256xf32, #tpu.memory_space<vmem>>, vector<8x256xf32>
    tpu.vector_store %arg15[%c168_413, %c0_414], %730 {strides = array<i32>} : memref<360x256xf32, #tpu.memory_space<vmem>>, vector<8x256xf32>,
    %732 = vector.extract_strided_slice %0 {offsets = [4, 0], sizes = [1, 256], strides = [1, 1]} : vector<9x256xf32> to vector<1x256xf32>
    %733 = vector.broadcast %732 : vector<1x256xf32> to vector<8x256xf32>
    %734 = arith.mulf %711, %733 : vector<8x256xf32>
    %c176_415 = arith.constant 176 : index
    %c0_416 = arith.constant 0 : index
    %735 = vector.load %arg15[%c176_415, %c0_416] : memref<360x256xf32, #tpu.memory_space<vmem>>, vector<8x256xf32>
    tpu.vector_store %arg15[%c176_415, %c0_416], %734 {strides = array<i32>} : memref<360x256xf32, #tpu.memory_space<vmem>>, vector<8x256xf32>,
    %c255_i32_417 = arith.constant 255 : i32
    %736 = tpu.dynamic_rotate %711 by %c255_i32_417 dim 1 : vector<8x256xf32>, i32 -> vector<8x256xf32>
    %737 = vector.extract_strided_slice %0 {offsets = [5, 0], sizes = [1, 256], strides = [1, 1]} : vector<9x256xf32> to vector<1x256xf32>
    %738 = vector.broadcast %737 : vector<1x256xf32> to vector<8x256xf32>
    %739 = arith.mulf %736, %738 : vector<8x256xf32>
    %c184_418 = arith.constant 184 : index
    %c0_419 = arith.constant 0 : index
    %740 = vector.load %arg15[%c184_418, %c0_419] : memref<360x256xf32, #tpu.memory_space<vmem>>, vector<8x256xf32>
    tpu.vector_store %arg15[%c184_418, %c0_419], %739 {strides = array<i32>} : memref<360x256xf32, #tpu.memory_space<vmem>>, vector<8x256xf32>,
    %c241_i32_420 = arith.constant 241 : i32
    %741 = tpu.dynamic_rotate %711 by %c241_i32_420 dim 1 : vector<8x256xf32>, i32 -> vector<8x256xf32>
    %742 = vector.extract_strided_slice %0 {offsets = [6, 0], sizes = [1, 256], strides = [1, 1]} : vector<9x256xf32> to vector<1x256xf32>
    %743 = vector.broadcast %742 : vector<1x256xf32> to vector<8x256xf32>
    %744 = arith.mulf %741, %743 : vector<8x256xf32>
    %c192_421 = arith.constant 192 : index
    %c0_422 = arith.constant 0 : index
    %745 = vector.load %arg15[%c192_421, %c0_422] : memref<360x256xf32, #tpu.memory_space<vmem>>, vector<8x256xf32>
    tpu.vector_store %arg15[%c192_421, %c0_422], %744 {strides = array<i32>} : memref<360x256xf32, #tpu.memory_space<vmem>>, vector<8x256xf32>,
    %c240_i32_423 = arith.constant 240 : i32
    %746 = tpu.dynamic_rotate %711 by %c240_i32_423 dim 1 : vector<8x256xf32>, i32 -> vector<8x256xf32>
    %747 = vector.extract_strided_slice %0 {offsets = [7, 0], sizes = [1, 256], strides = [1, 1]} : vector<9x256xf32> to vector<1x256xf32>
    %748 = vector.broadcast %747 : vector<1x256xf32> to vector<8x256xf32>
    %749 = arith.mulf %746, %748 : vector<8x256xf32>
    %c200_424 = arith.constant 200 : index
    %c0_425 = arith.constant 0 : index
    %750 = vector.load %arg15[%c200_424, %c0_425] : memref<360x256xf32, #tpu.memory_space<vmem>>, vector<8x256xf32>
    tpu.vector_store %arg15[%c200_424, %c0_425], %749 {strides = array<i32>} : memref<360x256xf32, #tpu.memory_space<vmem>>, vector<8x256xf32>,
    %c239_i32_426 = arith.constant 239 : i32
    %751 = tpu.dynamic_rotate %711 by %c239_i32_426 dim 1 : vector<8x256xf32>, i32 -> vector<8x256xf32>
    %752 = vector.extract_strided_slice %0 {offsets = [8, 0], sizes = [1, 256], strides = [1, 1]} : vector<9x256xf32> to vector<1x256xf32>
    %753 = vector.broadcast %752 : vector<1x256xf32> to vector<8x256xf32>
    %754 = arith.mulf %751, %753 : vector<8x256xf32>
    %c208_427 = arith.constant 208 : index
    %c0_428 = arith.constant 0 : index
    %755 = vector.load %arg15[%c208_427, %c0_428] : memref<360x256xf32, #tpu.memory_space<vmem>>, vector<8x256xf32>
    tpu.vector_store %arg15[%c208_427, %c0_428], %754 {strides = array<i32>} : memref<360x256xf32, #tpu.memory_space<vmem>>, vector<8x256xf32>,
    %c2_429 = arith.constant 2 : index
    %c0_430 = arith.constant 0 : index
    %c0_431 = arith.constant 0 : index
    %756 = vector.load %arg7[%c2_429, %c0_430, %c0_431] : memref<3x8x216xbf16, #tpu.memory_space<vmem>>, vector<1x8x216xbf16>
    %757 = vector.shape_cast %756 : vector<1x8x216xbf16> to vector<8x216xbf16>
    %c0_432 = arith.constant 0 : index
    %c0_433 = arith.constant 0 : index
    %758 = vector.load %arg15[%c0_432, %c0_433] : memref<360x256xf32, #tpu.memory_space<vmem>>, vector<216x256xf32>
    %759 = arith.truncf %758 : vector<216x256xf32> to vector<216x256xbf16>
    %cst_434 = arith.constant dense<0.000000e+00> : vector<8x256xf32>
    %760 = tpu.matmul %757, %759, %cst_434 {dimension_numbers = #tpu.dot_dimension_numbers<[1], [0], [0], [1], [0, 0, 1, 1], [], []>} : vector<8x216xbf16>, vector<216x256xbf16>, vector<8x256xf32> -> vector<8x256xf32>
    %c2_435 = arith.constant 2 : index
    %c0_436 = arith.constant 0 : index
    %c0_437 = arith.constant 0 : index
    %761 = vector.load %arg8[%c2_435, %c0_436, %c0_437] : memref<3x8x1xf32, #tpu.memory_space<vmem>>, vector<1x8x1xf32>
    %762 = vector.shape_cast %761 : vector<1x8x1xf32> to vector<8x1xf32>
    %763 = vector.broadcast %762 : vector<8x1xf32> to vector<8x256xf32>
    %764 = arith.addf %760, %763 : vector<8x256xf32>
    %cst_438 = arith.constant 0.000000e+00 : f32
    %765 = vector.broadcast %cst_438 : f32 to vector<8x256xf32>
    %766 = arith.cmpf oge, %764, %765 : vector<8x256xf32>
    %cst_439 = arith.constant 2.000000e-01 : f32
    %767 = vector.broadcast %cst_439 : f32 to vector<8x256xf32>
    %768 = arith.mulf %767, %764 : vector<8x256xf32>
    %769 = arith.select %766, %764, %768 : vector<8x256xi1>, vector<8x256xf32>
    %c17_i32_440 = arith.constant 17 : i32
    %770 = tpu.dynamic_rotate %769 by %c17_i32_440 dim 1 : vector<8x256xf32>, i32 -> vector<8x256xf32>
    %771 = vector.extract_strided_slice %0 {offsets = [0, 0], sizes = [1, 256], strides = [1, 1]} : vector<9x256xf32> to vector<1x256xf32>
    %772 = vector.broadcast %771 : vector<1x256xf32> to vector<8x256xf32>
    %773 = arith.mulf %770, %772 : vector<8x256xf32>
    %c216_441 = arith.constant 216 : index
    %c0_442 = arith.constant 0 : index
    %774 = vector.load %arg15[%c216_441, %c0_442] : memref<360x256xf32, #tpu.memory_space<vmem>>, vector<8x256xf32>
    tpu.vector_store %arg15[%c216_441, %c0_442], %773 {strides = array<i32>} : memref<360x256xf32, #tpu.memory_space<vmem>>, vector<8x256xf32>,
    %c16_i32_443 = arith.constant 16 : i32
    %775 = tpu.dynamic_rotate %769 by %c16_i32_443 dim 1 : vector<8x256xf32>, i32 -> vector<8x256xf32>
    %776 = vector.extract_strided_slice %0 {offsets = [1, 0], sizes = [1, 256], strides = [1, 1]} : vector<9x256xf32> to vector<1x256xf32>
    %777 = vector.broadcast %776 : vector<1x256xf32> to vector<8x256xf32>
    %778 = arith.mulf %775, %777 : vector<8x256xf32>
    %c224_444 = arith.constant 224 : index
    %c0_445 = arith.constant 0 : index
    %779 = vector.load %arg15[%c224_444, %c0_445] : memref<360x256xf32, #tpu.memory_space<vmem>>, vector<8x256xf32>
    tpu.vector_store %arg15[%c224_444, %c0_445], %778 {strides = array<i32>} : memref<360x256xf32, #tpu.memory_space<vmem>>, vector<8x256xf32>,
    %c15_i32_446 = arith.constant 15 : i32
    %780 = tpu.dynamic_rotate %769 by %c15_i32_446 dim 1 : vector<8x256xf32>, i32 -> vector<8x256xf32>
    %781 = vector.extract_strided_slice %0 {offsets = [2, 0], sizes = [1, 256], strides = [1, 1]} : vector<9x256xf32> to vector<1x256xf32>
    %782 = vector.broadcast %781 : vector<1x256xf32> to vector<8x256xf32>
    %783 = arith.mulf %780, %782 : vector<8x256xf32>
    %c232_447 = arith.constant 232 : index
    %c0_448 = arith.constant 0 : index
    %784 = vector.load %arg15[%c232_447, %c0_448] : memref<360x256xf32, #tpu.memory_space<vmem>>, vector<8x256xf32>
    tpu.vector_store %arg15[%c232_447, %c0_448], %783 {strides = array<i32>} : memref<360x256xf32, #tpu.memory_space<vmem>>, vector<8x256xf32>,
    %c1_i32_449 = arith.constant 1 : i32
    %785 = tpu.dynamic_rotate %769 by %c1_i32_449 dim 1 : vector<8x256xf32>, i32 -> vector<8x256xf32>
    %786 = vector.extract_strided_slice %0 {offsets = [3, 0], sizes = [1, 256], strides = [1, 1]} : vector<9x256xf32> to vector<1x256xf32>
    %787 = vector.broadcast %786 : vector<1x256xf32> to vector<8x256xf32>
    %788 = arith.mulf %785, %787 : vector<8x256xf32>
    %c240_450 = arith.constant 240 : index
    %c0_451 = arith.constant 0 : index
    %789 = vector.load %arg15[%c240_450, %c0_451] : memref<360x256xf32, #tpu.memory_space<vmem>>, vector<8x256xf32>
    tpu.vector_store %arg15[%c240_450, %c0_451], %788 {strides = array<i32>} : memref<360x256xf32, #tpu.memory_space<vmem>>, vector<8x256xf32>,
    %790 = vector.extract_strided_slice %0 {offsets = [4, 0], sizes = [1, 256], strides = [1, 1]} : vector<9x256xf32> to vector<1x256xf32>
    %791 = vector.broadcast %790 : vector<1x256xf32> to vector<8x256xf32>
    %792 = arith.mulf %769, %791 : vector<8x256xf32>
    %c248_452 = arith.constant 248 : index
    %c0_453 = arith.constant 0 : index
    %793 = vector.load %arg15[%c248_452, %c0_453] : memref<360x256xf32, #tpu.memory_space<vmem>>, vector<8x256xf32>
    tpu.vector_store %arg15[%c248_452, %c0_453], %792 {strides = array<i32>} : memref<360x256xf32, #tpu.memory_space<vmem>>, vector<8x256xf32>,
    %c255_i32_454 = arith.constant 255 : i32
    %794 = tpu.dynamic_rotate %769 by %c255_i32_454 dim 1 : vector<8x256xf32>, i32 -> vector<8x256xf32>
    %795 = vector.extract_strided_slice %0 {offsets = [5, 0], sizes = [1, 256], strides = [1, 1]} : vector<9x256xf32> to vector<1x256xf32>
    %796 = vector.broadcast %795 : vector<1x256xf32> to vector<8x256xf32>
    %797 = arith.mulf %794, %796 : vector<8x256xf32>
    %c256_455 = arith.constant 256 : index
    %c0_456 = arith.constant 0 : index
    %798 = vector.load %arg15[%c256_455, %c0_456] : memref<360x256xf32, #tpu.memory_space<vmem>>, vector<8x256xf32>
    tpu.vector_store %arg15[%c256_455, %c0_456], %797 {strides = array<i32>} : memref<360x256xf32, #tpu.memory_space<vmem>>, vector<8x256xf32>,
    %c241_i32_457 = arith.constant 241 : i32
    %799 = tpu.dynamic_rotate %769 by %c241_i32_457 dim 1 : vector<8x256xf32>, i32 -> vector<8x256xf32>
    %800 = vector.extract_strided_slice %0 {offsets = [6, 0], sizes = [1, 256], strides = [1, 1]} : vector<9x256xf32> to vector<1x256xf32>
    %801 = vector.broadcast %800 : vector<1x256xf32> to vector<8x256xf32>
    %802 = arith.mulf %799, %801 : vector<8x256xf32>
    %c264_458 = arith.constant 264 : index
    %c0_459 = arith.constant 0 : index
    %803 = vector.load %arg15[%c264_458, %c0_459] : memref<360x256xf32, #tpu.memory_space<vmem>>, vector<8x256xf32>
    tpu.vector_store %arg15[%c264_458, %c0_459], %802 {strides = array<i32>} : memref<360x256xf32, #tpu.memory_space<vmem>>, vector<8x256xf32>,
    %c240_i32_460 = arith.constant 240 : i32
    %804 = tpu.dynamic_rotate %769 by %c240_i32_460 dim 1 : vector<8x256xf32>, i32 -> vector<8x256xf32>
    %805 = vector.extract_strided_slice %0 {offsets = [7, 0], sizes = [1, 256], strides = [1, 1]} : vector<9x256xf32> to vector<1x256xf32>
    %806 = vector.broadcast %805 : vector<1x256xf32> to vector<8x256xf32>
    %807 = arith.mulf %804, %806 : vector<8x256xf32>
    %c272_461 = arith.constant 272 : index
    %c0_462 = arith.constant 0 : index
    %808 = vector.load %arg15[%c272_461, %c0_462] : memref<360x256xf32, #tpu.memory_space<vmem>>, vector<8x256xf32>
    tpu.vector_store %arg15[%c272_461, %c0_462], %807 {strides = array<i32>} : memref<360x256xf32, #tpu.memory_space<vmem>>, vector<8x256xf32>,
    %c239_i32_463 = arith.constant 239 : i32
    %809 = tpu.dynamic_rotate %769 by %c239_i32_463 dim 1 : vector<8x256xf32>, i32 -> vector<8x256xf32>
    %810 = vector.extract_strided_slice %0 {offsets = [8, 0], sizes = [1, 256], strides = [1, 1]} : vector<9x256xf32> to vector<1x256xf32>
    %811 = vector.broadcast %810 : vector<1x256xf32> to vector<8x256xf32>
    %812 = arith.mulf %809, %811 : vector<8x256xf32>
    %c280_464 = arith.constant 280 : index
    %c0_465 = arith.constant 0 : index
    %813 = vector.load %arg15[%c280_464, %c0_465] : memref<360x256xf32, #tpu.memory_space<vmem>>, vector<8x256xf32>
    tpu.vector_store %arg15[%c280_464, %c0_465], %812 {strides = array<i32>} : memref<360x256xf32, #tpu.memory_space<vmem>>, vector<8x256xf32>,
    %c2_466 = arith.constant 2 : index
    %c0_467 = arith.constant 0 : index
    %c0_468 = arith.constant 0 : index
    %814 = vector.load %arg9[%c2_466, %c0_467, %c0_468] : memref<3x8x288xbf16, #tpu.memory_space<vmem>>, vector<1x8x288xbf16>
    %815 = vector.shape_cast %814 : vector<1x8x288xbf16> to vector<8x288xbf16>
    %c0_469 = arith.constant 0 : index
    %c0_470 = arith.constant 0 : index
    %816 = vector.load %arg15[%c0_469, %c0_470] : memref<360x256xf32, #tpu.memory_space<vmem>>, vector<288x256xf32>
    %817 = arith.truncf %816 : vector<288x256xf32> to vector<288x256xbf16>
    %cst_471 = arith.constant dense<0.000000e+00> : vector<8x256xf32>
    %818 = tpu.matmul %815, %817, %cst_471 {dimension_numbers = #tpu.dot_dimension_numbers<[1], [0], [0], [1], [0, 0, 1, 1], [], []>} : vector<8x288xbf16>, vector<288x256xbf16>, vector<8x256xf32> -> vector<8x256xf32>
    %c2_472 = arith.constant 2 : index
    %c0_473 = arith.constant 0 : index
    %c0_474 = arith.constant 0 : index
    %819 = vector.load %arg10[%c2_472, %c0_473, %c0_474] : memref<3x8x1xf32, #tpu.memory_space<vmem>>, vector<1x8x1xf32>
    %820 = vector.shape_cast %819 : vector<1x8x1xf32> to vector<8x1xf32>
    %821 = vector.broadcast %820 : vector<8x1xf32> to vector<8x256xf32>
    %822 = arith.addf %818, %821 : vector<8x256xf32>
    %cst_475 = arith.constant 0.000000e+00 : f32
    %823 = vector.broadcast %cst_475 : f32 to vector<8x256xf32>
    %824 = arith.cmpf oge, %822, %823 : vector<8x256xf32>
    %cst_476 = arith.constant 2.000000e-01 : f32
    %825 = vector.broadcast %cst_476 : f32 to vector<8x256xf32>
    %826 = arith.mulf %825, %822 : vector<8x256xf32>
    %827 = arith.select %824, %822, %826 : vector<8x256xi1>, vector<8x256xf32>
    %828 = arith.addf %827, %711 : vector<8x256xf32>
    %c17_i32_477 = arith.constant 17 : i32
    %829 = tpu.dynamic_rotate %828 by %c17_i32_477 dim 1 : vector<8x256xf32>, i32 -> vector<8x256xf32>
    %830 = vector.extract_strided_slice %0 {offsets = [0, 0], sizes = [1, 256], strides = [1, 1]} : vector<9x256xf32> to vector<1x256xf32>
    %831 = vector.broadcast %830 : vector<1x256xf32> to vector<8x256xf32>
    %832 = arith.mulf %829, %831 : vector<8x256xf32>
    %c288_478 = arith.constant 288 : index
    %c0_479 = arith.constant 0 : index
    %833 = vector.load %arg15[%c288_478, %c0_479] : memref<360x256xf32, #tpu.memory_space<vmem>>, vector<8x256xf32>
    tpu.vector_store %arg15[%c288_478, %c0_479], %832 {strides = array<i32>} : memref<360x256xf32, #tpu.memory_space<vmem>>, vector<8x256xf32>,
    %c16_i32_480 = arith.constant 16 : i32
    %834 = tpu.dynamic_rotate %828 by %c16_i32_480 dim 1 : vector<8x256xf32>, i32 -> vector<8x256xf32>
    %835 = vector.extract_strided_slice %0 {offsets = [1, 0], sizes = [1, 256], strides = [1, 1]} : vector<9x256xf32> to vector<1x256xf32>
    %836 = vector.broadcast %835 : vector<1x256xf32> to vector<8x256xf32>
    %837 = arith.mulf %834, %836 : vector<8x256xf32>
    %c296_481 = arith.constant 296 : index
    %c0_482 = arith.constant 0 : index
    %838 = vector.load %arg15[%c296_481, %c0_482] : memref<360x256xf32, #tpu.memory_space<vmem>>, vector<8x256xf32>
    tpu.vector_store %arg15[%c296_481, %c0_482], %837 {strides = array<i32>} : memref<360x256xf32, #tpu.memory_space<vmem>>, vector<8x256xf32>,
    %c15_i32_483 = arith.constant 15 : i32
    %839 = tpu.dynamic_rotate %828 by %c15_i32_483 dim 1 : vector<8x256xf32>, i32 -> vector<8x256xf32>
    %840 = vector.extract_strided_slice %0 {offsets = [2, 0], sizes = [1, 256], strides = [1, 1]} : vector<9x256xf32> to vector<1x256xf32>
    %841 = vector.broadcast %840 : vector<1x256xf32> to vector<8x256xf32>
    %842 = arith.mulf %839, %841 : vector<8x256xf32>
    %c304_484 = arith.constant 304 : index
    %c0_485 = arith.constant 0 : index
    %843 = vector.load %arg15[%c304_484, %c0_485] : memref<360x256xf32, #tpu.memory_space<vmem>>, vector<8x256xf32>
    tpu.vector_store %arg15[%c304_484, %c0_485], %842 {strides = array<i32>} : memref<360x256xf32, #tpu.memory_space<vmem>>, vector<8x256xf32>,
    %c1_i32_486 = arith.constant 1 : i32
    %844 = tpu.dynamic_rotate %828 by %c1_i32_486 dim 1 : vector<8x256xf32>, i32 -> vector<8x256xf32>
    %845 = vector.extract_strided_slice %0 {offsets = [3, 0], sizes = [1, 256], strides = [1, 1]} : vector<9x256xf32> to vector<1x256xf32>
    %846 = vector.broadcast %845 : vector<1x256xf32> to vector<8x256xf32>
    %847 = arith.mulf %844, %846 : vector<8x256xf32>
    %c312_487 = arith.constant 312 : index
    %c0_488 = arith.constant 0 : index
    %848 = vector.load %arg15[%c312_487, %c0_488] : memref<360x256xf32, #tpu.memory_space<vmem>>, vector<8x256xf32>
    tpu.vector_store %arg15[%c312_487, %c0_488], %847 {strides = array<i32>} : memref<360x256xf32, #tpu.memory_space<vmem>>, vector<8x256xf32>,
    %849 = vector.extract_strided_slice %0 {offsets = [4, 0], sizes = [1, 256], strides = [1, 1]} : vector<9x256xf32> to vector<1x256xf32>
    %850 = vector.broadcast %849 : vector<1x256xf32> to vector<8x256xf32>
    %851 = arith.mulf %828, %850 : vector<8x256xf32>
    %c320_489 = arith.constant 320 : index
    %c0_490 = arith.constant 0 : index
    %852 = vector.load %arg15[%c320_489, %c0_490] : memref<360x256xf32, #tpu.memory_space<vmem>>, vector<8x256xf32>
    tpu.vector_store %arg15[%c320_489, %c0_490], %851 {strides = array<i32>} : memref<360x256xf32, #tpu.memory_space<vmem>>, vector<8x256xf32>,
    %c255_i32_491 = arith.constant 255 : i32
    %853 = tpu.dynamic_rotate %828 by %c255_i32_491 dim 1 : vector<8x256xf32>, i32 -> vector<8x256xf32>
    %854 = vector.extract_strided_slice %0 {offsets = [5, 0], sizes = [1, 256], strides = [1, 1]} : vector<9x256xf32> to vector<1x256xf32>
    %855 = vector.broadcast %854 : vector<1x256xf32> to vector<8x256xf32>
    %856 = arith.mulf %853, %855 : vector<8x256xf32>
    %c328_492 = arith.constant 328 : index
    %c0_493 = arith.constant 0 : index
    %857 = vector.load %arg15[%c328_492, %c0_493] : memref<360x256xf32, #tpu.memory_space<vmem>>, vector<8x256xf32>
    tpu.vector_store %arg15[%c328_492, %c0_493], %856 {strides = array<i32>} : memref<360x256xf32, #tpu.memory_space<vmem>>, vector<8x256xf32>,
    %c241_i32_494 = arith.constant 241 : i32
    %858 = tpu.dynamic_rotate %828 by %c241_i32_494 dim 1 : vector<8x256xf32>, i32 -> vector<8x256xf32>
    %859 = vector.extract_strided_slice %0 {offsets = [6, 0], sizes = [1, 256], strides = [1, 1]} : vector<9x256xf32> to vector<1x256xf32>
    %860 = vector.broadcast %859 : vector<1x256xf32> to vector<8x256xf32>
    %861 = arith.mulf %858, %860 : vector<8x256xf32>
    %c336_495 = arith.constant 336 : index
    %c0_496 = arith.constant 0 : index
    %862 = vector.load %arg15[%c336_495, %c0_496] : memref<360x256xf32, #tpu.memory_space<vmem>>, vector<8x256xf32>
    tpu.vector_store %arg15[%c336_495, %c0_496], %861 {strides = array<i32>} : memref<360x256xf32, #tpu.memory_space<vmem>>, vector<8x256xf32>,
    %c240_i32_497 = arith.constant 240 : i32
    %863 = tpu.dynamic_rotate %828 by %c240_i32_497 dim 1 : vector<8x256xf32>, i32 -> vector<8x256xf32>
    %864 = vector.extract_strided_slice %0 {offsets = [7, 0], sizes = [1, 256], strides = [1, 1]} : vector<9x256xf32> to vector<1x256xf32>
    %865 = vector.broadcast %864 : vector<1x256xf32> to vector<8x256xf32>
    %866 = arith.mulf %863, %865 : vector<8x256xf32>
    %c344_498 = arith.constant 344 : index
    %c0_499 = arith.constant 0 : index
    %867 = vector.load %arg15[%c344_498, %c0_499] : memref<360x256xf32, #tpu.memory_space<vmem>>, vector<8x256xf32>
    tpu.vector_store %arg15[%c344_498, %c0_499], %866 {strides = array<i32>} : memref<360x256xf32, #tpu.memory_space<vmem>>, vector<8x256xf32>,
    %c239_i32_500 = arith.constant 239 : i32
    %868 = tpu.dynamic_rotate %828 by %c239_i32_500 dim 1 : vector<8x256xf32>, i32 -> vector<8x256xf32>
    %869 = vector.extract_strided_slice %0 {offsets = [8, 0], sizes = [1, 256], strides = [1, 1]} : vector<9x256xf32> to vector<1x256xf32>
    %870 = vector.broadcast %869 : vector<1x256xf32> to vector<8x256xf32>
    %871 = arith.mulf %868, %870 : vector<8x256xf32>
    %c352_501 = arith.constant 352 : index
    %c0_502 = arith.constant 0 : index
    %872 = vector.load %arg15[%c352_501, %c0_502] : memref<360x256xf32, #tpu.memory_space<vmem>>, vector<8x256xf32>
    tpu.vector_store %arg15[%c352_501, %c0_502], %871 {strides = array<i32>} : memref<360x256xf32, #tpu.memory_space<vmem>>, vector<8x256xf32>,
    %c2_503 = arith.constant 2 : index
    %c0_504 = arith.constant 0 : index
    %c0_505 = arith.constant 0 : index
    %873 = vector.load %arg11[%c2_503, %c0_504, %c0_505] : memref<3x8x360xbf16, #tpu.memory_space<vmem>>, vector<1x8x360xbf16>
    %874 = vector.shape_cast %873 : vector<1x8x360xbf16> to vector<8x360xbf16>
    %c0_506 = arith.constant 0 : index
    %c0_507 = arith.constant 0 : index
    %875 = vector.load %arg15[%c0_506, %c0_507] : memref<360x256xf32, #tpu.memory_space<vmem>>, vector<360x256xf32>
    %876 = arith.truncf %875 : vector<360x256xf32> to vector<360x256xbf16>
    %cst_508 = arith.constant dense<0.000000e+00> : vector<8x256xf32>
    %877 = tpu.matmul %874, %876, %cst_508 {dimension_numbers = #tpu.dot_dimension_numbers<[1], [0], [0], [1], [0, 0, 1, 1], [], []>} : vector<8x360xbf16>, vector<360x256xbf16>, vector<8x256xf32> -> vector<8x256xf32>
    %c2_509 = arith.constant 2 : index
    %c0_510 = arith.constant 0 : index
    %c0_511 = arith.constant 0 : index
    %878 = vector.load %arg12[%c2_509, %c0_510, %c0_511] : memref<3x8x1xf32, #tpu.memory_space<vmem>>, vector<1x8x1xf32>
    %879 = vector.shape_cast %878 : vector<1x8x1xf32> to vector<8x1xf32>
    %880 = vector.broadcast %879 : vector<8x1xf32> to vector<8x256xf32>
    %881 = arith.addf %877, %880 : vector<8x256xf32>
    %cst_512 = arith.constant 2.000000e-01 : f32
    %882 = vector.broadcast %cst_512 : f32 to vector<8x256xf32>
    %883 = arith.mulf %881, %882 : vector<8x256xf32>
    %884 = arith.addf %883, %590 : vector<8x256xf32>
    %cst_513 = arith.constant 2.000000e-01 : f32
    %885 = vector.broadcast %cst_513 : f32 to vector<8x256xf32>
    %886 = arith.mulf %884, %885 : vector<8x256xf32>
    %887 = arith.addf %886, %2 : vector<8x256xf32>
    %c0_514 = arith.constant 0 : index
    %c0_515 = arith.constant 0 : index
    %c0_516 = arith.constant 0 : index
    %888 = vector.load %arg14[%c0_514, %c0_515, %c0_516] : memref<1x8x256xf32, #tpu.memory_space<vmem>>, vector<1x8x256xf32>
    %889 = vector.shape_cast %888 : vector<1x8x256xf32> to vector<8x256xf32>
    %890 = vector.shape_cast %887 : vector<8x256xf32> to vector<1x8x256xf32>
    tpu.vector_store %arg14[%c0_514, %c0_515, %c0_516], %890 {strides = array<i32>} : memref<1x8x256xf32, #tpu.memory_space<vmem>>, vector<1x8x256xf32>,
    return
  }
  func.func @transform_0(%arg0: i32) -> (i32, i32) {
    %c0_i32 = arith.constant 0 : i32
    %c0_i32_0 = arith.constant 0 : i32
    %c0_i32_1 = arith.constant 0 : i32
    return %c0_i32, %c0_i32_0 : i32, i32
  }
  func.func @transform_1(%arg0: i32) -> (i32, i32, i32) {
    %c0_i32 = arith.constant 0 : i32
    %c0_i32_0 = arith.constant 0 : i32
    %c0_i32_1 = arith.constant 0 : i32
    return %arg0, %c0_i32, %c0_i32_0 : i32, i32, i32
  }
  func.func @transform_2(%arg0: i32) -> (i32, i32, i32) {
    %c0_i32 = arith.constant 0 : i32
    %c0_i32_0 = arith.constant 0 : i32
    %c0_i32_1 = arith.constant 0 : i32
    %c0_i32_2 = arith.constant 0 : i32
    return %c0_i32, %c0_i32_0, %c0_i32_1 : i32, i32, i32
  }
  func.func @transform_3(%arg0: i32) -> (i32, i32, i32) {
    %c0_i32 = arith.constant 0 : i32
    %c0_i32_0 = arith.constant 0 : i32
    %c0_i32_1 = arith.constant 0 : i32
    %c0_i32_2 = arith.constant 0 : i32
    return %c0_i32, %c0_i32_0, %c0_i32_1 : i32, i32, i32
  }
  func.func @transform_4(%arg0: i32) -> (i32, i32, i32) {
    %c0_i32 = arith.constant 0 : i32
    %c0_i32_0 = arith.constant 0 : i32
    %c0_i32_1 = arith.constant 0 : i32
    %c0_i32_2 = arith.constant 0 : i32
    return %c0_i32, %c0_i32_0, %c0_i32_1 : i32, i32, i32
  }
  func.func @transform_5(%arg0: i32) -> (i32, i32, i32) {
    %c0_i32 = arith.constant 0 : i32
    %c0_i32_0 = arith.constant 0 : i32
    %c0_i32_1 = arith.constant 0 : i32
    %c0_i32_2 = arith.constant 0 : i32
    return %c0_i32, %c0_i32_0, %c0_i32_1 : i32, i32, i32
  }
  func.func @transform_6(%arg0: i32) -> (i32, i32, i32) {
    %c0_i32 = arith.constant 0 : i32
    %c0_i32_0 = arith.constant 0 : i32
    %c0_i32_1 = arith.constant 0 : i32
    %c0_i32_2 = arith.constant 0 : i32
    return %c0_i32, %c0_i32_0, %c0_i32_1 : i32, i32, i32
  }
  func.func @transform_7(%arg0: i32) -> (i32, i32, i32) {
    %c0_i32 = arith.constant 0 : i32
    %c0_i32_0 = arith.constant 0 : i32
    %c0_i32_1 = arith.constant 0 : i32
    %c0_i32_2 = arith.constant 0 : i32
    return %c0_i32, %c0_i32_0, %c0_i32_1 : i32, i32, i32
  }
  func.func @transform_8(%arg0: i32) -> (i32, i32, i32) {
    %c0_i32 = arith.constant 0 : i32
    %c0_i32_0 = arith.constant 0 : i32
    %c0_i32_1 = arith.constant 0 : i32
    %c0_i32_2 = arith.constant 0 : i32
    return %c0_i32, %c0_i32_0, %c0_i32_1 : i32, i32, i32
  }
  func.func @transform_9(%arg0: i32) -> (i32, i32, i32) {
    %c0_i32 = arith.constant 0 : i32
    %c0_i32_0 = arith.constant 0 : i32
    %c0_i32_1 = arith.constant 0 : i32
    %c0_i32_2 = arith.constant 0 : i32
    return %c0_i32, %c0_i32_0, %c0_i32_1 : i32, i32, i32
  }
  func.func @transform_10(%arg0: i32) -> (i32, i32, i32) {
    %c0_i32 = arith.constant 0 : i32
    %c0_i32_0 = arith.constant 0 : i32
    %c0_i32_1 = arith.constant 0 : i32
    %c0_i32_2 = arith.constant 0 : i32
    return %c0_i32, %c0_i32_0, %c0_i32_1 : i32, i32, i32
  }
  func.func @transform_11(%arg0: i32) -> (i32, i32, i32) {
    %c0_i32 = arith.constant 0 : i32
    %c0_i32_0 = arith.constant 0 : i32
    %c0_i32_1 = arith.constant 0 : i32
    %c0_i32_2 = arith.constant 0 : i32
    return %c0_i32, %c0_i32_0, %c0_i32_1 : i32, i32, i32
  }
  func.func @transform_12(%arg0: i32) -> (i32, i32, i32) {
    %c0_i32 = arith.constant 0 : i32
    %c0_i32_0 = arith.constant 0 : i32
    %c0_i32_1 = arith.constant 0 : i32
    %c0_i32_2 = arith.constant 0 : i32
    return %c0_i32, %c0_i32_0, %c0_i32_1 : i32, i32, i32
  }
  func.func @transform_13(%arg0: i32) -> (i32, i32, i32) {
    %c0_i32 = arith.constant 0 : i32
    %c0_i32_0 = arith.constant 0 : i32
    %c0_i32_1 = arith.constant 0 : i32
    return %arg0, %c0_i32, %c0_i32_0 : i32, i32, i32
  }
}

</mosaic_0001>

<bundles_post_ra>
// kernel: rrdb_forward.1
= control target key start
LH: loop header
LB: loop body
LE: loop exit
PB: predicated region body
PF: predicated region fallthrough
CT: control target
= control target key end

     0   :  { %s4809_s25 = smov 0   ;;  %s6806_s0 = inlined_call_operand.vmem [shape: f32[9,256], index: 0, kind: input, shape index: {}]   ;;  %s6807_s1 = inlined_call_operand.vmem [shape: f32[2,8,256], index: 1, kind: input, shape index: {}]   ;;  %s6808_s2 = inlined_call_operand.vmem [shape: bf16[3,8,72], index: 2, kind: input, shape index: {}]   ;;  %s6809_s3 = inlined_call_operand.vmem [shape: f32[3,8,1], index: 3, kind: input, shape index: {}]   ;;  %s6810_s4 = inlined_call_operand.vmem [shape: bf16[3,8,144], index: 4, kind: input, shape index: {}]   ;;  %s6811_s5 = inlined_call_operand.vmem [shape: f32[3,8,1], index: 5, kind: input, shape index: {}]   ;;  %s6812_s6 = inlined_call_operand.vmem [shape: bf16[3,8,216], index: 6, kind: input, shape index: {}]   ;;  %s6813_s7 = inlined_call_operand.vmem [shape: f32[3,8,1], index: 7, kind: input, shape index: {}]   ;;  %s6814_s8 = inlined_call_operand.vmem [shape: bf16[3,8,288], index: 8, kind: input, shape index: {}]   ;;  %s6815_s9 = inlined_call_operand.vmem [shape: f32[3,8,1], index: 9, kind: input, shape index: {}]   ;;  %s6816_s10 = inlined_call_operand.vmem [shape: bf16[3,8,360], index: 10, kind: input, shape index: {}]   ;;  %s6817_s11 = inlined_call_operand.vmem [shape: f32[3,8,1], index: 11, kind: input, shape index: {}]   ;;  %s6818_s12 = inlined_call_operand.vmem [shape: bf16[3,8,8], index: 12, kind: input, shape index: {}]   ;;  %s6819_s13 = inlined_call_operand.vmem [shape: f32[2,8,256], index: 13, kind: output, shape index: {}]  }
   0x1 LB: > { %s4526_s26 = sadd.s32 4294967295, %s4728_s25   ;;  %p4530_p0 = scmp.ge.s32.totalorder %s4728_s25, 1  ;;  %s4728_s25 = sphi %s4809_s25, %s23_s25  }
   0x2   : > { %p387_p1 = scmp.lt.s32.totalorder %s4728_s25, 3 }
   0x4   : > { %p388_p2 = pnand %p4530_p0, %p387_p1 }
   0x6   : > { %391 = sbr.rel (%p388_p2) target bundleno = 5595 (0x15db), region = 72 }
   0xd   : > { %p431_p3 = scmp.lt.s32.totalorder %s4526_s26, 1  ;;  %s4730_s14 = smov 16   ;;  %v6822_v2 = vmov 0   ;;  %v643_v3 = vld [vmem:[%s6809_s3] sm:$0xff]  ;;  %v452_v4 = vlaneseq  ;;  %v4885_v10 = vld [vmem:[%s6806_s0 + $0x8] sm:$0xff]  ;;  %vm653_vm8 = vcmask 1043456  }
   0xe   : > { %s4731_s15 = smov 17   ;;  %s4732_s16 = smov 15   ;;  %692 = vmatprep.mubr.bf16.mxu0 %v6822_v2  ;;  %4680 = vset.pattern.permute.xlu0 %v6822_v2  ;;  %v4880_v9 = vld [vmem:[%s6806_s0] sm:$0xff]  ;;  %vm6821_vm9 = vcmask 588800   ;;  %vm912_vm10 = vcmask 64512   ;;  %vm858_vm13 = vcmask 130048  }
   0xf   : > { %s6831_s26 = smov (!%p431_p3, %s4526_s26), 1  ;;  %s4733_s17 = smov 1   ;;  %4681 = vset.pattern.permute.xlu1 %v6822_v2  ;;  %v4871_v5 = vshrl.u32 %v452_v4, 7  ;;  %v4873_v6 = vand.u32 127, %v452_v4 }
  0x10   : > { %s6820_s27 = sshll.u32 %s6831_s26, 4  ;;  %s4734_s18 = smov 127  }
  0x11   : > { %s4825_s30 = scalar_lea.vmem %s6807_s1, %s6820_s27  ;;  %s4735_s19 = smov 113   ;;  %v478_v7 = vsub.s32 1, %v4871_v5  ;;  %v459_v8 = vsub.s32 0, %v4871_v5  ;;  %vm454_vm0 = vcmp.lt.s32.totalorder %v4873_v6, 17  ;;  %vm473_vm1 = vcmp.lt.s32.totalorder %v4873_v6, 16 }
  0x12   : > { %v4828_v0 = vld [vmem:[%s4825_s30] sm:$0xff]  ;;  %v4835_v1 = vld [vmem:[%s4825_s30 + $0x8] sm:$0xff]  ;;  %s4737_s20 = smov 112   ;;  %s4738_s21 = smov 111   ;;  %v497_v19 = vsub.s32 2, %v4871_v5  ;;  %v516_v20 = vsub.s32 3, %v4871_v5 }
  0x13   : > { %469 = vrot.lane.b32.xlu1 %v4828_v0, %s4730_s14  ;;  %448 = vrot.lane.b32.xlu0 %v4828_v0, %s4731_s15  ;;  %v4890_v13 = vrot.slane %v4880_v9, %v478_v7  ;;  %v4893_v14 = vrot.slane %v4885_v10, %v478_v7  ;;  %v4896_v15 = vrot.slane %v4880_v9, %v459_v8  ;;  %vm492_vm2 = vcmp.lt.s32.totalorder %v4873_v6, 15 }
  0x14   : > { %v4899_v16 = vrot.slane %v4885_v10, %v459_v8  ;;  %v528_v33 = vsub.s32 4, %v4871_v5  ;;  %v4922_v34 = vrot.slane %v4880_v9, %v497_v19  ;;  %v547_v35 = vsub.s32 5, %v4871_v5 }
  0x15   : > { %vm511_vm3 = vcmp.lt.s32.totalorder %v4873_v6, 1  ;;  %v4927_v36 = vrot.slane %v4885_v10, %v497_v19  ;;  %v4932_v37 = vrot.slane %v4880_v9, %v516_v20  ;;  %v4935_v38 = vrot.slane %v4885_v10, %v516_v20 }
  0x16   : > { %vm542_vm4 = vcmp.lt.s32.totalorder %v4873_v6, 127  ;;  %v4945_v43 = vrot.slane %v4880_v9, %v528_v33  ;;  %v4948_v44 = vrot.slane %v4885_v10, %v528_v33  ;;  %v4955_v47 = vrot.slane %v4880_v9, %v547_v35 }
  0x17   : > { %471 = vrot.lane.b32.xlu1 %v4835_v1, %s4730_s14  ;;  %450 = vrot.lane.b32.xlu0 %v4835_v1, %s4731_s15  ;;  %v4958_v48 = vrot.slane %v4885_v10, %v547_v35  ;;  %v566_v61 = vsub.s32 6, %v4871_v5  ;;  %vm561_vm5 = vcmp.lt.s32.totalorder %v4873_v6, 113  ;;  %vm580_vm6 = vcmp.lt.s32.totalorder %v4873_v6, 112 }
  0x18   : > { %v535_v56 = vmul.f32 %v4948_v44, %v4835_v1  ;;  %v534_v58 = vmul.f32 %v4945_v43, %v4828_v0  ;;  %vm599_vm7 = vcmp.lt.s32.totalorder %v4873_v6, 111 }
  0x1b   : > { %490 = vrot.lane.b32.xlu1 %v4835_v1, %s4732_s16  ;;  %488 = vrot.lane.b32.xlu0 %v4828_v0, %s4732_s16 }
  0x1f   : > { %509 = vrot.lane.b32.xlu1 %v4835_v1, %s4733_s17  ;;  %507 = vrot.lane.b32.xlu0 %v4828_v0, %s4733_s17 }
  0x23   : > { %540 = vrot.lane.b32.xlu1 %v4835_v1, %s4734_s18  ;;  %538 = vrot.lane.b32.xlu0 %v4828_v0, %s4734_s18 }
  0x27   : > { %559 = vrot.lane.b32.xlu1 %v4835_v1, %s4735_s19  ;;  %557 = vrot.lane.b32.xlu0 %v4828_v0, %s4735_s19 }
  0x2b   : > { %578 = vrot.lane.b32.xlu1 %v4835_v1, %s4737_s20  ;;  %576 = vrot.lane.b32.xlu0 %v4828_v0, %s4737_s20 }
  0x2f   : > { %597 = vrot.lane.b32.xlu1 %v4835_v1, %s4738_s21  ;;  %595 = vrot.lane.b32.xlu0 %v4828_v0, %s4738_s21 }
  0x33   : > { %646 = vperm.xlu0 %4680, %v643_v3   ;;  %v585_v3 = vsub.s32 7, %v4871_v5 }
  0x35   : > { %v4999_v5 = vrot.slane %v4880_v9, %v585_v3 }
  0x85   : > { %v470_v11 = vpop.permute.xlu1 %469  ;;  %v449_v12 = vpop.permute.xlu0 %448 }
  0x89   : > { %v472_v17 = vpop.permute.xlu1 %471  ;;  %v451_v18 = vpop.permute.xlu0 %450 }
  0x8a   : > { %v474_v21 = vsel %vm473_vm1, %v470_v11, %v472_v17  ;;  %v475_v22 = vsel %vm473_vm1, %v472_v17, %v470_v11  ;;  %v455_v23 = vsel %vm454_vm0, %v449_v12, %v451_v18  ;;  %v456_v24 = vsel %vm454_vm0, %v451_v18, %v449_v12 }
  0x8b   : > { %v484_v25 = vmul.f32 %v4890_v13, %v475_v22  ;;  %v485_v26 = vmul.f32 %v4893_v14, %v474_v21  ;;  %v465_v27 = vmul.f32 %v4896_v15, %v456_v24  ;;  %v466_v28 = vmul.f32 %v4899_v16, %v455_v23 }
  0x8c   : > { %v4990_v12 = vrot.slane %v4880_v9, %v566_v61  ;;  %v4994_v17 = vrot.slane %v4885_v10, %v566_v61  ;;  %v5002_v18 = vrot.slane %v4885_v10, %v585_v3 }
  0x8d   : > { %v4916_v29 = vpack.c.bf16 %v484_v25, %v465_v27  ;;  %v4918_v30 = vpack.c.bf16 %v485_v26, %v466_v28  ;;  %v491_v31 = vpop.permute.xlu1 %490  ;;  %v489_v32 = vpop.permute.xlu0 %488  ;;  %v5022_v27 = vld [vmem:[%s6806_s0 + $0x10] ss:$0 sm:$0xff]  ;;  %v5027_v28 = vld [vmem:[%s6806_s0 + $0x18] ss:$0 sm:$0xff] }
  0x8e   : > { %v493_v39 = vsel %vm492_vm2, %v489_v32, %v491_v31  ;;  %v494_v40 = vsel %vm492_vm2, %v491_v31, %v489_v32 }
  0x8f   : > { %660 = vmatprep.subr.bf16.mxu0 %v4918_v30  ;;  %862 = vmatprep.subr.bf16.mxu1 %v4918_v30  ;;  %v503_v49 = vmul.f32 %v4922_v34, %v494_v40  ;;  %v504_v50 = vmul.f32 %v4927_v36, %v493_v39 }
  0x90   : > { %661 = vmatpush1.bf16.msra.mxu0 %v4916_v29  ;;  %863 = vmatpush1.bf16.msra.mxu1 %v4916_v29 }
  0x91   : > { %v510_v41 = vpop.permute.xlu1 %509  ;;  %v508_v42 = vpop.permute.xlu0 %507 }
  0x92   : > { %v512_v45 = vsel %vm511_vm3, %v508_v42, %v510_v41  ;;  %v513_v46 = vsel %vm511_vm3, %v510_v41, %v508_v42 }
  0x93   : > { %v522_v51 = vmul.f32 %v4932_v37, %v513_v46  ;;  %v523_v52 = vmul.f32 %v4935_v38, %v512_v45 }
  0x95   : > { %v4964_v53 = vpack.c.bf16 %v522_v51, %v503_v49  ;;  %v4966_v54 = vpack.c.bf16 %v523_v52, %v504_v50  ;;  %v541_v55 = vpop.permute.xlu1 %540  ;;  %v539_v57 = vpop.permute.xlu0 %538  ;;  %v911_v49 = vpack.c.bf16 %v4835_v1, %v4835_v1  ;;  %v910_v50 = vpack.c.bf16 %v4828_v0, %v4828_v0  ;;  %v614_v52 = vld [vmem:[%s6808_s2] sm:$0xf] }
  0x96   : > { %v543_v59 = vsel %vm542_vm4, %v539_v57, %v541_v55  ;;  %v544_v60 = vsel %vm542_vm4, %v541_v55, %v539_v57  ;;  %v909_v0 = vld [vmem:[%s6818_s12] sm:$0xf] }
  0x97   : > { %v553_v62 = vmul.f32 %v4955_v47, %v543_v59  ;;  %v554_v63 = vmul.f32 %v4958_v48, %v544_v60  ;;  %662 = vmatprep.subr.bf16.mxu0 %v4966_v54  ;;  %864 = vmatprep.subr.bf16.mxu1 %v4966_v54  ;;  %v917_v55 = vsel %vm653_vm8, %v910_v50, 0 }
  0x98   : > { %663 = vmatpush1.bf16.msra.mxu0 %v4964_v53  ;;  %865 = vmatpush1.bf16.msra.mxu1 %v4964_v53 }
  0x99   : > { %v4985_v4 = vpack.c.bf16 %v553_v62, %v534_v58  ;;  %v4987_v7 = vpack.c.bf16 %v554_v63, %v535_v56  ;;  %v560_v8 = vpop.permute.xlu1 %559  ;;  %v558_v11 = vpop.permute.xlu0 %557 }
  0x9a   : > { %v562_v19 = vsel %vm561_vm5, %v558_v11, %v560_v8  ;;  %v563_v20 = vsel %vm561_vm5, %v560_v8, %v558_v11  ;;  %v846_v11 = vld [vmem:[%s6811_s5] sm:$0xff] }
  0x9b   : > { %664 = vmatprep.subr.bf16.mxu0 %v4987_v7  ;;  %866 = vmatprep.subr.bf16.mxu1 %v4987_v7  ;;  %v572_v23 = vmul.f32 %v4990_v12, %v562_v19  ;;  %v573_v24 = vmul.f32 %v4994_v17, %v563_v20  ;;  %v5096_v19 = vld [vmem:[%s6810_s4] sm:$0xff] }
  0x9c   : > { %665 = vmatpush1.bf16.msra.mxu0 %v4985_v4  ;;  %867 = vmatpush1.bf16.msra.mxu1 %v4985_v4  ;;  %v4540_v20 = vcombine.high %v5096_v19, %v5096_v19 }
  0x9d   : > { %v579_v21 = vpop.permute.xlu1 %578  ;;  %v577_v22 = vpop.permute.xlu0 %576 }
  0x9e   : > { %v581_v9 = vsel %vm580_vm6, %v577_v22, %v579_v21  ;;  %v582_v10 = vsel %vm580_vm6, %v579_v21, %v577_v22  ;;  %4541 = vmatprep.mubr.msk.bf16.mxu1 %vm858_vm13, %v4540_v20 }
  0x9f   : > { %v591_v25 = vmul.f32 %v4999_v5, %v581_v9  ;;  %v592_v26 = vmul.f32 %v5002_v18, %v582_v10 }
  0xa1   : > { %v5029_v31 = vpack.c.bf16 %v591_v25, %v572_v23  ;;  %v5031_v32 = vpack.c.bf16 %v592_v26, %v573_v24  ;;  %v598_v33 = vpop.permute.xlu1 %597  ;;  %v596_v35 = vpop.permute.xlu0 %595 }
  0xa2   : > { %v600_v39 = vsel %vm599_vm7, %v596_v35, %v598_v33  ;;  %v601_v40 = vsel %vm599_vm7, %v598_v33, %v596_v35 }
  0xa3   : > { %v5038_v41 = vmul.f32 %v5022_v27, %v600_v39  ;;  %v5041_v42 = vmul.f32 %v5027_v28, %v601_v40  ;;  %666 = vmatprep.subr.bf16.mxu0 %v5031_v32  ;;  %868 = vmatprep.subr.bf16.mxu1 %v5031_v32 }
  0xa4   : > { %667 = vmatpush1.bf16.msra.mxu0 %v5029_v31  ;;  %869 = vmatpush1.bf16.msra.mxu1 %v5029_v31 }
  0xa5   : > { %v642_v45 = vpack.c.bf16 %v5041_v42, %v5041_v42  ;;  %v641_v46 = vpack.c.bf16 %v5038_v41, %v5038_v41 }
  0xa7   : > { %4537 = vmatprep.subr.msk.bf16.mxu0 %vm653_vm8, %v642_v45  ;;  %v655_v51 = vsel %vm653_vm8, %v641_v46, 0 }
  0xa8   : > { %669 = vmatpush1.bf16.msra.mxu0 %v655_v51 }
  0xa9   : > { %4542 = vmatprep.subr.msk.bf16.mxu0 %vm653_vm8, %v911_v49 }
  0xab   : > { %4538 = vmatmul.mubr.msk.bf16.vlgmr.msra.gmra.mrb[0].mxu0 %vm6821_vm9, %v614_v52 }
  0xac   : > { %923 = vmatpush1.bf16.msra.mxu0 %v917_v55  ;;  %954 = vmatprep.mubr.bf16.mxu0 %v6822_v2 }
  0xad   : > { %1154 = vmatprep.subr.bf16.mxu0 %v4918_v30 }
  0xb2   : > { %v647_v1 = vpop.permute.xlu0 %646 }
  0xb3   : > { %4543 = vmatmul.mubr.msk.bf16.vlgmr.msra.gmra.mrb[4].mxu0 %vm912_vm10, %v909_v0 }
  0xb4   : > { %1155 = vmatpush1.bf16.msra.mxu0 %v4916_v29 }
  0xb5   : > { %1156 = vmatprep.subr.bf16.mxu0 %v4966_v54 }
  0xb8   : > { %1157 = vmatpush1.bf16.msra.mxu0 %v4964_v53 }
  0xb9   : > { %1158 = vmatprep.subr.bf16.mxu0 %v4987_v7 }
  0xbc   : > { %1159 = vmatpush1.bf16.msra.mxu0 %v4985_v4 }
  0xbd   : > { %1160 = vmatprep.subr.bf16.mxu0 %v5031_v32 }
  0xc0   : > { %1161 = vmatpush1.bf16.msra.mxu0 %v5029_v31 }
 0x17e   : > { %v694_v56 = vpop.f32.mrb[0].mxu0 }
 0x17f   : > { %v695_v57 = vadd.f32 %v694_v56, %v647_v1  ;;  %v696_v58 = vpop.f32.mrb[1].mxu0 }
 0x180   : > { %v697_v59 = vadd.f32 %v696_v58, %v647_v1  ;;  %v698_v60 = vpop.f32.mrb[2].mxu0 }
 0x181   : > { %vm701_vm11 = vcmp.ge.f32.partialorder %v695_v57, 0.0  ;;  %v703_v61 = vmul.f32 0.2, %v695_v57  ;;  %v699_v62 = vpop.f32.mrb[3].mxu0 }
 0x182   : > { %v704_v3 = vmul.f32 0.2, %v697_v59  ;;  %vm702_vm12 = vcmp.ge.f32.partialorder %v697_v59, 0.0 }
 0x183   : > { %v705_v63 = vsel %vm701_vm11, %v695_v57, %v703_v61  ;;  %vm1144_vm11 = vcmask 719872  }
 0x184   : > { %717 = vrot.lane.b32.xlu0 %v705_v63, %s4730_s14  ;;  %707 = vrot.lane.b32.xlu1 %v705_v63, %s4731_s15  ;;  %v706_v8 = vsel %vm702_vm12, %v697_v59, %v704_v3  ;;  %v747_v60 = vmul.f32 %v705_v63, %v4945_v43 }
 0x185   : > { %v748_v61 = vmul.f32 %v706_v8, %v4948_v44 }
 0x188   : > { %727 = vrot.lane.b32.xlu0 %v705_v63, %s4732_s16  ;;  %709 = vrot.lane.b32.xlu1 %v706_v8, %s4731_s15 }
 0x18c   : > { %737 = vrot.lane.b32.xlu0 %v705_v63, %s4733_s17  ;;  %719 = vrot.lane.b32.xlu1 %v706_v8, %s4730_s14 }
 0x190   : > { %751 = vrot.lane.b32.xlu0 %v705_v63, %s4734_s18  ;;  %729 = vrot.lane.b32.xlu1 %v706_v8, %s4732_s16 }
 0x194   : > { %761 = vrot.lane.b32.xlu0 %v705_v63, %s4735_s19  ;;  %739 = vrot.lane.b32.xlu1 %v706_v8, %s4733_s17 }
 0x198   : > { %771 = vrot.lane.b32.xlu0 %v705_v63, %s4737_s20  ;;  %753 = vrot.lane.b32.xlu1 %v706_v8, %s4734_s18 }
 0x19c   : > { %781 = vrot.lane.b32.xlu0 %v705_v63, %s4738_s21  ;;  %763 = vrot.lane.b32.xlu1 %v706_v8, %s4735_s19 }
 0x1a0   : > { %849 = vperm.xlu0 %4680, %v846_v11   ;;  %773 = vrot.lane.b32.xlu1 %v706_v8, %s4737_s20 }
 0x1a4   : > { %783 = vrot.lane.b32.xlu1 %v706_v8, %s4738_s21 }
 0x1f6   : > { %v718_v21 = vpop.permute.xlu0 %717  ;;  %v708_v22 = vpop.permute.xlu1 %707 }
 0x1fa   : > { %v728_v9 = vpop.permute.xlu0 %727  ;;  %v710_v10 = vpop.permute.xlu1 %709 }
 0x1fb   : > { %v711_v23 = vsel %vm454_vm0, %v708_v22, %v710_v10  ;;  %v712_v24 = vsel %vm454_vm0, %v710_v10, %v708_v22 }
 0x1fc   : > { %v713_v25 = vmul.f32 %v712_v24, %v4896_v15  ;;  %v714_v26 = vmul.f32 %v711_v23, %v4899_v16 }
 0x1fe   : > { %v5110_v33 = vpack.c.bf16 %v713_v25, %v5038_v41  ;;  %v5113_v35 = vpack.c.bf16 %v714_v26, %v5041_v42  ;;  %v738_v39 = vpop.permute.xlu0 %737  ;;  %v720_v40 = vpop.permute.xlu1 %719 }
 0x1ff   : > { %v721_v45 = vsel %vm473_vm1, %v718_v21, %v720_v40  ;;  %v722_v46 = vsel %vm473_vm1, %v720_v40, %v718_v21 }
 0x200   : > { %870 = vmatprep.subr.bf16.mxu1 %v5113_v35  ;;  %1162 = vmatprep.subr.bf16.mxu0 %v5113_v35  ;;  %v723_v50 = vmul.f32 %v722_v46, %v4890_v13  ;;  %v724_v51 = vmul.f32 %v721_v45, %v4893_v14 }
 0x201   : > { %871 = vmatpush1.bf16.msra.mxu1 %v5110_v33  ;;  %1163 = vmatpush1.bf16.msra.mxu0 %v5110_v33 }
 0x202   : > { %v730_v41 = vpop.permute.xlu1 %729  ;;  %v752_v52 = vpop.permute.xlu0 %751 }
 0x203   : > { %v731_v42 = vsel %vm492_vm2, %v728_v9, %v730_v41  ;;  %v732_v49 = vsel %vm492_vm2, %v730_v41, %v728_v9 }
 0x204   : > { %v733_v55 = vmul.f32 %v732_v49, %v4922_v34  ;;  %v734_v0 = vmul.f32 %v731_v42, %v4927_v36 }
 0x206   : > { %v5131_v1 = vpack.c.bf16 %v733_v55, %v723_v50  ;;  %v5133_v56 = vpack.c.bf16 %v734_v0, %v724_v51  ;;  %v740_v57 = vpop.permute.xlu1 %739  ;;  %v762_v11 = vpop.permute.xlu0 %761 }
 0x207   : > { %v741_v58 = vsel %vm511_vm3, %v738_v39, %v740_v57  ;;  %v742_v59 = vsel %vm511_vm3, %v740_v57, %v738_v39 }
 0x208   : > { %v743_v62 = vmul.f32 %v742_v59, %v4932_v37  ;;  %v744_v3 = vmul.f32 %v741_v58, %v4935_v38  ;;  %872 = vmatprep.subr.bf16.mxu1 %v5133_v56  ;;  %1164 = vmatprep.subr.bf16.mxu0 %v5133_v56 }
 0x209   : > { %873 = vmatpush1.bf16.msra.mxu1 %v5131_v1  ;;  %1165 = vmatpush1.bf16.msra.mxu0 %v5131_v1 }
 0x20a   : > { %v5147_v20 = vpack.c.bf16 %v747_v60, %v743_v62  ;;  %v5149_v21 = vpack.c.bf16 %v748_v61, %v744_v3  ;;  %v754_v63 = vpop.permute.xlu1 %753  ;;  %v772_v24 = vpop.permute.xlu0 %771  ;;  %v4539_v62 = vcombine.low %v5096_v19, %v5096_v19 }
 0x20b   : > { %v755_v8 = vsel %vm542_vm4, %v752_v52, %v754_v63  ;;  %v756_v22 = vsel %vm542_vm4, %v754_v63, %v752_v52  ;;  %v956_v19 = vpop.f32.mrb[4].mxu0 }
 0x20c   : > { %874 = vmatprep.subr.bf16.mxu1 %v5149_v21  ;;  %1166 = vmatprep.subr.bf16.mxu0 %v5149_v21  ;;  %v757_v25 = vmul.f32 %v755_v8, %v4955_v47  ;;  %v758_v26 = vmul.f32 %v756_v22, %v4958_v48  ;;  %v958_v3 = vpop.f32.mrb[5].mxu0 }
 0x20d   : > { %875 = vmatpush1.bf16.msra.mxu1 %v5147_v20  ;;  %1167 = vmatpush1.bf16.msra.mxu0 %v5147_v20 }
 0x20e   : > { %v764_v9 = vpop.permute.xlu1 %763  ;;  %v782_v50 = vpop.permute.xlu0 %781 }
 0x20f   : > { %v765_v10 = vsel %vm561_vm5, %v762_v11, %v764_v9  ;;  %v766_v23 = vsel %vm561_vm5, %v764_v9, %v762_v11  ;;  %v960_v11 = vpop.f32.mrb[6].mxu0 }
 0x210   : > { %v767_v39 = vmul.f32 %v765_v10, %v4990_v12  ;;  %v768_v40 = vmul.f32 %v766_v23, %v4994_v17  ;;  %v961_v63 = vpop.f32.mrb[7].mxu0 }
 0x212   : > { %v5167_v45 = vpack.c.bf16 %v767_v39, %v757_v25  ;;  %v5169_v46 = vpack.c.bf16 %v768_v40, %v758_v26  ;;  %v774_v41 = vpop.permute.xlu1 %773 }
 0x213   : > { %v775_v42 = vsel %vm580_vm6, %v772_v24, %v774_v41  ;;  %v776_v49 = vsel %vm580_vm6, %v774_v41, %v772_v24 }
 0x214   : > { %876 = vmatprep.subr.bf16.mxu1 %v5169_v46  ;;  %1168 = vmatprep.subr.bf16.mxu0 %v5169_v46  ;;  %v777_v0 = vmul.f32 %v775_v42, %v4999_v5  ;;  %v778_v57 = vmul.f32 %v776_v49, %v5002_v18 }
 0x215   : > { %877 = vmatpush1.bf16.msra.mxu1 %v5167_v45  ;;  %1169 = vmatpush1.bf16.msra.mxu0 %v5167_v45 }
 0x216   : > { %v784_v51 = vpop.permute.xlu1 %783 }
 0x217   : > { %v785_v52 = vsel %vm599_vm7, %v782_v50, %v784_v51  ;;  %v786_v55 = vsel %vm599_vm7, %v784_v51, %v782_v50  ;;  %v5246_v50 = vld [vmem:[%s6812_s6] sm:$0xff] }
 0x218   : > { %v787_v58 = vmul.f32 %v5022_v27, %v785_v52  ;;  %v788_v59 = vmul.f32 %v5027_v28, %v786_v55  ;;  %v4545_v51 = vcombine.high %v5246_v50, %v5246_v50  ;;  %v1132_v52 = vld [vmem:[%s6813_s7] sm:$0xff] }
 0x21a   : > { %v5187_v60 = vpack.c.bf16 %v787_v58, %v777_v0  ;;  %v5189_v61 = vpack.c.bf16 %v788_v59, %v778_v57  ;;  %4547 = vmatprep.mubr.msk.bf16.mxu0 %vm1144_vm11, %v4545_v51 }
 0x21c   : > { %878 = vmatprep.subr.bf16.mxu1 %v5189_v61  ;;  %1170 = vmatprep.subr.bf16.mxu0 %v5189_v61 }
 0x21d   : > { %879 = vmatpush1.bf16.msra.mxu1 %v5187_v60  ;;  %1171 = vmatpush1.bf16.msra.mxu0 %v5187_v60 }
 0x21e   : > { %1415 = vmatprep.subr.bf16.mxu1 %v4918_v30 }
 0x21f   : > { %v850_v8 = vpop.permute.xlu0 %849 }
 0x220   : > { %895 = vmatmul.mubr.bf16.vlgmr.msra.gmra.mrb[0].mxu1 %v4539_v62 }
 0x221   : > { %1416 = vmatpush1.bf16.msra.mxu1 %v4916_v29 }
 0x222   : > { %1417 = vmatprep.subr.bf16.mxu1 %v4966_v54 }
 0x225   : > { %1418 = vmatpush1.bf16.msra.mxu1 %v4964_v53 }
 0x226   : > { %1419 = vmatprep.subr.bf16.mxu1 %v4987_v7 }
 0x229   : > { %1420 = vmatpush1.bf16.msra.mxu1 %v4985_v4 }
 0x22a   : > { %1421 = vmatprep.subr.bf16.mxu1 %v5031_v32 }
 0x22d   : > { %1422 = vmatpush1.bf16.msra.mxu1 %v5029_v31 }
 0x22e   : > { %1423 = vmatprep.subr.bf16.mxu1 %v5113_v35 }
 0x231   : > { %1424 = vmatpush1.bf16.msra.mxu1 %v5110_v33 }
 0x232   : > { %1425 = vmatprep.subr.bf16.mxu1 %v5133_v56 }
 0x235   : > { %1426 = vmatpush1.bf16.msra.mxu1 %v5131_v1 }
 0x236   : > { %1427 = vmatprep.subr.bf16.mxu1 %v5149_v21 }
 0x239   : > { %1428 = vmatpush1.bf16.msra.mxu1 %v5147_v20 }
 0x23a   : > { %1429 = vmatprep.subr.bf16.mxu1 %v5169_v46 }
 0x23d   : > { %1430 = vmatpush1.bf16.msra.mxu1 %v5167_v45 }
 0x23e   : > { %1431 = vmatprep.subr.bf16.mxu1 %v5189_v61 }
 0x241   : > { %1432 = vmatpush1.bf16.msra.mxu1 %v5187_v60 }
 0x2f3   : > { %v896_v22 = vpop.f32.mrb[0].mxu1 }
 0x2f4   : > { %v897_v9 = vadd.f32 %v896_v22, %v850_v8  ;;  %v898_v10 = vpop.f32.mrb[1].mxu1 }
 0x2f5   : > { %v899_v23 = vadd.f32 %v898_v10, %v850_v8  ;;  %v900_v24 = vpop.f32.mrb[2].mxu1 }
 0x2f6   : > { %v905_v25 = vmul.f32 0.2, %v897_v9  ;;  %vm903_vm14 = vcmp.ge.f32.partialorder %v897_v9, 0.0  ;;  %v901_v26 = vpop.f32.mrb[3].mxu1 }
 0x2f7   : > { %v906_v39 = vmul.f32 0.2, %v899_v23  ;;  %vm904_vm15 = vcmp.ge.f32.partialorder %v899_v23, 0.0 }
 0x2f8   : > { %v907_v40 = vsel %vm903_vm14, %v897_v9, %v905_v25 }
 0x2f9   : > { %v5215_v41 = vadd.f32 %v956_v19, %v907_v40  ;;  %v908_v42 = vsel %vm904_vm15, %v899_v23, %v906_v39  ;;  %vm1411_vm15 = vcmask 261120  }
 0x2fa   : > { %v5217_v49 = vadd.f32 %v958_v3, %v908_v42 }
 0x2fb   : > { %965 = vrot.lane.b32.xlu1 %v5215_v41, %s4731_s15 }
 0x2fc   : > { %967 = vrot.lane.b32.xlu0 %v5217_v49, %s4731_s15 }
 0x2ff   : > { %975 = vrot.lane.b32.xlu1 %v5215_v41, %s4730_s14 }
 0x300   : > { %977 = vrot.lane.b32.xlu0 %v5217_v49, %s4730_s14 }
 0x303   : > { %985 = vrot.lane.b32.xlu1 %v5215_v41, %s4732_s16 }
 0x304   : > { %987 = vrot.lane.b32.xlu0 %v5217_v49, %s4732_s16 }
 0x307   : > { %995 = vrot.lane.b32.xlu1 %v5215_v41, %s4733_s17 }
 0x308   : > { %997 = vrot.lane.b32.xlu0 %v5217_v49, %s4733_s17 }
 0x30b   : > { %1009 = vrot.lane.b32.xlu1 %v5215_v41, %s4734_s18 }
 0x30c   : > { %1011 = vrot.lane.b32.xlu0 %v5217_v49, %s4734_s18 }
 0x30f   : > { %1019 = vrot.lane.b32.xlu1 %v5215_v41, %s4735_s19 }
 0x310   : > { %1021 = vrot.lane.b32.xlu0 %v5217_v49, %s4735_s19 }
 0x313   : > { %1029 = vrot.lane.b32.xlu1 %v5215_v41, %s4737_s20 }
 0x314   : > { %1031 = vrot.lane.b32.xlu0 %v5217_v49, %s4737_s20 }
 0x317   : > { %1039 = vrot.lane.b32.xlu1 %v5215_v41, %s4738_s21 }
 0x318   : > { %1041 = vrot.lane.b32.xlu0 %v5217_v49, %s4738_s21 }
 0x31b   : > { %1135 = vperm.xlu1 %4681, %v1132_v52  }
 0x36d   : > { %v966_v55 = vpop.permute.xlu1 %965 }
 0x36e   : > { %v968_v0 = vpop.permute.xlu0 %967 }
 0x36f   : > { %v969_v57 = vsel %vm454_vm0, %v966_v55, %v968_v0  ;;  %v970_v58 = vsel %vm454_vm0, %v968_v0, %v966_v55 }
 0x370   : > { %v971_v11 = vmul.f32 %v970_v58, %v4896_v15  ;;  %v972_v63 = vmul.f32 %v969_v57, %v4899_v16 }
 0x371   : > { %v976_v59 = vpop.permute.xlu1 %975 }
 0x372   : > { %v978_v62 = vpop.permute.xlu0 %977 }
 0x373   : > { %v979_v19 = vsel %vm473_vm1, %v976_v59, %v978_v62  ;;  %v980_v3 = vsel %vm473_vm1, %v978_v62, %v976_v59 }
 0x374   : > { %v981_v8 = vmul.f32 %v980_v3, %v4890_v13  ;;  %v982_v22 = vmul.f32 %v979_v19, %v4893_v14  ;;  %v1005_v3 = vmul.f32 %v5215_v41, %v4945_v43 }
 0x375   : > { %v986_v9 = vpop.permute.xlu1 %985 }
 0x376   : > { %v5274_v10 = vpack.c.bf16 %v981_v8, %v971_v11  ;;  %v988_v23 = vpop.permute.xlu0 %987  ;;  %v5276_v24 = vpack.c.bf16 %v982_v22, %v972_v63 }
 0x377   : > { %v989_v25 = vsel %vm492_vm2, %v986_v9, %v988_v23  ;;  %v990_v26 = vsel %vm492_vm2, %v988_v23, %v986_v9  ;;  %v1006_v9 = vmul.f32 %v5217_v49, %v4948_v44 }
 0x378   : > { %1172 = vmatprep.subr.bf16.mxu0 %v5276_v24  ;;  %1433 = vmatprep.subr.bf16.mxu1 %v5276_v24  ;;  %v991_v52 = vmul.f32 %v990_v26, %v4922_v34  ;;  %v992_v55 = vmul.f32 %v989_v25, %v4927_v36 }
 0x379   : > { %1173 = vmatpush1.bf16.msra.mxu0 %v5274_v10  ;;  %1434 = vmatpush1.bf16.msra.mxu1 %v5274_v10  ;;  %v996_v39 = vpop.permute.xlu1 %995 }
 0x37a   : > { %v998_v40 = vpop.permute.xlu0 %997 }
 0x37b   : > { %v999_v42 = vsel %vm511_vm3, %v996_v39, %v998_v40  ;;  %v1000_v51 = vsel %vm511_vm3, %v998_v40, %v996_v39 }
 0x37c   : > { %v1001_v0 = vmul.f32 %v1000_v51, %v4932_v37  ;;  %v1002_v57 = vmul.f32 %v999_v42, %v4935_v38 }
 0x37d   : > { %v1010_v58 = vpop.permute.xlu1 %1009 }
 0x37e   : > { %v5294_v59 = vpack.c.bf16 %v1001_v0, %v991_v52  ;;  %v1012_v62 = vpop.permute.xlu0 %1011  ;;  %v5296_v19 = vpack.c.bf16 %v1002_v57, %v992_v55 }
 0x37f   : > { %v1013_v11 = vsel %vm542_vm4, %v1010_v58, %v1012_v62  ;;  %v1014_v63 = vsel %vm542_vm4, %v1012_v62, %v1010_v58 }
 0x380   : > { %v1015_v8 = vmul.f32 %v1013_v11, %v4955_v47  ;;  %v1016_v22 = vmul.f32 %v1014_v63, %v4958_v48  ;;  %1174 = vmatprep.subr.bf16.mxu0 %v5296_v19  ;;  %1435 = vmatprep.subr.bf16.mxu1 %v5296_v19 }
 0x381   : > { %1175 = vmatpush1.bf16.msra.mxu0 %v5294_v59  ;;  %1436 = vmatpush1.bf16.msra.mxu1 %v5294_v59  ;;  %v1020_v23 = vpop.permute.xlu1 %1019 }
 0x382   : > { %v1126_v25 = vpack.c.bf16 %v1015_v8, %v1005_v3  ;;  %v1022_v26 = vpop.permute.xlu0 %1021  ;;  %v1127_v39 = vpack.c.bf16 %v1016_v22, %v1006_v9 }
 0x383   : > { %v1023_v40 = vsel %vm561_vm5, %v1020_v23, %v1022_v26  ;;  %v1024_v42 = vsel %vm561_vm5, %v1022_v26, %v1020_v23 }
 0x384   : > { %1176 = vmatprep.subr.bf16.mxu0 %v1127_v39  ;;  %1437 = vmatprep.subr.bf16.mxu1 %v1127_v39  ;;  %v1025_v57 = vmul.f32 %v1023_v40, %v4990_v12  ;;  %v1026_v58 = vmul.f32 %v1024_v42, %v4994_v17 }
 0x385   : > { %v1030_v51 = vpop.permute.xlu1 %1029  ;;  %1177 = vmatpush1.bf16.msra.mxu0 %v1126_v25  ;;  %1438 = vmatpush1.bf16.msra.mxu1 %v1126_v25 }
 0x386   : > { %v1032_v52 = vpop.permute.xlu0 %1031 }
 0x387   : > { %v1033_v55 = vsel %vm580_vm6, %v1030_v51, %v1032_v52  ;;  %v1034_v0 = vsel %vm580_vm6, %v1032_v52, %v1030_v51 }
 0x388   : > { %v1035_v62 = vmul.f32 %v1033_v55, %v4999_v5  ;;  %v1036_v3 = vmul.f32 %v1034_v0, %v5002_v18  ;;  %v4544_v55 = vcombine.low %v5246_v50, %v5246_v50 }
 0x389   : > { %v1040_v11 = vpop.permute.xlu1 %1039 }
 0x38a   : > { %v1128_v63 = vpack.c.bf16 %v1035_v62, %v1025_v57  ;;  %v1042_v8 = vpop.permute.xlu0 %1041  ;;  %v1129_v22 = vpack.c.bf16 %v1036_v3, %v1026_v58 }
 0x38b   : > { %v1043_v9 = vsel %vm599_vm7, %v1040_v11, %v1042_v8  ;;  %v1044_v23 = vsel %vm599_vm7, %v1042_v8, %v1040_v11 }
 0x38c   : > { %v5329_v26 = vmul.f32 %v5022_v27, %v1043_v9  ;;  %v5332_v40 = vmul.f32 %v5027_v28, %v1044_v23  ;;  %1178 = vmatprep.subr.bf16.mxu0 %v1129_v22  ;;  %1439 = vmatprep.subr.bf16.mxu1 %v1129_v22 }
 0x38d   : > { %1179 = vmatpush1.bf16.msra.mxu0 %v1128_v63  ;;  %1440 = vmatpush1.bf16.msra.mxu1 %v1128_v63 }
 0x38e   : > { %v1131_v42 = vpack.c.bf16 %v5332_v40, %v5332_v40  ;;  %v1130_v51 = vpack.c.bf16 %v5329_v26, %v5329_v26 }
 0x390   : > { %4546 = vmatprep.subr.msk.bf16.mxu0 %vm653_vm8, %v1131_v42  ;;  %v1149_v52 = vsel %vm653_vm8, %v1130_v51, 0 }
 0x391   : > { %1181 = vmatpush1.bf16.msra.mxu0 %v1149_v52 }
 0x392   : > { %1753 = vmatprep.subr.bf16.mxu0 %v4918_v30 }
 0x394   : > { %1187 = vmatmul.mubr.bf16.vlgmr.msra.gmra.mrb[8].mxu0 %v4544_v55 }
 0x395   : > { %1754 = vmatpush1.bf16.msra.mxu0 %v4916_v29 }
 0x396   : > { %1755 = vmatprep.subr.bf16.mxu0 %v4966_v54 }
 0x399   : > { %1756 = vmatpush1.bf16.msra.mxu0 %v4964_v53 }
 0x39a   : > { %1757 = vmatprep.subr.bf16.mxu0 %v4987_v7  ;;  %v1136_v29 = vpop.permute.xlu1 %1135 }
 0x39d   : > { %1758 = vmatpush1.bf16.msra.mxu0 %v4985_v4 }
 0x39e   : > { %1759 = vmatprep.subr.bf16.mxu0 %v5031_v32 }
 0x3a1   : > { %1760 = vmatpush1.bf16.msra.mxu0 %v5029_v31 }
 0x3a2   : > { %1761 = vmatprep.subr.bf16.mxu0 %v5113_v35 }
 0x3a5   : > { %1762 = vmatpush1.bf16.msra.mxu0 %v5110_v33 }
 0x3a6   : > { %1763 = vmatprep.subr.bf16.mxu0 %v5133_v56  ;;  %v5373_v56 = vld [vmem:[%s6814_s8] sm:$0xff] }
 0x3a9   : > { %1764 = vmatpush1.bf16.msra.mxu0 %v5131_v1 }
 0x3aa   : > { %1765 = vmatprep.subr.bf16.mxu0 %v5149_v21  ;;  %v5380_v21 = vld [vmem:[%s6816_s10] sm:$0xff] }
 0x3ad   : > { %1766 = vmatpush1.bf16.msra.mxu0 %v5147_v20  ;;  %v4549_v20 = vcombine.high %v5373_v56, %v5373_v56 }
 0x3ae   : > { %1767 = vmatprep.subr.bf16.mxu0 %v5169_v46  ;;  %v1395_v46 = vld [vmem:[%s6815_s9] sm:$0xff] }
 0x3af   : > { %1447 = vmatprep.mubr.bf16.mxu1 %v4549_v20  ;;  %v4552_v20 = vcombine.low %v5380_v21, %v5380_v21 }
 0x3b1   : > { %1768 = vmatpush1.bf16.msra.mxu0 %v5167_v45  ;;  %v4553_v45 = vcombine.high %v5380_v21, %v5380_v21 }
 0x3b2   : > { %1769 = vmatprep.subr.bf16.mxu0 %v5189_v61 }
 0x3b3   : > { %1785 = vmatprep.mubr.bf16.mxu0 %v4553_v45 }
 0x3b5   : > { %1770 = vmatpush1.bf16.msra.mxu0 %v5187_v60 }
 0x3b6   : > { %1771 = vmatprep.subr.bf16.mxu0 %v5276_v24 }
 0x3b9   : > { %1772 = vmatpush1.bf16.msra.mxu0 %v5274_v10 }
 0x3ba   : > { %1773 = vmatprep.subr.bf16.mxu0 %v5296_v19 }
 0x3bd   : > { %1774 = vmatpush1.bf16.msra.mxu0 %v5294_v59 }
 0x3be   : > { %1775 = vmatprep.subr.bf16.mxu0 %v1127_v39 }
 0x3c1   : > { %1776 = vmatpush1.bf16.msra.mxu0 %v1126_v25 }
 0x3c2   : > { %1777 = vmatprep.subr.bf16.mxu0 %v1129_v22 }
 0x3c5   : > { %1778 = vmatpush1.bf16.msra.mxu0 %v1128_v63 }
 0x467   : > { %v1188_v30 = vpop.f32.mrb[8].mxu0 }
 0x468   : > { %v1189_v53 = vadd.f32 %v1188_v30, %v1136_v29  ;;  %v1190_v54 = vpop.f32.mrb[9].mxu0 }
 0x469   : > { %v1191_v4 = vadd.f32 %v1190_v54, %v1136_v29  ;;  %v1192_v7 = vpop.f32.mrb[10].mxu0 }
 0x46a   : > { %vm1195_vm12 = vcmp.ge.f32.partialorder %v1189_v53, 0.0  ;;  %v1197_v31 = vmul.f32 0.2, %v1189_v53  ;;  %v1193_v32 = vpop.f32.mrb[11].mxu0 }
 0x46b   : > { %vm1196_vm14 = vcmp.ge.f32.partialorder %v1191_v4, 0.0  ;;  %v1198_v33 = vmul.f32 0.2, %v1191_v4 }
 0x46c   : > { %v1199_v35 = vsel %vm1195_vm12, %v1189_v53, %v1197_v31 }
 0x46d   : > { %v1200_v1 = vsel %vm1196_vm14, %v1191_v4, %v1198_v33  ;;  %1201 = vrot.lane.b32.xlu0 %v1199_v35, %s4731_s15  ;;  %v1241_v29 = vmul.f32 %v1199_v35, %v4945_v43 }
 0x46e   : > { %1203 = vrot.lane.b32.xlu1 %v1200_v1, %s4731_s15  ;;  %v1242_v54 = vmul.f32 %v1200_v1, %v4948_v44 }
 0x471   : > { %1211 = vrot.lane.b32.xlu0 %v1199_v35, %s4730_s14 }
 0x472   : > { %1213 = vrot.lane.b32.xlu1 %v1200_v1, %s4730_s14 }
 0x475   : > { %1221 = vrot.lane.b32.xlu0 %v1199_v35, %s4732_s16 }
 0x476   : > { %1223 = vrot.lane.b32.xlu1 %v1200_v1, %s4732_s16 }
 0x479   : > { %1231 = vrot.lane.b32.xlu0 %v1199_v35, %s4733_s17 }
 0x47a   : > { %1233 = vrot.lane.b32.xlu1 %v1200_v1, %s4733_s17 }
 0x47d   : > { %1245 = vrot.lane.b32.xlu0 %v1199_v35, %s4734_s18 }
 0x47e   : > { %1247 = vrot.lane.b32.xlu1 %v1200_v1, %s4734_s18 }
 0x481   : > { %1255 = vrot.lane.b32.xlu0 %v1199_v35, %s4735_s19 }
 0x482   : > { %1257 = vrot.lane.b32.xlu1 %v1200_v1, %s4735_s19 }
 0x485   : > { %1265 = vrot.lane.b32.xlu0 %v1199_v35, %s4737_s20 }
 0x486   : > { %1267 = vrot.lane.b32.xlu1 %v1200_v1, %s4737_s20 }
 0x489   : > { %1275 = vrot.lane.b32.xlu0 %v1199_v35, %s4738_s21  ;;  %v4548_v35 = vcombine.low %v5373_v56, %v5373_v56 }
 0x48a   : > { %1277 = vrot.lane.b32.xlu1 %v1200_v1, %s4738_s21 }
 0x48d   : > { %1398 = vperm.xlu0 %4680, %v1395_v46  }
 0x4df   : > { %v1202_v60 = vpop.permute.xlu0 %1201 }
 0x4e0   : > { %v1204_v61 = vpop.permute.xlu1 %1203 }
 0x4e1   : > { %v1205_v50 = vsel %vm454_vm0, %v1202_v60, %v1204_v61  ;;  %v1206_v10 = vsel %vm454_vm0, %v1204_v61, %v1202_v60 }
 0x4e2   : > { %v1207_v24 = vmul.f32 %v1206_v10, %v4896_v15  ;;  %v1208_v59 = vmul.f32 %v1205_v50, %v4899_v16 }
 0x4e3   : > { %v1212_v19 = vpop.permute.xlu0 %1211 }
 0x4e4   : > { %v1385_v25 = vpack.c.bf16 %v1207_v24, %v5329_v26  ;;  %v1214_v39 = vpop.permute.xlu1 %1213  ;;  %v1386_v0 = vpack.c.bf16 %v1208_v59, %v5332_v40 }
 0x4e5   : > { %v1215_v57 = vsel %vm473_vm1, %v1212_v19, %v1214_v39  ;;  %v1216_v58 = vsel %vm473_vm1, %v1214_v39, %v1212_v19 }
 0x4e6   : > { %1441 = vmatprep.subr.bf16.mxu1 %v1386_v0  ;;  %1779 = vmatprep.subr.bf16.mxu0 %v1386_v0  ;;  %v1217_v8 = vmul.f32 %v1216_v58, %v4890_v13  ;;  %v1218_v22 = vmul.f32 %v1215_v57, %v4893_v14 }
 0x4e7   : > { %1442 = vmatpush1.bf16.msra.mxu1 %v1385_v25  ;;  %1780 = vmatpush1.bf16.msra.mxu0 %v1385_v25  ;;  %v1222_v62 = vpop.permute.xlu0 %1221 }
 0x4e8   : > { %v1224_v3 = vpop.permute.xlu1 %1223 }
 0x4e9   : > { %v1225_v11 = vsel %vm492_vm2, %v1222_v62, %v1224_v3  ;;  %v1226_v63 = vsel %vm492_vm2, %v1224_v3, %v1222_v62 }
 0x4ea   : > { %v1227_v9 = vmul.f32 %v1226_v63, %v4922_v34  ;;  %v1228_v23 = vmul.f32 %v1225_v11, %v4927_v36 }
 0x4eb   : > { %v1232_v26 = vpop.permute.xlu0 %1231 }
 0x4ec   : > { %v1387_v40 = vpack.c.bf16 %v1227_v9, %v1217_v8  ;;  %v1234_v42 = vpop.permute.xlu1 %1233  ;;  %v1388_v51 = vpack.c.bf16 %v1228_v23, %v1218_v22 }
 0x4ed   : > { %v1235_v52 = vsel %vm511_vm3, %v1232_v26, %v1234_v42  ;;  %v1236_v55 = vsel %vm511_vm3, %v1234_v42, %v1232_v26  ;;  %v4690_v26 = vld [vmem:[%s6814_s8 + $0x8] ss:$0 sps:$4 sm:$0xff]  }
 0x4ee   : > { %v1237_v30 = vmul.f32 %v1236_v55, %v4932_v37  ;;  %v1238_v53 = vmul.f32 %v1235_v52, %v4935_v38  ;;  %1443 = vmatprep.subr.bf16.mxu1 %v1388_v51  ;;  %1781 = vmatprep.subr.bf16.mxu0 %v1388_v51 }
 0x4ef   : > { %1444 = vmatpush1.bf16.msra.mxu1 %v1387_v40  ;;  %1782 = vmatpush1.bf16.msra.mxu0 %v1387_v40  ;;  %v1246_v4 = vpop.permute.xlu0 %1245 }
 0x4f0   : > { %v1389_v7 = vpack.c.bf16 %v1241_v29, %v1237_v30  ;;  %v1248_v31 = vpop.permute.xlu1 %1247  ;;  %v1390_v32 = vpack.c.bf16 %v1242_v54, %v1238_v53 }
 0x4f1   : > { %v1249_v33 = vsel %vm542_vm4, %v1246_v4, %v1248_v31  ;;  %v1250_v1 = vsel %vm542_vm4, %v1248_v31, %v1246_v4 }
 0x4f2   : > { %1445 = vmatprep.subr.bf16.mxu1 %v1390_v32  ;;  %1783 = vmatprep.subr.bf16.mxu0 %v1390_v32  ;;  %v1251_v60 = vmul.f32 %v1249_v33, %v4955_v47  ;;  %v1252_v56 = vmul.f32 %v1250_v1, %v4958_v48 }
 0x4f3   : > { %v1256_v45 = vpop.permute.xlu0 %1255  ;;  %1446 = vmatpush1.bf16.msra.mxu1 %v1389_v7  ;;  %1784 = vmatpush1.bf16.msra.mxu0 %v1389_v7 }
 0x4f4   : > { %v1258_v46 = vpop.permute.xlu1 %1257 }
 0x4f5   : > { %v1259_v61 = vsel %vm561_vm5, %v1256_v45, %v1258_v46  ;;  %v1260_v50 = vsel %vm561_vm5, %v1258_v46, %v1256_v45 }
 0x4f6   : > { %v1261_v10 = vmul.f32 %v1259_v61, %v4990_v12  ;;  %v1262_v21 = vmul.f32 %v1260_v50, %v4994_v17  ;;  %1448 = vmatmul.mubr.bf16.vlgmr.msra.gmra.mrb[4].mxu1 %v4548_v35  ;;  %1786 = vmatmul.mubr.bf16.vlgmr.msra.gmra.mrb[12].mxu0 %v4552_v20 }
 0x4f7   : > { %v1266_v24 = vpop.permute.xlu0 %1265  ;;  %1488 = vmatprep.mubr.bf16.mxu1 %v6822_v2  ;;  %1826 = vmatprep.mubr.bf16.mxu0 %v6822_v2 }
 0x4f8   : > { %v1391_v59 = vpack.c.bf16 %v1261_v10, %v1251_v60  ;;  %v1268_v19 = vpop.permute.xlu1 %1267  ;;  %v1392_v25 = vpack.c.bf16 %v1262_v21, %v1252_v56 }
 0x4f9   : > { %v1269_v39 = vsel %vm580_vm6, %v1266_v24, %v1268_v19  ;;  %v1270_v0 = vsel %vm580_vm6, %v1268_v19, %v1266_v24 }
 0x4fa   : > { %1456 = vmatprep.subr.bf16.mxu1 %v1392_v25  ;;  %1794 = vmatprep.subr.bf16.mxu0 %v1392_v25  ;;  %v1271_v11 = vmul.f32 %v1269_v39, %v4999_v5  ;;  %v1272_v63 = vmul.f32 %v1270_v0, %v5002_v18 }
 0x4fb   : > { %v1276_v57 = vpop.permute.xlu0 %1275  ;;  %1457 = vmatpush1.bf16.msra.mxu1 %v1391_v59  ;;  %1795 = vmatpush1.bf16.msra.mxu0 %v1391_v59 }
 0x4fc   : > { %v1278_v58 = vpop.permute.xlu1 %1277 }
 0x4fd   : > { %v1279_v62 = vsel %vm599_vm7, %v1276_v57, %v1278_v58  ;;  %v1280_v3 = vsel %vm599_vm7, %v1278_v58, %v1276_v57 }
 0x4fe   : > { %v1281_v8 = vmul.f32 %v5022_v27, %v1279_v62  ;;  %v1282_v22 = vmul.f32 %v5027_v28, %v1280_v3 }
 0x500   : > { %v1393_v9 = vpack.c.bf16 %v1281_v8, %v1271_v11  ;;  %v1394_v23 = vpack.c.bf16 %v1282_v22, %v1272_v63 }
 0x502   : > { %1458 = vmatprep.subr.bf16.mxu1 %v1394_v23  ;;  %1796 = vmatprep.subr.bf16.mxu0 %v1394_v23 }
 0x503   : > { %1459 = vmatpush1.bf16.msra.mxu1 %v1393_v9  ;;  %1797 = vmatpush1.bf16.msra.mxu0 %v1393_v9 }
 0x506   : > { %4551 = vmatmul.mubr.msk.bf16.vlgmr.msra.gmra.mrb[4].mxu1 %vm1411_vm15, %v4690_v26 }
 0x507   : > { %2001 = vmatprep.mubr.bf16.mxu1 %v6822_v2 }
 0x50c   : > { %v1399_v40 = vpop.permute.xlu0 %1398 }
 0x5d9   : > { %v1490_v42 = vpop.f32.mrb[4].mxu1 }
 0x5da   : > { %v4627_v27 = vadd.f32 %v1490_v42, %v1399_v40  ;;  %v1492_v51 = vpop.f32.mrb[5].mxu1 }
 0x5db   : > { %v4628_v28 = vadd.f32 %v1492_v51, %v1399_v40  ;;  %v1494_v52 = vpop.f32.mrb[6].mxu1 }
 0x5dc   : > { %vm1497_vm12 = vcmp.ge.f32.partialorder %v4627_v27, 0.0  ;;  %v1499_v55 = vmul.f32 0.2, %v4627_v27  ;;  %v1495_v29 = vpop.f32.mrb[7].mxu1 }
 0x5dd   : > { %vm1498_vm14 = vcmp.ge.f32.partialorder %v4628_v28, 0.0  ;;  %v1500_v30 = vmul.f32 0.2, %v4628_v28 }
 0x5de   : > { %v1501_v53 = vsel %vm1497_vm12, %v4627_v27, %v1499_v55  ;;  %vm1743_vm12 = vcmask 850944  }
 0x5df   : > { %v1503_v54 = vadd.f32 %v1501_v53, %v5215_v41  ;;  %v1502_v4 = vsel %vm1498_vm14, %v4628_v28, %v1500_v30  ;;  %v1727_v41 = vld [vmem:[%s6817_s11] sm:$0xff] }
 0x5e0   : > { %v1504_v7 = vadd.f32 %v1502_v4, %v5217_v49 }
 0x5e1   : > { %1505 = vrot.lane.b32.xlu1 %v1503_v54, %s4731_s15  ;;  %v1545_v40 = vmul.f32 %v1503_v54, %v4945_v43 }
 0x5e2   : > { %1507 = vrot.lane.b32.xlu0 %v1504_v7, %s4731_s15  ;;  %v1546_v51 = vmul.f32 %v1504_v7, %v4948_v44 }
 0x5e5   : > { %1515 = vrot.lane.b32.xlu1 %v1503_v54, %s4730_s14 }
 0x5e6   : > { %1517 = vrot.lane.b32.xlu0 %v1504_v7, %s4730_s14 }
 0x5e9   : > { %1525 = vrot.lane.b32.xlu1 %v1503_v54, %s4732_s16 }
 0x5ea   : > { %1527 = vrot.lane.b32.xlu0 %v1504_v7, %s4732_s16 }
 0x5ed   : > { %1535 = vrot.lane.b32.xlu1 %v1503_v54, %s4733_s17 }
 0x5ee   : > { %1537 = vrot.lane.b32.xlu0 %v1504_v7, %s4733_s17 }
 0x5f1   : > { %1549 = vrot.lane.b32.xlu1 %v1503_v54, %s4734_s18 }
 0x5f2   : > { %1551 = vrot.lane.b32.xlu0 %v1504_v7, %s4734_s18 }
 0x5f5   : > { %1559 = vrot.lane.b32.xlu1 %v1503_v54, %s4735_s19 }
 0x5f6   : > { %1561 = vrot.lane.b32.xlu0 %v1504_v7, %s4735_s19 }
 0x5f9   : > { %1569 = vrot.lane.b32.xlu1 %v1503_v54, %s4737_s20 }
 0x5fa   : > { %1571 = vrot.lane.b32.xlu0 %v1504_v7, %s4737_s20 }
 0x5fd   : > { %1579 = vrot.lane.b32.xlu1 %v1503_v54, %s4738_s21 }
 0x5fe   : > { %1581 = vrot.lane.b32.xlu0 %v1504_v7, %s4738_s21 }
 0x601   : > { %1730 = vperm.xlu1 %4681, %v1727_v41  }
 0x653   : > { %v1506_v49 = vpop.permute.xlu1 %1505 }
 0x654   : > { %v1508_v31 = vpop.permute.xlu0 %1507 }
 0x655   : > { %v1509_v32 = vsel %vm454_vm0, %v1506_v49, %v1508_v31  ;;  %v1510_v33 = vsel %vm454_vm0, %v1508_v31, %v1506_v49 }
 0x656   : > { %v1511_v46 = vmul.f32 %v1510_v33, %v4896_v15  ;;  %v1512_v60 = vmul.f32 %v1509_v32, %v4899_v16 }
 0x657   : > { %v1516_v35 = vpop.permute.xlu1 %1515 }
 0x658   : > { %v1518_v20 = vpop.permute.xlu0 %1517 }
 0x659   : > { %v1519_v1 = vsel %vm473_vm1, %v1516_v35, %v1518_v20  ;;  %v1520_v45 = vsel %vm473_vm1, %v1518_v20, %v1516_v35 }
 0x65a   : > { %v1521_v61 = vmul.f32 %v1520_v45, %v4890_v13  ;;  %v1522_v50 = vmul.f32 %v1519_v1, %v4893_v14 }
 0x65b   : > { %v1526_v56 = vpop.permute.xlu1 %1525 }
 0x65c   : > { %v1717_v10 = vpack.c.bf16 %v1521_v61, %v1511_v46  ;;  %v1528_v21 = vpop.permute.xlu0 %1527  ;;  %v1718_v24 = vpack.c.bf16 %v1522_v50, %v1512_v60  ;;  %v5532_v61 = vld [vmem:[%s6806_s0 + $0x10] ss:$0 sm:$0xff] }
 0x65d   : > { %v1529_v59 = vsel %vm492_vm2, %v1526_v56, %v1528_v21  ;;  %v1530_v19 = vsel %vm492_vm2, %v1528_v21, %v1526_v56  ;;  %v5538_v56 = vld [vmem:[%s6806_s0 + $0x18] ss:$0 sm:$0xff] }
 0x65e   : > { %1798 = vmatprep.subr.bf16.mxu0 %v1718_v24  ;;  %v1531_v58 = vmul.f32 %v1530_v19, %v4922_v34  ;;  %v1532_v62 = vmul.f32 %v1529_v59, %v4927_v36  ;;  %v4691_v19 = vld [vmem:[%s6816_s10 + $0x8] ss:$0 sps:$4 sm:$0xff]  }
 0x65f   : > { %1799 = vmatpush1.bf16.msra.mxu0 %v1717_v10  ;;  %v1536_v25 = vpop.permute.xlu1 %1535 }
 0x660   : > { %v1538_v39 = vpop.permute.xlu0 %1537 }
 0x661   : > { %v1539_v0 = vsel %vm511_vm3, %v1536_v25, %v1538_v39  ;;  %v1540_v57 = vsel %vm511_vm3, %v1538_v39, %v1536_v25 }
 0x662   : > { %v1541_v3 = vmul.f32 %v1540_v57, %v4932_v37  ;;  %v1542_v11 = vmul.f32 %v1539_v0, %v4935_v38 }
 0x663   : > { %v1550_v63 = vpop.permute.xlu1 %1549 }
 0x664   : > { %v1719_v8 = vpack.c.bf16 %v1541_v3, %v1531_v58  ;;  %v1552_v22 = vpop.permute.xlu0 %1551  ;;  %v1720_v9 = vpack.c.bf16 %v1542_v11, %v1532_v62 }
 0x665   : > { %v1553_v23 = vsel %vm542_vm4, %v1550_v63, %v1552_v22  ;;  %v1554_v26 = vsel %vm542_vm4, %v1552_v22, %v1550_v63 }
 0x666   : > { %v1555_v42 = vmul.f32 %v1553_v23, %v4955_v47  ;;  %v1556_v27 = vmul.f32 %v1554_v26, %v4958_v48  ;;  %1800 = vmatprep.subr.bf16.mxu0 %v1720_v9  ;;  %v4715_v9 = vld [vmem:[%s4825_s30 + $0x8] sm:$0xff] }
 0x667   : > { %1801 = vmatpush1.bf16.msra.mxu0 %v1719_v8  ;;  %v1560_v28 = vpop.permute.xlu1 %1559  ;;  %v4714_v8 = vld [vmem:[%s4825_s30] sm:$0xff]  ;;  %v4558_v26 = vld [vmem:[%s6809_s3 + $0x8] sm:$0xff] }
 0x668   : > { %v1721_v52 = vpack.c.bf16 %v1555_v42, %v1545_v40  ;;  %v1562_v55 = vpop.permute.xlu0 %1561  ;;  %v1722_v29 = vpack.c.bf16 %v1556_v27, %v1546_v51 }
 0x669   : > { %v1563_v30 = vsel %vm561_vm5, %v1560_v28, %v1562_v55  ;;  %v1564_v53 = vsel %vm561_vm5, %v1562_v55, %v1560_v28 }
 0x66a   : > { %1802 = vmatprep.subr.bf16.mxu0 %v1722_v29  ;;  %v1565_v49 = vmul.f32 %v1563_v30, %v4990_v12  ;;  %v1566_v31 = vmul.f32 %v1564_v53, %v4994_v17 }
 0x66b   : > { %v1570_v54 = vpop.permute.xlu1 %1569  ;;  %1803 = vmatpush1.bf16.msra.mxu0 %v1721_v52 }
 0x66c   : > { %v1572_v4 = vpop.permute.xlu0 %1571 }
 0x66d   : > { %v1573_v41 = vsel %vm580_vm6, %v1570_v54, %v1572_v4  ;;  %v1574_v7 = vsel %vm580_vm6, %v1572_v4, %v1570_v54 }
 0x66e   : > { %v1575_v32 = vmul.f32 %v1573_v41, %v4999_v5  ;;  %v1576_v33 = vmul.f32 %v1574_v7, %v5002_v18 }
 0x66f   : > { %v1580_v35 = vpop.permute.xlu1 %1579 }
 0x670   : > { %v1723_v20 = vpack.c.bf16 %v1575_v32, %v1565_v49  ;;  %v1582_v1 = vpop.permute.xlu0 %1581  ;;  %v1724_v45 = vpack.c.bf16 %v1576_v33, %v1566_v31 }
 0x671   : > { %v1583_v46 = vsel %vm599_vm7, %v1580_v35, %v1582_v1  ;;  %v1584_v60 = vsel %vm599_vm7, %v1582_v1, %v1580_v35 }
 0x672   : > { %v1585_v50 = vmul.f32 %v5532_v61, %v1583_v46  ;;  %v1586_v10 = vmul.f32 %v5538_v56, %v1584_v60  ;;  %1804 = vmatprep.subr.bf16.mxu0 %v1724_v45 }
 0x673   : > { %1805 = vmatpush1.bf16.msra.mxu0 %v1723_v20 }
 0x674   : > { %v1725_v21 = vpack.c.bf16 %v1585_v50, %v1585_v50  ;;  %v1726_v24 = vpack.c.bf16 %v1586_v10, %v1586_v10 }
 0x676   : > { %4555 = vmatprep.subr.msk.bf16.mxu0 %vm653_vm8, %v1726_v24  ;;  %v1748_v59 = vsel %vm653_vm8, %v1725_v21, 0 }
 0x677   : > { %1807 = vmatpush1.bf16.msra.mxu0 %v1748_v59 }
 0x67a   : > { %4556 = vmatmul.mubr.msk.bf16.vlgmr.msra.gmra.mrb[12].mxu0 %vm1743_vm12, %v4691_v19 }
 0x680   : > { %v1731_v25 = vpop.permute.xlu1 %1730 }
 0x74d   : > { %v1828_v39 = vpop.f32.mrb[12].mxu0 }
 0x74e   : > { %v4629_v0 = vadd.f32 %v1828_v39, %v1731_v25  ;;  %v1830_v57 = vpop.f32.mrb[13].mxu0 }
 0x74f   : > { %v4630_v58 = vadd.f32 %v1830_v57, %v1731_v25  ;;  %v1832_v62 = vpop.f32.mrb[14].mxu0 }
 0x750   : > { %v1835_v3 = vmul.f32 0.2, %v4629_v0  ;;  %v1833_v11 = vpop.f32.mrb[15].mxu0 }
 0x751   : > { %v1836_v63 = vmul.f32 0.2, %v4630_v58 }
 0x752   : > { %v5548_v22 = vadd.f32 %v4714_v8, %v1835_v3 }
 0x753   : > { %v5551_v23 = vadd.f32 %v4715_v9, %v1836_v63 }
 0x754   : > { %1839 = vrot.lane.b32.xlu0 %v5548_v22, %s4731_s15  ;;  %v1879_v25 = vmul.f32 %v5548_v22, %v4945_v43 }
 0x755   : > { %1841 = vrot.lane.b32.xlu1 %v5551_v23, %s4731_s15  ;;  %v1880_v57 = vmul.f32 %v5551_v23, %v4948_v44 }
 0x758   : > { %1849 = vrot.lane.b32.xlu0 %v5548_v22, %s4730_s14 }
 0x759   : > { %1851 = vrot.lane.b32.xlu1 %v5551_v23, %s4730_s14 }
 0x75c   : > { %1859 = vrot.lane.b32.xlu0 %v5548_v22, %s4732_s16 }
 0x75d   : > { %1861 = vrot.lane.b32.xlu1 %v5551_v23, %s4732_s16 }
 0x760   : > { %1869 = vrot.lane.b32.xlu0 %v5548_v22, %s4733_s17 }
 0x761   : > { %1871 = vrot.lane.b32.xlu1 %v5551_v23, %s4733_s17 }
 0x764   : > { %1883 = vrot.lane.b32.xlu0 %v5548_v22, %s4734_s18 }
 0x765   : > { %1885 = vrot.lane.b32.xlu1 %v5551_v23, %s4734_s18 }
 0x768   : > { %1893 = vrot.lane.b32.xlu0 %v5548_v22, %s4735_s19 }
 0x769   : > { %1895 = vrot.lane.b32.xlu1 %v5551_v23, %s4735_s19 }
 0x76c   : > { %1903 = vrot.lane.b32.xlu0 %v5548_v22, %s4737_s20 }
 0x76d   : > { %1905 = vrot.lane.b32.xlu1 %v5551_v23, %s4737_s20 }
 0x770   : > { %1913 = vrot.lane.b32.xlu0 %v5548_v22, %s4738_s21 }
 0x771   : > { %1915 = vrot.lane.b32.xlu1 %v5551_v23, %s4738_s21 }
 0x774   : > { %1957 = vperm.xlu0 %4680, %v4558_v26  }
 0x7c6   : > { %v1840_v40 = vpop.permute.xlu0 %1839 }
 0x7c7   : > { %v1842_v42 = vpop.permute.xlu1 %1841 }
 0x7c8   : > { %v1843_v27 = vsel %vm454_vm0, %v1840_v40, %v1842_v42  ;;  %v1844_v51 = vsel %vm454_vm0, %v1842_v42, %v1840_v40 }
 0x7c9   : > { %v1845_v30 = vmul.f32 %v1844_v51, %v4896_v15  ;;  %v1846_v53 = vmul.f32 %v1843_v27, %v4899_v16 }
 0x7ca   : > { %v1850_v28 = vpop.permute.xlu0 %1849 }
 0x7cb   : > { %v1852_v52 = vpop.permute.xlu1 %1851 }
 0x7cc   : > { %v1853_v55 = vsel %vm473_vm1, %v1850_v28, %v1852_v52  ;;  %v1854_v29 = vsel %vm473_vm1, %v1852_v52, %v1850_v28 }
 0x7cd   : > { %v1855_v54 = vmul.f32 %v1854_v29, %v4890_v13  ;;  %v1856_v4 = vmul.f32 %v1853_v55, %v4893_v14 }
 0x7ce   : > { %v1860_v41 = vpop.permute.xlu0 %1859 }
 0x7cf   : > { %v5600_v7 = vpack.c.bf16 %v1855_v54, %v1845_v30  ;;  %v5602_v49 = vpack.c.bf16 %v1856_v4, %v1846_v53  ;;  %v1862_v31 = vpop.permute.xlu1 %1861 }
 0x7d0   : > { %v1863_v32 = vsel %vm492_vm2, %v1860_v41, %v1862_v31  ;;  %v1864_v33 = vsel %vm492_vm2, %v1862_v31, %v1860_v41 }
 0x7d1   : > { %1969 = vmatprep.subr.bf16.mxu1 %v5602_v49  ;;  %2727 = vmatprep.subr.bf16.mxu0 %v5602_v49  ;;  %v1865_v46 = vmul.f32 %v1864_v33, %v4922_v34  ;;  %v1866_v60 = vmul.f32 %v1863_v32, %v4927_v36 }
 0x7d2   : > { %1970 = vmatpush1.bf16.msra.mxu1 %v5600_v7  ;;  %2728 = vmatpush1.bf16.msra.mxu0 %v5600_v7  ;;  %v1870_v35 = vpop.permute.xlu0 %1869 }
 0x7d3   : > { %v1872_v20 = vpop.permute.xlu1 %1871 }
 0x7d4   : > { %v1873_v1 = vsel %vm511_vm3, %v1870_v35, %v1872_v20  ;;  %v1874_v45 = vsel %vm511_vm3, %v1872_v20, %v1870_v35 }
 0x7d5   : > { %v1875_v50 = vmul.f32 %v1874_v45, %v4932_v37  ;;  %v1876_v10 = vmul.f32 %v1873_v1, %v4935_v38  ;;  %v4557_v45 = vld [vmem:[%s6808_s2 + $0x4] sm:$0xf] }
 0x7d6   : > { %v1884_v21 = vpop.permute.xlu0 %1883 }
 0x7d7   : > { %v5620_v24 = vpack.c.bf16 %v1875_v50, %v1865_v46  ;;  %v5622_v59 = vpack.c.bf16 %v1876_v10, %v1866_v60  ;;  %v1886_v19 = vpop.permute.xlu1 %1885 }
 0x7d8   : > { %v1887_v39 = vsel %vm542_vm4, %v1884_v21, %v1886_v19  ;;  %v1888_v0 = vsel %vm542_vm4, %v1886_v19, %v1884_v21 }
 0x7d9   : > { %v1889_v58 = vmul.f32 %v1887_v39, %v4955_v47  ;;  %v1890_v62 = vmul.f32 %v1888_v0, %v4958_v48  ;;  %1971 = vmatprep.subr.bf16.mxu1 %v5622_v59  ;;  %2729 = vmatprep.subr.bf16.mxu0 %v5622_v59 }
 0x7da   : > { %1972 = vmatpush1.bf16.msra.mxu1 %v5620_v24  ;;  %2730 = vmatpush1.bf16.msra.mxu0 %v5620_v24  ;;  %v1894_v3 = vpop.permute.xlu0 %1893 }
 0x7db   : > { %v5638_v11 = vpack.c.bf16 %v1889_v58, %v1879_v25  ;;  %v5640_v63 = vpack.c.bf16 %v1890_v62, %v1880_v57  ;;  %v1896_v8 = vpop.permute.xlu1 %1895  ;;  %v5701_v62 = vld [vmem:[%s6810_s4 + $0x8] sm:$0xff] }
 0x7dc   : > { %v1897_v9 = vsel %vm561_vm5, %v1894_v3, %v1896_v8  ;;  %v1898_v26 = vsel %vm561_vm5, %v1896_v8, %v1894_v3  ;;  %v4564_v3 = vcombine.high %v5701_v62, %v5701_v62  ;;  %v4562_v8 = vld [vmem:[%s6811_s5 + $0x8] sm:$0xff] }
 0x7dd   : > { %1973 = vmatprep.subr.bf16.mxu1 %v5640_v63  ;;  %2731 = vmatprep.subr.bf16.mxu0 %v5640_v63  ;;  %v1899_v28 = vmul.f32 %v1897_v9, %v4990_v12  ;;  %v1900_v52 = vmul.f32 %v1898_v26, %v4994_v17 }
 0x7de   : > { %v1904_v40 = vpop.permute.xlu0 %1903  ;;  %1974 = vmatpush1.bf16.msra.mxu1 %v5638_v11  ;;  %2732 = vmatpush1.bf16.msra.mxu0 %v5638_v11 }
 0x7df   : > { %v1906_v42 = vpop.permute.xlu1 %1905 }
 0x7e0   : > { %v1907_v27 = vsel %vm580_vm6, %v1904_v40, %v1906_v42  ;;  %v1908_v51 = vsel %vm580_vm6, %v1906_v42, %v1904_v40 }
 0x7e1   : > { %v1909_v55 = vmul.f32 %v1907_v27, %v4999_v5  ;;  %v1910_v29 = vmul.f32 %v1908_v51, %v5002_v18 }
 0x7e2   : > { %v1914_v30 = vpop.permute.xlu0 %1913 }
 0x7e3   : > { %v5658_v53 = vpack.c.bf16 %v1909_v55, %v1899_v28  ;;  %v5660_v54 = vpack.c.bf16 %v1910_v29, %v1900_v52  ;;  %v1916_v4 = vpop.permute.xlu1 %1915 }
 0x7e4   : > { %v1917_v41 = vsel %vm599_vm7, %v1914_v30, %v1916_v4  ;;  %v1918_v31 = vsel %vm599_vm7, %v1916_v4, %v1914_v30 }
 0x7e5   : > { %v1919_v32 = vmul.f32 %v5532_v61, %v1917_v41  ;;  %v1920_v33 = vmul.f32 %v5538_v56, %v1918_v31  ;;  %1975 = vmatprep.subr.bf16.mxu1 %v5660_v54  ;;  %2733 = vmatprep.subr.bf16.mxu0 %v5660_v54 }
 0x7e6   : > { %1976 = vmatpush1.bf16.msra.mxu1 %v5658_v53  ;;  %2734 = vmatpush1.bf16.msra.mxu0 %v5658_v53 }
 0x7e7   : > { %v1952_v35 = vpack.c.bf16 %v1920_v33, %v1920_v33  ;;  %v1951_v20 = vpack.c.bf16 %v1919_v32, %v1919_v32 }
 0x7e9   : > { %4559 = vmatprep.subr.msk.bf16.mxu1 %vm653_vm8, %v1952_v35  ;;  %v1964_v1 = vsel %vm653_vm8, %v1951_v20, 0 }
 0x7ea   : > { %1978 = vmatpush1.bf16.msra.mxu1 %v1964_v1 }
 0x7eb   : > { %2172 = vmatprep.subr.bf16.mxu1 %v5602_v49 }
 0x7ed   : > { %4560 = vmatmul.mubr.msk.bf16.vlgmr.msra.gmra.mrb[8].mxu1 %vm6821_vm9, %v4557_v45 }
 0x7ee   : > { %2173 = vmatpush1.bf16.msra.mxu1 %v5600_v7  ;;  %4565 = vmatprep.mubr.msk.bf16.mxu1 %vm858_vm13, %v4564_v3 }
 0x7ef   : > { %2174 = vmatprep.subr.bf16.mxu1 %v5622_v59 }
 0x7f2   : > { %2175 = vmatpush1.bf16.msra.mxu1 %v5620_v24 }
 0x7f3   : > { %2176 = vmatprep.subr.bf16.mxu1 %v5640_v63  ;;  %v1958_v46 = vpop.permute.xlu0 %1957 }
 0x7f6   : > { %2177 = vmatpush1.bf16.msra.mxu1 %v5638_v11 }
 0x7f7   : > { %2178 = vmatprep.subr.bf16.mxu1 %v5660_v54 }
 0x7fa   : > { %2179 = vmatpush1.bf16.msra.mxu1 %v5658_v53 }
 0x8c0   : > { %v2003_v60 = vpop.f32.mrb[8].mxu1 }
 0x8c1   : > { %v2004_v50 = vadd.f32 %v2003_v60, %v1958_v46  ;;  %v2005_v10 = vpop.f32.mrb[9].mxu1 }
 0x8c2   : > { %v2006_v21 = vadd.f32 %v2005_v10, %v1958_v46  ;;  %v2007_v19 = vpop.f32.mrb[10].mxu1 }
 0x8c3   : > { %vm2010_vm14 = vcmp.ge.f32.partialorder %v2004_v50, 0.0  ;;  %v2012_v25 = vmul.f32 0.2, %v2004_v50  ;;  %v2008_v39 = vpop.f32.mrb[11].mxu1 }
 0x8c4   : > { %vm2011_vm9 = vcmp.ge.f32.partialorder %v2006_v21, 0.0  ;;  %v2013_v0 = vmul.f32 0.2, %v2006_v21 }
 0x8c5   : > { %v2014_v57 = vsel %vm2010_vm14, %v2004_v50, %v2012_v25 }
 0x8c6   : > { %v2015_v58 = vsel %vm2011_vm9, %v2006_v21, %v2013_v0  ;;  %2016 = vrot.lane.b32.xlu1 %v2014_v57, %s4731_s15  ;;  %v2056_v25 = vmul.f32 %v2014_v57, %v4945_v43 }
 0x8c7   : > { %2018 = vrot.lane.b32.xlu0 %v2015_v58, %s4731_s15  ;;  %v2057_v3 = vmul.f32 %v2015_v58, %v4948_v44 }
 0x8ca   : > { %2026 = vrot.lane.b32.xlu1 %v2014_v57, %s4730_s14 }
 0x8cb   : > { %2028 = vrot.lane.b32.xlu0 %v2015_v58, %s4730_s14 }
 0x8ce   : > { %2036 = vrot.lane.b32.xlu1 %v2014_v57, %s4732_s16 }
 0x8cf   : > { %2038 = vrot.lane.b32.xlu0 %v2015_v58, %s4732_s16 }
 0x8d2   : > { %2046 = vrot.lane.b32.xlu1 %v2014_v57, %s4733_s17 }
 0x8d3   : > { %2048 = vrot.lane.b32.xlu0 %v2015_v58, %s4733_s17 }
 0x8d6   : > { %2060 = vrot.lane.b32.xlu1 %v2014_v57, %s4734_s18 }
 0x8d7   : > { %2062 = vrot.lane.b32.xlu0 %v2015_v58, %s4734_s18 }
 0x8da   : > { %2070 = vrot.lane.b32.xlu1 %v2014_v57, %s4735_s19 }
 0x8db   : > { %2072 = vrot.lane.b32.xlu0 %v2015_v58, %s4735_s19 }
 0x8de   : > { %2080 = vrot.lane.b32.xlu1 %v2014_v57, %s4737_s20 }
 0x8df   : > { %2082 = vrot.lane.b32.xlu0 %v2015_v58, %s4737_s20 }
 0x8e2   : > { %2090 = vrot.lane.b32.xlu1 %v2014_v57, %s4738_s21 }
 0x8e3   : > { %2092 = vrot.lane.b32.xlu0 %v2015_v58, %s4738_s21 }
 0x8e6   : > { %2160 = vperm.xlu1 %4681, %v4562_v8  }
 0x938   : > { %v2017_v9 = vpop.permute.xlu1 %2016 }
 0x939   : > { %v2019_v26 = vpop.permute.xlu0 %2018 }
 0x93a   : > { %v2020_v40 = vsel %vm454_vm0, %v2017_v9, %v2019_v26  ;;  %v2021_v42 = vsel %vm454_vm0, %v2019_v26, %v2017_v9 }
 0x93b   : > { %v2022_v27 = vmul.f32 %v2021_v42, %v4896_v15  ;;  %v2023_v51 = vmul.f32 %v2020_v40, %v4899_v16 }
 0x93c   : > { %v2027_v28 = vpop.permute.xlu1 %2026 }
 0x93d   : > { %v5719_v52 = vpack.c.bf16 %v2022_v27, %v1919_v32  ;;  %v5721_v55 = vpack.c.bf16 %v2023_v51, %v1920_v33  ;;  %v2029_v29 = vpop.permute.xlu0 %2028 }
 0x93e   : > { %v2030_v30 = vsel %vm473_vm1, %v2027_v28, %v2029_v29  ;;  %v2031_v4 = vsel %vm473_vm1, %v2029_v29, %v2027_v28 }
 0x93f   : > { %2180 = vmatprep.subr.bf16.mxu1 %v5721_v55  ;;  %2735 = vmatprep.subr.bf16.mxu0 %v5721_v55  ;;  %v2032_v35 = vmul.f32 %v2031_v4, %v4890_v13  ;;  %v2033_v20 = vmul.f32 %v2030_v30, %v4893_v14 }
 0x940   : > { %2181 = vmatpush1.bf16.msra.mxu1 %v5719_v52  ;;  %2736 = vmatpush1.bf16.msra.mxu0 %v5719_v52  ;;  %v2037_v41 = vpop.permute.xlu1 %2036 }
 0x941   : > { %v2039_v31 = vpop.permute.xlu0 %2038 }
 0x942   : > { %v2040_v32 = vsel %vm492_vm2, %v2037_v41, %v2039_v31  ;;  %v2041_v33 = vsel %vm492_vm2, %v2039_v31, %v2037_v41 }
 0x943   : > { %v2042_v1 = vmul.f32 %v2041_v33, %v4922_v34  ;;  %v2043_v45 = vmul.f32 %v2040_v32, %v4927_v36 }
 0x944   : > { %v2047_v46 = vpop.permute.xlu1 %2046 }
 0x945   : > { %v5739_v60 = vpack.c.bf16 %v2042_v1, %v2032_v35  ;;  %v5741_v50 = vpack.c.bf16 %v2043_v45, %v2033_v20  ;;  %v2049_v10 = vpop.permute.xlu0 %2048 }
 0x946   : > { %v2050_v21 = vsel %vm511_vm3, %v2047_v46, %v2049_v10  ;;  %v2051_v19 = vsel %vm511_vm3, %v2049_v10, %v2047_v46 }
 0x947   : > { %v2052_v39 = vmul.f32 %v2051_v19, %v4932_v37  ;;  %v2053_v0 = vmul.f32 %v2050_v21, %v4935_v38  ;;  %2182 = vmatprep.subr.bf16.mxu1 %v5741_v50  ;;  %2737 = vmatprep.subr.bf16.mxu0 %v5741_v50 }
 0x948   : > { %2183 = vmatpush1.bf16.msra.mxu1 %v5739_v60  ;;  %2738 = vmatpush1.bf16.msra.mxu0 %v5739_v60  ;;  %v2061_v8 = vpop.permute.xlu1 %2060 }
 0x949   : > { %v5755_v9 = vpack.c.bf16 %v2056_v25, %v2052_v39  ;;  %v5757_v26 = vpack.c.bf16 %v2057_v3, %v2053_v0  ;;  %v2063_v57 = vpop.permute.xlu0 %2062 }
 0x94a   : > { %v2064_v58 = vsel %vm542_vm4, %v2061_v8, %v2063_v57  ;;  %v2065_v40 = vsel %vm542_vm4, %v2063_v57, %v2061_v8  ;;  %v2222_v57 = vpack.c.bf16 %v5551_v23, %v5551_v23 }
 0x94b   : > { %2184 = vmatprep.subr.bf16.mxu1 %v5757_v26  ;;  %2739 = vmatprep.subr.bf16.mxu0 %v5757_v26  ;;  %v2066_v29 = vmul.f32 %v2064_v58, %v4955_v47  ;;  %v2067_v30 = vmul.f32 %v2065_v40, %v4958_v48  ;;  %v4563_v58 = vcombine.low %v5701_v62, %v5701_v62  ;;  %v4566_v62 = vld [vmem:[%s6818_s12 + $0x4] sm:$0xf] }
 0x94c   : > { %v2071_v42 = vpop.permute.xlu1 %2070  ;;  %2185 = vmatpush1.bf16.msra.mxu1 %v5755_v9  ;;  %2740 = vmatpush1.bf16.msra.mxu0 %v5755_v9  ;;  %v2221_v40 = vpack.c.bf16 %v5548_v22, %v5548_v22 }
 0x94d   : > { %v2073_v27 = vpop.permute.xlu0 %2072 }
 0x94e   : > { %v2074_v51 = vsel %vm561_vm5, %v2071_v42, %v2073_v27  ;;  %v2075_v28 = vsel %vm561_vm5, %v2073_v27, %v2071_v42  ;;  %v2227_v42 = vsel %vm653_vm8, %v2221_v40, 0 }
 0x94f   : > { %v2076_v4 = vmul.f32 %v2074_v51, %v4990_v12  ;;  %v2077_v41 = vmul.f32 %v2075_v28, %v4994_v17 }
 0x950   : > { %v2081_v31 = vpop.permute.xlu1 %2080 }
 0x951   : > { %v5775_v32 = vpack.c.bf16 %v2076_v4, %v2066_v29  ;;  %v5777_v33 = vpack.c.bf16 %v2077_v41, %v2067_v30  ;;  %v2083_v35 = vpop.permute.xlu0 %2082 }
 0x952   : > { %v2084_v20 = vsel %vm580_vm6, %v2081_v31, %v2083_v35  ;;  %v2085_v1 = vsel %vm580_vm6, %v2083_v35, %v2081_v31 }
 0x953   : > { %2186 = vmatprep.subr.bf16.mxu1 %v5777_v33  ;;  %2741 = vmatprep.subr.bf16.mxu0 %v5777_v33  ;;  %v2086_v19 = vmul.f32 %v2084_v20, %v4999_v5  ;;  %v2087_v25 = vmul.f32 %v2085_v1, %v5002_v18 }
 0x954   : > { %v2091_v45 = vpop.permute.xlu1 %2090  ;;  %2187 = vmatpush1.bf16.msra.mxu1 %v5775_v32  ;;  %2742 = vmatpush1.bf16.msra.mxu0 %v5775_v32 }
 0x955   : > { %v2093_v46 = vpop.permute.xlu0 %2092 }
 0x956   : > { %v2094_v10 = vsel %vm599_vm7, %v2091_v45, %v2093_v46  ;;  %v2095_v21 = vsel %vm599_vm7, %v2093_v46, %v2091_v45 }
 0x957   : > { %v2096_v39 = vmul.f32 %v5532_v61, %v2094_v10  ;;  %v2097_v0 = vmul.f32 %v5538_v56, %v2095_v21 }
 0x959   : > { %v5795_v3 = vpack.c.bf16 %v2096_v39, %v2086_v19  ;;  %v5797_v8 = vpack.c.bf16 %v2097_v0, %v2087_v25  ;;  %v5865_v39 = vld [vmem:[%s6812_s6 + $0x8] sm:$0xff] }
 0x95a   : > { %v4572_v0 = vcombine.high %v5865_v39, %v5865_v39 }
 0x95b   : > { %2188 = vmatprep.subr.bf16.mxu1 %v5797_v8  ;;  %2743 = vmatprep.subr.bf16.mxu0 %v5797_v8 }
 0x95c   : > { %2189 = vmatpush1.bf16.msra.mxu1 %v5795_v3  ;;  %2744 = vmatpush1.bf16.msra.mxu0 %v5795_v3 }
 0x95d   : > { %4567 = vmatprep.subr.msk.bf16.mxu1 %vm653_vm8, %v2222_v57  ;;  %v4570_v57 = vld [vmem:[%s6813_s7 + $0x8] sm:$0xff] }
 0x95f   : > { %2205 = vmatmul.mubr.bf16.vlgmr.msra.gmra.mrb[12].mxu1 %v4563_v58 }
 0x960   : > { %2233 = vmatpush1.bf16.msra.mxu1 %v2227_v42  ;;  %2264 = vmatprep.mubr.bf16.mxu1 %v6822_v2 }
 0x961   : > { %2465 = vmatprep.subr.bf16.mxu1 %v5602_v49 }
 0x965   : > { %v2161_v27 = vpop.permute.xlu1 %2160 }
 0x967   : > { %4568 = vmatmul.mubr.msk.bf16.vlgmr.msra.gmra.mrb[16].mxu1 %vm912_vm10, %v4566_v62 }
 0x968   : > { %2466 = vmatpush1.bf16.msra.mxu1 %v5600_v7  ;;  %4574 = vmatprep.mubr.msk.bf16.mxu1 %vm1144_vm11, %v4572_v0 }
 0x969   : > { %2467 = vmatprep.subr.bf16.mxu1 %v5622_v59 }
 0x96c   : > { %2468 = vmatpush1.bf16.msra.mxu1 %v5620_v24 }
 0x96d   : > { %2469 = vmatprep.subr.bf16.mxu1 %v5640_v63 }
 0x970   : > { %2470 = vmatpush1.bf16.msra.mxu1 %v5638_v11 }
 0x971   : > { %2471 = vmatprep.subr.bf16.mxu1 %v5660_v54 }
 0x974   : > { %2472 = vmatpush1.bf16.msra.mxu1 %v5658_v53 }
 0x975   : > { %2473 = vmatprep.subr.bf16.mxu1 %v5721_v55 }
 0x978   : > { %2474 = vmatpush1.bf16.msra.mxu1 %v5719_v52 }
 0x979   : > { %2475 = vmatprep.subr.bf16.mxu1 %v5741_v50 }
 0x97c   : > { %2476 = vmatpush1.bf16.msra.mxu1 %v5739_v60 }
 0x97d   : > { %2477 = vmatprep.subr.bf16.mxu1 %v5757_v26 }
 0x980   : > { %2478 = vmatpush1.bf16.msra.mxu1 %v5755_v9 }
 0x981   : > { %2479 = vmatprep.subr.bf16.mxu1 %v5777_v33 }
 0x984   : > { %2480 = vmatpush1.bf16.msra.mxu1 %v5775_v32 }
 0x985   : > { %2481 = vmatprep.subr.bf16.mxu1 %v5797_v8 }
 0x988   : > { %2482 = vmatpush1.bf16.msra.mxu1 %v5795_v3 }
 0xa32   : > { %v2206_v51 = vpop.f32.mrb[12].mxu1 }
 0xa33   : > { %v2207_v28 = vadd.f32 %v2206_v51, %v2161_v27  ;;  %v2208_v29 = vpop.f32.mrb[13].mxu1 }
 0xa34   : > { %v2209_v30 = vadd.f32 %v2208_v29, %v2161_v27  ;;  %v2210_v4 = vpop.f32.mrb[14].mxu1 }
 0xa35   : > { %v2211_v41 = vpop.f32.mrb[15].mxu1  ;;  %v2215_v31 = vmul.f32 0.2, %v2207_v28  ;;  %vm2213_vm9 = vcmp.ge.f32.partialorder %v2207_v28, 0.0 }
 0xa36   : > { %v2216_v35 = vmul.f32 0.2, %v2209_v30  ;;  %vm2214_vm14 = vcmp.ge.f32.partialorder %v2209_v30, 0.0 }
 0xa37   : > { %v2217_v20 = vsel %vm2213_vm9, %v2207_v28, %v2215_v31 }
 0xa38   : > { %v2218_v46 = vsel %vm2214_vm14, %v2209_v30, %v2216_v35 }
 0xa3a   : > { %v2266_v1 = vpop.f32.mrb[16].mxu1 }
 0xa3b   : > { %v5834_v45 = vadd.f32 %v2266_v1, %v2217_v20  ;;  %v2268_v10 = vpop.f32.mrb[17].mxu1 }
 0xa3c   : > { %v5836_v21 = vadd.f32 %v2268_v10, %v2218_v46  ;;  %v2270_v19 = vpop.f32.mrb[18].mxu1 }
 0xa3d   : > { %v2271_v25 = vpop.f32.mrb[19].mxu1  ;;  %2275 = vrot.lane.b32.xlu0 %v5834_v45, %s4731_s15 }
 0xa3e   : > { %2277 = vrot.lane.b32.xlu1 %v5836_v21, %s4731_s15 }
 0xa41   : > { %2285 = vrot.lane.b32.xlu0 %v5834_v45, %s4730_s14 }
 0xa42   : > { %2287 = vrot.lane.b32.xlu1 %v5836_v21, %s4730_s14 }
 0xa45   : > { %2295 = vrot.lane.b32.xlu0 %v5834_v45, %s4732_s16 }
 0xa46   : > { %2297 = vrot.lane.b32.xlu1 %v5836_v21, %s4732_s16 }
 0xa49   : > { %2305 = vrot.lane.b32.xlu0 %v5834_v45, %s4733_s17 }
 0xa4a   : > { %2307 = vrot.lane.b32.xlu1 %v5836_v21, %s4733_s17 }
 0xa4d   : > { %2319 = vrot.lane.b32.xlu0 %v5834_v45, %s4734_s18 }
 0xa4e   : > { %2321 = vrot.lane.b32.xlu1 %v5836_v21, %s4734_s18 }
 0xa51   : > { %2329 = vrot.lane.b32.xlu0 %v5834_v45, %s4735_s19 }
 0xa52   : > { %2331 = vrot.lane.b32.xlu1 %v5836_v21, %s4735_s19 }
 0xa55   : > { %2339 = vrot.lane.b32.xlu0 %v5834_v45, %s4737_s20 }
 0xa56   : > { %2341 = vrot.lane.b32.xlu1 %v5836_v21, %s4737_s20 }
 0xa59   : > { %2349 = vrot.lane.b32.xlu0 %v5834_v45, %s4738_s21 }
 0xa5a   : > { %2351 = vrot.lane.b32.xlu1 %v5836_v21, %s4738_s21 }
 0xa5d   : > { %2447 = vperm.xlu0 %4680, %v4570_v57  }
 0xaaf   : > { %v2276_v58 = vpop.permute.xlu0 %2275 }
 0xab0   : > { %v2278_v40 = vpop.permute.xlu1 %2277 }
 0xab1   : > { %v2279_v42 = vsel %vm454_vm0, %v2276_v58, %v2278_v40  ;;  %v2280_v62 = vsel %vm454_vm0, %v2278_v40, %v2276_v58 }
 0xab2   : > { %v2281_v30 = vmul.f32 %v2280_v62, %v4896_v15  ;;  %v2282_v4 = vmul.f32 %v2279_v42, %v4899_v16 }
 0xab3   : > { %v2286_v27 = vpop.permute.xlu0 %2285 }
 0xab4   : > { %v2288_v51 = vpop.permute.xlu1 %2287 }
 0xab5   : > { %v2289_v28 = vsel %vm473_vm1, %v2286_v27, %v2288_v51  ;;  %v2290_v29 = vsel %vm473_vm1, %v2288_v51, %v2286_v27 }
 0xab6   : > { %v2291_v41 = vmul.f32 %v2290_v29, %v4890_v13  ;;  %v2292_v31 = vmul.f32 %v2289_v28, %v4893_v14 }
 0xab7   : > { %v2296_v35 = vpop.permute.xlu0 %2295 }
 0xab8   : > { %v5893_v20 = vpack.c.bf16 %v2291_v41, %v2281_v30  ;;  %v2298_v1 = vpop.permute.xlu1 %2297  ;;  %v5895_v46 = vpack.c.bf16 %v2292_v31, %v2282_v4  ;;  %v2315_v4 = vmul.f32 %v5834_v45, %v4945_v43 }
 0xab9   : > { %v2299_v10 = vsel %vm492_vm2, %v2296_v35, %v2298_v1  ;;  %v2300_v19 = vsel %vm492_vm2, %v2298_v1, %v2296_v35 }
 0xaba   : > { %2483 = vmatprep.subr.bf16.mxu1 %v5895_v46  ;;  %2745 = vmatprep.subr.bf16.mxu0 %v5895_v46  ;;  %v2301_v40 = vmul.f32 %v2300_v19, %v4922_v34  ;;  %v2302_v42 = vmul.f32 %v2299_v10, %v4927_v36  ;;  %v2316_v10 = vmul.f32 %v5836_v21, %v4948_v44 }
 0xabb   : > { %2484 = vmatpush1.bf16.msra.mxu1 %v5893_v20  ;;  %2746 = vmatpush1.bf16.msra.mxu0 %v5893_v20  ;;  %v2306_v25 = vpop.permute.xlu0 %2305 }
 0xabc   : > { %v2308_v0 = vpop.permute.xlu1 %2307 }
 0xabd   : > { %v2309_v57 = vsel %vm511_vm3, %v2306_v25, %v2308_v0  ;;  %v2310_v58 = vsel %vm511_vm3, %v2308_v0, %v2306_v25 }
 0xabe   : > { %v2311_v62 = vmul.f32 %v2310_v58, %v4932_v37  ;;  %v2312_v27 = vmul.f32 %v2309_v57, %v4935_v38 }
 0xabf   : > { %v2320_v51 = vpop.permute.xlu0 %2319 }
 0xac0   : > { %v5913_v28 = vpack.c.bf16 %v2311_v62, %v2301_v40  ;;  %v2322_v29 = vpop.permute.xlu1 %2321  ;;  %v5915_v30 = vpack.c.bf16 %v2312_v27, %v2302_v42 }
 0xac1   : > { %v2323_v41 = vsel %vm542_vm4, %v2320_v51, %v2322_v29  ;;  %v2324_v31 = vsel %vm542_vm4, %v2322_v29, %v2320_v51 }
 0xac2   : > { %v2325_v35 = vmul.f32 %v2323_v41, %v4955_v47  ;;  %v2326_v1 = vmul.f32 %v2324_v31, %v4958_v48  ;;  %2485 = vmatprep.subr.bf16.mxu1 %v5915_v30  ;;  %2747 = vmatprep.subr.bf16.mxu0 %v5915_v30 }
 0xac3   : > { %2486 = vmatpush1.bf16.msra.mxu1 %v5913_v28  ;;  %2748 = vmatpush1.bf16.msra.mxu0 %v5913_v28  ;;  %v2330_v19 = vpop.permute.xlu0 %2329 }
 0xac4   : > { %v2437_v25 = vpack.c.bf16 %v2325_v35, %v2315_v4  ;;  %v2332_v0 = vpop.permute.xlu1 %2331  ;;  %v2438_v57 = vpack.c.bf16 %v2326_v1, %v2316_v10 }
 0xac5   : > { %v2333_v58 = vsel %vm561_vm5, %v2330_v19, %v2332_v0  ;;  %v2334_v40 = vsel %vm561_vm5, %v2332_v0, %v2330_v19 }
 0xac6   : > { %2487 = vmatprep.subr.bf16.mxu1 %v2438_v57  ;;  %2749 = vmatprep.subr.bf16.mxu0 %v2438_v57  ;;  %v2335_v29 = vmul.f32 %v2333_v58, %v4990_v12  ;;  %v2336_v4 = vmul.f32 %v2334_v40, %v4994_v17 }
 0xac7   : > { %v2340_v42 = vpop.permute.xlu0 %2339  ;;  %2488 = vmatpush1.bf16.msra.mxu1 %v2437_v25  ;;  %2750 = vmatpush1.bf16.msra.mxu0 %v2437_v25 }
 0xac8   : > { %v2342_v62 = vpop.permute.xlu1 %2341 }
 0xac9   : > { %v2343_v27 = vsel %vm580_vm6, %v2340_v42, %v2342_v62  ;;  %v2344_v51 = vsel %vm580_vm6, %v2342_v62, %v2340_v42 }
 0xaca   : > { %v2345_v41 = vmul.f32 %v2343_v27, %v4999_v5  ;;  %v2346_v31 = vmul.f32 %v2344_v51, %v5002_v18 }
 0xacb   : > { %v2350_v35 = vpop.permute.xlu0 %2349 }
 0xacc   : > { %v2439_v1 = vpack.c.bf16 %v2345_v41, %v2335_v29  ;;  %v2352_v10 = vpop.permute.xlu1 %2351  ;;  %v2440_v19 = vpack.c.bf16 %v2346_v31, %v2336_v4 }
 0xacd   : > { %v2353_v0 = vsel %vm599_vm7, %v2350_v35, %v2352_v10  ;;  %v2354_v2 = vsel %vm599_vm7, %v2352_v10, %v2350_v35 }
 0xace   : > { %v5948_v42 = vmul.f32 %v5532_v61, %v2353_v0  ;;  %v5951_v58 = vmul.f32 %v5538_v56, %v2354_v2  ;;  %2489 = vmatprep.subr.bf16.mxu1 %v2440_v19  ;;  %2751 = vmatprep.subr.bf16.mxu0 %v2440_v19  ;;  %v4571_v61 = vcombine.low %v5865_v39, %v5865_v39 }
 0xacf   : > { %2490 = vmatpush1.bf16.msra.mxu1 %v2439_v1  ;;  %2752 = vmatpush1.bf16.msra.mxu0 %v2439_v1 }
 0xad0   : > { %v2442_v40 = vpack.c.bf16 %v5951_v58, %v5951_v58  ;;  %v2441_v62 = vpack.c.bf16 %v5948_v42, %v5948_v42 }
 0xad2   : > { %4573 = vmatprep.subr.msk.bf16.mxu1 %vm653_vm8, %v2442_v40  ;;  %v2460_v27 = vsel %vm653_vm8, %v2441_v62, 0 }
 0xad3   : > { %2492 = vmatpush1.bf16.msra.mxu1 %v2460_v27 }
 0xad4   : > { %3066 = vmatprep.subr.bf16.mxu1 %v5602_v49 }
 0xad6   : > { %2498 = vmatmul.mubr.bf16.vlgmr.msra.gmra.mrb[20].mxu1 %v4571_v61 }
 0xad7   : > { %3067 = vmatpush1.bf16.msra.mxu1 %v5600_v7 }
 0xad8   : > { %3068 = vmatprep.subr.bf16.mxu1 %v5622_v59 }
 0xadb   : > { %3069 = vmatpush1.bf16.msra.mxu1 %v5620_v24 }
 0xadc   : > { %3070 = vmatprep.subr.bf16.mxu1 %v5640_v63  ;;  %v2448_v2 = vpop.permute.xlu0 %2447 }
 0xadf   : > { %3071 = vmatpush1.bf16.msra.mxu1 %v5638_v11 }
 0xae0   : > { %3072 = vmatprep.subr.bf16.mxu1 %v5660_v54 }
 0xae3   : > { %3073 = vmatpush1.bf16.msra.mxu1 %v5658_v53 }
 0xae4   : > { %3074 = vmatprep.subr.bf16.mxu1 %v5721_v55  ;;  %v5992_v55 = vld [vmem:[%s6814_s8 + $0xc] sm:$0xff] }
 0xae7   : > { %3075 = vmatpush1.bf16.msra.mxu1 %v5719_v52 }
 0xae8   : > { %3076 = vmatprep.subr.bf16.mxu1 %v5741_v50  ;;  %v5999_v50 = vld [vmem:[%s6816_s10 + $0xc] sm:$0xff] }
 0xaeb   : > { %3077 = vmatpush1.bf16.msra.mxu1 %v5739_v60  ;;  %v4579_v60 = vcombine.high %v5992_v55, %v5992_v55 }
 0xaec   : > { %3078 = vmatprep.subr.bf16.mxu1 %v5757_v26  ;;  %v4577_v26 = vld [vmem:[%s6815_s9 + $0x8] sm:$0xff] }
 0xaed   : > { %2759 = vmatprep.mubr.bf16.mxu0 %v4579_v60 }
 0xaef   : > { %3079 = vmatpush1.bf16.msra.mxu1 %v5755_v9  ;;  %v4586_v9 = vcombine.high %v5999_v50, %v5999_v50 }
 0xaf0   : > { %3080 = vmatprep.subr.bf16.mxu1 %v5777_v33 }
 0xaf1   : > { %3098 = vmatprep.mubr.bf16.mxu1 %v4586_v9 }
 0xaf3   : > { %3081 = vmatpush1.bf16.msra.mxu1 %v5775_v32 }
 0xaf4   : > { %3082 = vmatprep.subr.bf16.mxu1 %v5797_v8 }
 0xaf7   : > { %3083 = vmatpush1.bf16.msra.mxu1 %v5795_v3 }
 0xaf8   : > { %3084 = vmatprep.subr.bf16.mxu1 %v5895_v46 }
 0xafb   : > { %3085 = vmatpush1.bf16.msra.mxu1 %v5893_v20 }
 0xafc   : > { %3086 = vmatprep.subr.bf16.mxu1 %v5915_v30 }
 0xaff   : > { %3087 = vmatpush1.bf16.msra.mxu1 %v5913_v28 }
 0xb00   : > { %3088 = vmatprep.subr.bf16.mxu1 %v2438_v57 }
 0xb03   : > { %3089 = vmatpush1.bf16.msra.mxu1 %v2437_v25 }
 0xb04   : > { %3090 = vmatprep.subr.bf16.mxu1 %v2440_v19 }
 0xb07   : > { %3091 = vmatpush1.bf16.msra.mxu1 %v2439_v1 }
 0xba9   : > { %v2499_v56 = vpop.f32.mrb[20].mxu1 }
 0xbaa   : > { %v2500_v7 = vadd.f32 %v2499_v56, %v2448_v2  ;;  %v2501_v49 = vpop.f32.mrb[21].mxu1 }
 0xbab   : > { %v2502_v24 = vadd.f32 %v2501_v49, %v2448_v2  ;;  %v2503_v59 = vpop.f32.mrb[22].mxu1 }
 0xbac   : > { %vm2506_vm9 = vcmp.ge.f32.partialorder %v2500_v7, 0.0  ;;  %v2508_v11 = vmul.f32 0.2, %v2500_v7  ;;  %v2504_v63 = vpop.f32.mrb[23].mxu1 }
 0xbad   : > { %vm2507_vm14 = vcmp.ge.f32.partialorder %v2502_v24, 0.0  ;;  %v2509_v53 = vmul.f32 0.2, %v2502_v24 }
 0xbae   : > { %v2510_v54 = vsel %vm2506_vm9, %v2500_v7, %v2508_v11 }
 0xbaf   : > { %v2511_v52 = vsel %vm2507_vm14, %v2502_v24, %v2509_v53  ;;  %2512 = vrot.lane.b32.xlu1 %v2510_v54, %s4731_s15  ;;  %v2552_v61 = vmul.f32 %v2510_v54, %v4945_v43  ;;  %v4578_v53 = vcombine.low %v5992_v55, %v5992_v55 }
 0xbb0   : > { %2514 = vrot.lane.b32.xlu0 %v2511_v52, %s4731_s15  ;;  %v2553_v7 = vmul.f32 %v2511_v52, %v4948_v44 }
 0xbb3   : > { %2522 = vrot.lane.b32.xlu1 %v2510_v54, %s4730_s14 }
 0xbb4   : > { %2524 = vrot.lane.b32.xlu0 %v2511_v52, %s4730_s14 }
 0xbb7   : > { %2532 = vrot.lane.b32.xlu1 %v2510_v54, %s4732_s16 }
 0xbb8   : > { %2534 = vrot.lane.b32.xlu0 %v2511_v52, %s4732_s16 }
 0xbbb   : > { %2542 = vrot.lane.b32.xlu1 %v2510_v54, %s4733_s17 }
 0xbbc   : > { %2544 = vrot.lane.b32.xlu0 %v2511_v52, %s4733_s17 }
 0xbbf   : > { %2556 = vrot.lane.b32.xlu1 %v2510_v54, %s4734_s18 }
 0xbc0   : > { %2558 = vrot.lane.b32.xlu0 %v2511_v52, %s4734_s18 }
 0xbc3   : > { %2566 = vrot.lane.b32.xlu1 %v2510_v54, %s4735_s19 }
 0xbc4   : > { %2568 = vrot.lane.b32.xlu0 %v2511_v52, %s4735_s19 }
 0xbc7   : > { %2576 = vrot.lane.b32.xlu1 %v2510_v54, %s4737_s20 }
 0xbc8   : > { %2578 = vrot.lane.b32.xlu0 %v2511_v52, %s4737_s20 }
 0xbcb   : > { %2586 = vrot.lane.b32.xlu1 %v2510_v54, %s4738_s21  ;;  %v4585_v54 = vcombine.low %v5999_v50, %v5999_v50 }
 0xbcc   : > { %2588 = vrot.lane.b32.xlu0 %v2511_v52, %s4738_s21 }
 0xbcf   : > { %2711 = vperm.xlu1 %4681, %v4577_v26  }
 0xc21   : > { %v2513_v32 = vpop.permute.xlu1 %2512 }
 0xc22   : > { %v2515_v33 = vpop.permute.xlu0 %2514 }
 0xc23   : > { %v2516_v3 = vsel %vm454_vm0, %v2513_v32, %v2515_v33  ;;  %v2517_v8 = vsel %vm454_vm0, %v2515_v33, %v2513_v32 }
 0xc24   : > { %v2518_v39 = vmul.f32 %v2517_v8, %v4896_v15  ;;  %v2519_v20 = vmul.f32 %v2516_v3, %v4899_v16 }
 0xc25   : > { %v2523_v46 = vpop.permute.xlu1 %2522 }
 0xc26   : > { %v2697_v28 = vpack.c.bf16 %v2518_v39, %v5948_v42  ;;  %v2525_v30 = vpop.permute.xlu0 %2524  ;;  %v2698_v25 = vpack.c.bf16 %v2519_v20, %v5951_v58  ;;  %v6825_v39 = vmov 0  }
 0xc27   : > { %v2526_v57 = vsel %vm473_vm1, %v2523_v46, %v2525_v30  ;;  %v2527_v51 = vsel %vm473_vm1, %v2525_v30, %v2523_v46 }
 0xc28   : > { %2753 = vmatprep.subr.bf16.mxu0 %v2698_v25  ;;  %3092 = vmatprep.subr.bf16.mxu1 %v2698_v25  ;;  %v2528_v35 = vmul.f32 %v2527_v51, %v4890_v13  ;;  %v2529_v1 = vmul.f32 %v2526_v57, %v4893_v14 }
 0xc29   : > { %2754 = vmatpush1.bf16.msra.mxu0 %v2697_v28  ;;  %3093 = vmatpush1.bf16.msra.mxu1 %v2697_v28  ;;  %v2533_v29 = vpop.permute.xlu1 %2532 }
 0xc2a   : > { %v2535_v4 = vpop.permute.xlu0 %2534 }
 0xc2b   : > { %v2536_v41 = vsel %vm492_vm2, %v2533_v29, %v2535_v4  ;;  %v2537_v31 = vsel %vm492_vm2, %v2535_v4, %v2533_v29 }
 0xc2c   : > { %v2538_v10 = vmul.f32 %v2537_v31, %v4922_v34  ;;  %v2539_v19 = vmul.f32 %v2536_v41, %v4927_v36 }
 0xc2d   : > { %v2543_v0 = vpop.permute.xlu1 %2542 }
 0xc2e   : > { %v2699_v42 = vpack.c.bf16 %v2538_v10, %v2528_v35  ;;  %v2545_v58 = vpop.permute.xlu0 %2544  ;;  %v2700_v40 = vpack.c.bf16 %v2539_v19, %v2529_v1  ;;  %v6075_v35 = vld [vmem:[%s6806_s0 + $0x10] ss:$0 sm:$0xff]  ;;  %v6081_v10 = vld [vmem:[%s6806_s0 + $0x18] ss:$0 sm:$0xff] }
 0xc2f   : > { %v2546_v62 = vsel %vm511_vm3, %v2543_v0, %v2545_v58  ;;  %v2547_v27 = vsel %vm511_vm3, %v2545_v58, %v2543_v0  ;;  %v4700_v58 = vld [vmem:[%s6814_s8 + $0x14] ss:$0 sps:$4 sm:$0xff]  }
 0xc30   : > { %v2548_v2 = vmul.f32 %v2547_v27, %v4932_v37  ;;  %v2549_v56 = vmul.f32 %v2546_v62, %v4935_v38  ;;  %2755 = vmatprep.subr.bf16.mxu0 %v2700_v40  ;;  %3094 = vmatprep.subr.bf16.mxu1 %v2700_v40 }
 0xc31   : > { %2756 = vmatpush1.bf16.msra.mxu0 %v2699_v42  ;;  %3095 = vmatpush1.bf16.msra.mxu1 %v2699_v42  ;;  %v2557_v49 = vpop.permute.xlu1 %2556 }
 0xc32   : > { %v2701_v24 = vpack.c.bf16 %v2552_v61, %v2548_v2  ;;  %v2559_v59 = vpop.permute.xlu0 %2558  ;;  %v2702_v11 = vpack.c.bf16 %v2553_v7, %v2549_v56 }
 0xc33   : > { %v2560_v63 = vsel %vm542_vm4, %v2557_v49, %v2559_v59  ;;  %v2561_v52 = vsel %vm542_vm4, %v2559_v59, %v2557_v49 }
 0xc34   : > { %2757 = vmatprep.subr.bf16.mxu0 %v2702_v11  ;;  %3096 = vmatprep.subr.bf16.mxu1 %v2702_v11  ;;  %v2562_v26 = vmul.f32 %v2560_v63, %v4955_v47  ;;  %v2563_v55 = vmul.f32 %v2561_v52, %v4958_v48 }
 0xc35   : > { %v2567_v60 = vpop.permute.xlu1 %2566  ;;  %2758 = vmatpush1.bf16.msra.mxu0 %v2701_v24  ;;  %3097 = vmatpush1.bf16.msra.mxu1 %v2701_v24 }
 0xc36   : > { %v2569_v9 = vpop.permute.xlu0 %2568 }
 0xc37   : > { %v2570_v32 = vsel %vm561_vm5, %v2567_v60, %v2569_v9  ;;  %v2571_v33 = vsel %vm561_vm5, %v2569_v9, %v2567_v60 }
 0xc38   : > { %v2572_v3 = vmul.f32 %v2570_v32, %v4990_v12  ;;  %v2573_v50 = vmul.f32 %v2571_v33, %v4994_v17  ;;  %2760 = vmatmul.mubr.bf16.vlgmr.msra.gmra.mrb[16].mxu0 %v4578_v53  ;;  %3099 = vmatmul.mubr.bf16.vlgmr.msra.gmra.mrb[24].mxu1 %v4585_v54 }
 0xc39   : > { %v2577_v8 = vpop.permute.xlu1 %2576  ;;  %2800 = vmatprep.mubr.bf16.mxu0 %v6825_v39  ;;  %3139 = vmatprep.mubr.bf16.mxu1 %v6825_v39 }
 0xc3a   : > { %v2703_v20 = vpack.c.bf16 %v2572_v3, %v2562_v26  ;;  %v2579_v46 = vpop.permute.xlu0 %2578  ;;  %v2704_v28 = vpack.c.bf16 %v2573_v50, %v2563_v55 }
 0xc3b   : > { %v2580_v30 = vsel %vm580_vm6, %v2577_v8, %v2579_v46  ;;  %v2581_v25 = vsel %vm580_vm6, %v2579_v46, %v2577_v8 }
 0xc3c   : > { %2768 = vmatprep.subr.bf16.mxu0 %v2704_v28  ;;  %3107 = vmatprep.subr.bf16.mxu1 %v2704_v28  ;;  %v2582_v41 = vmul.f32 %v2580_v30, %v4999_v5  ;;  %v2583_v31 = vmul.f32 %v2581_v25, %v5002_v18 }
 0xc3d   : > { %v2587_v57 = vpop.permute.xlu1 %2586  ;;  %2769 = vmatpush1.bf16.msra.mxu0 %v2703_v20  ;;  %3108 = vmatpush1.bf16.msra.mxu1 %v2703_v20 }
 0xc3e   : > { %v2589_v51 = vpop.permute.xlu0 %2588 }
 0xc3f   : > { %v2590_v29 = vsel %vm599_vm7, %v2587_v57, %v2589_v51  ;;  %v2591_v4 = vsel %vm599_vm7, %v2589_v51, %v2587_v57 }
 0xc40   : > { %v2592_v1 = vmul.f32 %v6075_v35, %v2590_v29  ;;  %v2593_v19 = vmul.f32 %v6081_v10, %v2591_v4 }
 0xc42   : > { %v2705_v0 = vpack.c.bf16 %v2592_v1, %v2582_v41  ;;  %v2706_v42 = vpack.c.bf16 %v2593_v19, %v2583_v31 }
 0xc44   : > { %2770 = vmatprep.subr.bf16.mxu0 %v2706_v42  ;;  %3109 = vmatprep.subr.bf16.mxu1 %v2706_v42 }
 0xc45   : > { %2771 = vmatpush1.bf16.msra.mxu0 %v2705_v0  ;;  %3110 = vmatpush1.bf16.msra.mxu1 %v2705_v0 }
 0xc48   : > { %4581 = vmatmul.mubr.msk.bf16.vlgmr.msra.gmra.mrb[16].mxu0 %vm1411_vm15, %v4700_v58 }
 0xc49   : > { %3314 = vmatprep.mubr.bf16.mxu0 %v6825_v39 }
 0xc4e   : > { %v2712_v40 = vpop.permute.xlu1 %2711 }
 0xd1b   : > { %v2802_v62 = vpop.f32.mrb[16].mxu0 }
 0xd1c   : > { %v4631_v27 = vadd.f32 %v2802_v62, %v2712_v40  ;;  %v2804_v61 = vpop.f32.mrb[17].mxu0 }
 0xd1d   : > { %v4632_v2 = vadd.f32 %v2804_v61, %v2712_v40  ;;  %v2806_v56 = vpop.f32.mrb[18].mxu0 }
 0xd1e   : > { %vm2809_vm9 = vcmp.ge.f32.partialorder %v4631_v27, 0.0  ;;  %v2811_v7 = vmul.f32 0.2, %v4631_v27  ;;  %v2807_v49 = vpop.f32.mrb[19].mxu0 }
 0xd1f   : > { %vm2810_vm14 = vcmp.ge.f32.partialorder %v4632_v2, 0.0  ;;  %v2812_v24 = vmul.f32 0.2, %v4632_v2 }
 0xd20   : > { %v2813_v59 = vsel %vm2809_vm9, %v4631_v27, %v2811_v7  ;;  %vm6827_vm9 = vcmask 588800  }
 0xd21   : > { %v2815_v11 = vadd.f32 %v2813_v59, %v5834_v45  ;;  %v2814_v63 = vsel %vm2810_vm14, %v4632_v2, %v2812_v24  ;;  %v4584_v45 = vld [vmem:[%s6817_s11 + $0x8] sm:$0xff] }
 0xd22   : > { %v2816_v53 = vadd.f32 %v2814_v63, %v5836_v21 }
 0xd23   : > { %2817 = vrot.lane.b32.xlu0 %v2815_v11, %s4731_s15  ;;  %v2857_v2 = vmul.f32 %v2815_v11, %v4945_v43 }
 0xd24   : > { %2819 = vrot.lane.b32.xlu1 %v2816_v53, %s4731_s15  ;;  %v2858_v49 = vmul.f32 %v2816_v53, %v4948_v44 }
 0xd27   : > { %2827 = vrot.lane.b32.xlu0 %v2815_v11, %s4730_s14 }
 0xd28   : > { %2829 = vrot.lane.b32.xlu1 %v2816_v53, %s4730_s14 }
 0xd2b   : > { %2837 = vrot.lane.b32.xlu0 %v2815_v11, %s4732_s16 }
 0xd2c   : > { %2839 = vrot.lane.b32.xlu1 %v2816_v53, %s4732_s16 }
 0xd2f   : > { %2847 = vrot.lane.b32.xlu0 %v2815_v11, %s4733_s17 }
 0xd30   : > { %2849 = vrot.lane.b32.xlu1 %v2816_v53, %s4733_s17 }
 0xd33   : > { %2861 = vrot.lane.b32.xlu0 %v2815_v11, %s4734_s18 }
 0xd34   : > { %2863 = vrot.lane.b32.xlu1 %v2816_v53, %s4734_s18 }
 0xd37   : > { %2871 = vrot.lane.b32.xlu0 %v2815_v11, %s4735_s19 }
 0xd38   : > { %2873 = vrot.lane.b32.xlu1 %v2816_v53, %s4735_s19 }
 0xd3b   : > { %2881 = vrot.lane.b32.xlu0 %v2815_v11, %s4737_s20 }
 0xd3c   : > { %2883 = vrot.lane.b32.xlu1 %v2816_v53, %s4737_s20 }
 0xd3f   : > { %2891 = vrot.lane.b32.xlu0 %v2815_v11, %s4738_s21 }
 0xd40   : > { %2893 = vrot.lane.b32.xlu1 %v2816_v53, %s4738_s21 }
 0xd43   : > { %3044 = vperm.xlu0 %4680, %v4584_v45  }
 0xd95   : > { %v2818_v21 = vpop.permute.xlu0 %2817 }
 0xd96   : > { %v2820_v54 = vpop.permute.xlu1 %2819 }
 0xd97   : > { %v2821_v52 = vsel %vm454_vm0, %v2818_v21, %v2820_v54  ;;  %v2822_v60 = vsel %vm454_vm0, %v2820_v54, %v2818_v21 }
 0xd98   : > { %v2823_v55 = vmul.f32 %v2822_v60, %v4896_v15  ;;  %v2824_v3 = vmul.f32 %v2821_v52, %v4899_v16 }
 0xd99   : > { %v2828_v9 = vpop.permute.xlu0 %2827 }
 0xd9a   : > { %v2830_v26 = vpop.permute.xlu1 %2829 }
 0xd9b   : > { %v2831_v32 = vsel %vm473_vm1, %v2828_v9, %v2830_v26  ;;  %v2832_v33 = vsel %vm473_vm1, %v2830_v26, %v2828_v9 }
 0xd9c   : > { %v2833_v50 = vmul.f32 %v2832_v33, %v4890_v13  ;;  %v2834_v8 = vmul.f32 %v2831_v32, %v4893_v14 }
 0xd9d   : > { %v2838_v20 = vpop.permute.xlu0 %2837 }
 0xd9e   : > { %v3030_v46 = vpack.c.bf16 %v2833_v50, %v2823_v55  ;;  %v2840_v28 = vpop.permute.xlu1 %2839  ;;  %v3031_v30 = vpack.c.bf16 %v2834_v8, %v2824_v3 }
 0xd9f   : > { %v2841_v25 = vsel %vm492_vm2, %v2838_v20, %v2840_v28  ;;  %v2842_v57 = vsel %vm492_vm2, %v2840_v28, %v2838_v20 }
 0xda0   : > { %3111 = vmatprep.subr.bf16.mxu1 %v3031_v30  ;;  %v2843_v31 = vmul.f32 %v2842_v57, %v4922_v34  ;;  %v2844_v1 = vmul.f32 %v2841_v25, %v4927_v36 }
 0xda1   : > { %3112 = vmatpush1.bf16.msra.mxu1 %v3030_v46  ;;  %v2848_v51 = vpop.permute.xlu0 %2847 }
 0xda2   : > { %v2850_v29 = vpop.permute.xlu1 %2849 }
 0xda3   : > { %v2851_v4 = vsel %vm511_vm3, %v2848_v51, %v2850_v29  ;;  %v2852_v41 = vsel %vm511_vm3, %v2850_v29, %v2848_v51  ;;  %v4701_v29 = vld [vmem:[%s6816_s10 + $0x14] ss:$0 sps:$4 sm:$0xff]  }
 0xda4   : > { %v2853_v19 = vmul.f32 %v2852_v41, %v4932_v37  ;;  %v2854_v0 = vmul.f32 %v2851_v4, %v4935_v38 }
 0xda5   : > { %v2862_v42 = vpop.permute.xlu0 %2861 }
 0xda6   : > { %v3032_v58 = vpack.c.bf16 %v2853_v19, %v2843_v31  ;;  %v2864_v40 = vpop.permute.xlu1 %2863  ;;  %v3033_v62 = vpack.c.bf16 %v2854_v0, %v2844_v1 }
 0xda7   : > { %v2865_v27 = vsel %vm542_vm4, %v2862_v42, %v2864_v40  ;;  %v2866_v61 = vsel %vm542_vm4, %v2864_v40, %v2862_v42 }
 0xda8   : > { %v2867_v56 = vmul.f32 %v2865_v27, %v4955_v47  ;;  %v2868_v7 = vmul.f32 %v2866_v61, %v4958_v48  ;;  %3113 = vmatprep.subr.bf16.mxu1 %v3033_v62 }
 0xda9   : > { %3114 = vmatpush1.bf16.msra.mxu1 %v3032_v58  ;;  %v2872_v24 = vpop.permute.xlu0 %2871 }
 0xdaa   : > { %v3034_v59 = vpack.c.bf16 %v2867_v56, %v2857_v2  ;;  %v2874_v63 = vpop.permute.xlu1 %2873  ;;  %v3035_v45 = vpack.c.bf16 %v2868_v7, %v2858_v49 }
 0xdab   : > { %v2875_v21 = vsel %vm561_vm5, %v2872_v24, %v2874_v63  ;;  %v2876_v54 = vsel %vm561_vm5, %v2874_v63, %v2872_v24 }
 0xdac   : > { %3115 = vmatprep.subr.bf16.mxu1 %v3035_v45  ;;  %v2877_v9 = vmul.f32 %v2875_v21, %v4990_v12  ;;  %v2878_v26 = vmul.f32 %v2876_v54, %v4994_v17 }
 0xdad   : > { %v2882_v11 = vpop.permute.xlu0 %2881  ;;  %3116 = vmatpush1.bf16.msra.mxu1 %v3034_v59 }
 0xdae   : > { %v2884_v52 = vpop.permute.xlu1 %2883 }
 0xdaf   : > { %v2885_v60 = vsel %vm580_vm6, %v2882_v11, %v2884_v52  ;;  %v2886_v53 = vsel %vm580_vm6, %v2884_v52, %v2882_v11 }
 0xdb0   : > { %v2887_v32 = vmul.f32 %v2885_v60, %v4999_v5  ;;  %v2888_v33 = vmul.f32 %v2886_v53, %v5002_v18 }
 0xdb1   : > { %v2892_v55 = vpop.permute.xlu0 %2891 }
 0xdb2   : > { %v3036_v3 = vpack.c.bf16 %v2887_v32, %v2877_v9  ;;  %v2894_v50 = vpop.permute.xlu1 %2893  ;;  %v3037_v8 = vpack.c.bf16 %v2888_v33, %v2878_v26 }
 0xdb3   : > { %v2895_v20 = vsel %vm599_vm7, %v2892_v55, %v2894_v50  ;;  %v2896_v46 = vsel %vm599_vm7, %v2894_v50, %v2892_v55 }
 0xdb4   : > { %v2897_v28 = vmul.f32 %v6075_v35, %v2895_v20  ;;  %v2898_v30 = vmul.f32 %v6081_v10, %v2896_v46  ;;  %3117 = vmatprep.subr.bf16.mxu1 %v3037_v8 }
 0xdb5   : > { %3118 = vmatpush1.bf16.msra.mxu1 %v3036_v3 }
 0xdb6   : > { %v3038_v25 = vpack.c.bf16 %v2897_v28, %v2897_v28  ;;  %v3039_v57 = vpack.c.bf16 %v2898_v30, %v2898_v30 }
 0xdb8   : > { %4588 = vmatprep.subr.msk.bf16.mxu1 %vm653_vm8, %v3039_v57  ;;  %v3061_v51 = vsel %vm653_vm8, %v3038_v25, 0 }
 0xdb9   : > { %3120 = vmatpush1.bf16.msra.mxu1 %v3061_v51 }
 0xdbc   : > { %4589 = vmatmul.mubr.msk.bf16.vlgmr.msra.gmra.mrb[24].mxu1 %vm1743_vm12, %v4701_v29 }
 0xdc2   : > { %v3045_v4 = vpop.permute.xlu0 %3044 }
 0xe8f   : > { %v3141_v41 = vpop.f32.mrb[24].mxu1 }
 0xe90   : > { %v4633_v31 = vadd.f32 %v3141_v41, %v3045_v4  ;;  %v3143_v1 = vpop.f32.mrb[25].mxu1 }
 0xe91   : > { %v4634_v19 = vadd.f32 %v3143_v1, %v3045_v4  ;;  %v3145_v0 = vpop.f32.mrb[26].mxu1 }
 0xe92   : > { %v3148_v42 = vmul.f32 0.2, %v4633_v31  ;;  %v3146_v58 = vpop.f32.mrb[27].mxu1 }
 0xe93   : > { %v3149_v40 = vmul.f32 0.2, %v4634_v19 }
 0xe94   : > { %v6167_v62 = vadd.f32 %v3148_v42, %v5548_v22  ;;  %v4591_v22 = vld [vmem:[%s6809_s3 + $0x10] sm:$0xff] }
 0xe95   : > { %v6170_v27 = vadd.f32 %v3149_v40, %v5551_v23 }
 0xe96   : > { %3152 = vrot.lane.b32.xlu1 %v6167_v62, %s4731_s15  ;;  %v3192_v51 = vmul.f32 %v6167_v62, %v4945_v43 }
 0xe97   : > { %6826 = vst [vmem:[#allocation3_spill] sm:$0xff] %v6170_v27  ;;  %3154 = vrot.lane.b32.xlu0 %v6170_v27, %s4731_s15  ;;  %v3193_v41 = vmul.f32 %v6170_v27, %v4948_v44 }
 0xe9a   : > { %3162 = vrot.lane.b32.xlu1 %v6167_v62, %s4730_s14 }
 0xe9b   : > { %3164 = vrot.lane.b32.xlu0 %v6170_v27, %s4730_s14 }
 0xe9e   : > { %3172 = vrot.lane.b32.xlu1 %v6167_v62, %s4732_s16 }
 0xe9f   : > { %3174 = vrot.lane.b32.xlu0 %v6170_v27, %s4732_s16 }
 0xea2   : > { %3182 = vrot.lane.b32.xlu1 %v6167_v62, %s4733_s17 }
 0xea3   : > { %3184 = vrot.lane.b32.xlu0 %v6170_v27, %s4733_s17 }
 0xea6   : > { %3196 = vrot.lane.b32.xlu1 %v6167_v62, %s4734_s18 }
 0xea7   : > { %3198 = vrot.lane.b32.xlu0 %v6170_v27, %s4734_s18 }
 0xeaa   : > { %3206 = vrot.lane.b32.xlu1 %v6167_v62, %s4735_s19 }
 0xeab   : > { %3208 = vrot.lane.b32.xlu0 %v6170_v27, %s4735_s19 }
 0xeae   : > { %3216 = vrot.lane.b32.xlu1 %v6167_v62, %s4737_s20 }
 0xeaf   : > { %3218 = vrot.lane.b32.xlu0 %v6170_v27, %s4737_s20 }
 0xeb2   : > { %3226 = vrot.lane.b32.xlu1 %v6167_v62, %s4738_s21 }
 0xeb3   : > { %3228 = vrot.lane.b32.xlu0 %v6170_v27, %s4738_s21 }
 0xeb6   : > { %3270 = vperm.xlu1 %4681, %v4591_v22  }
 0xf08   : > { %v3153_v23 = vpop.permute.xlu1 %3152 }
 0xf09   : > { %v3155_v61 = vpop.permute.xlu0 %3154 }
 0xf0a   : > { %v3156_v2 = vsel %vm454_vm0, %v3153_v23, %v3155_v61  ;;  %v3157_v56 = vsel %vm454_vm0, %v3155_v61, %v3153_v23 }
 0xf0b   : > { %v3158_v63 = vmul.f32 %v3157_v56, %v4896_v15  ;;  %v3159_v45 = vmul.f32 %v3156_v2, %v4899_v16 }
 0xf0c   : > { %v3163_v7 = vpop.permute.xlu1 %3162 }
 0xf0d   : > { %v3165_v49 = vpop.permute.xlu0 %3164 }
 0xf0e   : > { %v3166_v24 = vsel %vm473_vm1, %v3163_v7, %v3165_v49  ;;  %v3167_v59 = vsel %vm473_vm1, %v3165_v49, %v3163_v7 }
 0xf0f   : > { %v3168_v21 = vmul.f32 %v3167_v59, %v4890_v13  ;;  %v3169_v54 = vmul.f32 %v3166_v24, %v4893_v14 }
 0xf10   : > { %v3173_v11 = vpop.permute.xlu1 %3172 }
 0xf11   : > { %v6219_v52 = vpack.c.bf16 %v3168_v21, %v3158_v63  ;;  %v6221_v60 = vpack.c.bf16 %v3169_v54, %v3159_v45  ;;  %v3175_v53 = vpop.permute.xlu0 %3174 }
 0xf12   : > { %v3176_v9 = vsel %vm492_vm2, %v3173_v11, %v3175_v53  ;;  %v3177_v26 = vsel %vm492_vm2, %v3175_v53, %v3173_v11 }
 0xf13   : > { %3282 = vmatprep.subr.bf16.mxu0 %v6221_v60  ;;  %3485 = vmatprep.subr.bf16.mxu1 %v6221_v60  ;;  %v3178_v50 = vmul.f32 %v3177_v26, %v4922_v34  ;;  %v3179_v8 = vmul.f32 %v3176_v9, %v4927_v36 }
 0xf14   : > { %3283 = vmatpush1.bf16.msra.mxu0 %v6219_v52  ;;  %3486 = vmatpush1.bf16.msra.mxu1 %v6219_v52  ;;  %v3183_v32 = vpop.permute.xlu1 %3182 }
 0xf15   : > { %v3185_v33 = vpop.permute.xlu0 %3184 }
 0xf16   : > { %v3186_v55 = vsel %vm511_vm3, %v3183_v32, %v3185_v33  ;;  %v3187_v3 = vsel %vm511_vm3, %v3185_v33, %v3183_v32 }
 0xf17   : > { %v3188_v20 = vmul.f32 %v3187_v3, %v4932_v37  ;;  %v3189_v46 = vmul.f32 %v3186_v55, %v4935_v38  ;;  %v3535_v3 = vpack.c.bf16 %v6170_v27, %v6170_v27 }
 0xf18   : > { %v3197_v28 = vpop.permute.xlu1 %3196 }
 0xf19   : > { %v6239_v30 = vpack.c.bf16 %v3188_v20, %v3178_v50  ;;  %v6241_v25 = vpack.c.bf16 %v3189_v46, %v3179_v8  ;;  %v3199_v57 = vpop.permute.xlu0 %3198  ;;  %v3534_v50 = vpack.c.bf16 %v6167_v62, %v6167_v62  ;;  %v4590_v8 = vld [vmem:[%s6808_s2 + $0x8] sm:$0xf] }
 0xf1a   : > { %v3200_v29 = vsel %vm542_vm4, %v3197_v28, %v3199_v57  ;;  %v3201_v4 = vsel %vm542_vm4, %v3199_v57, %v3197_v28  ;;  %v4599_v46 = vld [vmem:[%s6818_s12 + $0x8] sm:$0xf] }
 0xf1b   : > { %v3202_v31 = vmul.f32 %v3200_v29, %v4955_v47  ;;  %v3203_v1 = vmul.f32 %v3201_v4, %v4958_v48  ;;  %3284 = vmatprep.subr.bf16.mxu0 %v6241_v25  ;;  %3487 = vmatprep.subr.bf16.mxu1 %v6241_v25  ;;  %v3540_v20 = vsel %vm653_vm8, %v3534_v50, 0 }
 0xf1c   : > { %3285 = vmatpush1.bf16.msra.mxu0 %v6239_v30  ;;  %3488 = vmatpush1.bf16.msra.mxu1 %v6239_v30  ;;  %v3207_v19 = vpop.permute.xlu1 %3206 }
 0xf1d   : > { %v6257_v0 = vpack.c.bf16 %v3202_v31, %v3192_v51  ;;  %v6259_v42 = vpack.c.bf16 %v3203_v1, %v3193_v41  ;;  %v3209_v58 = vpop.permute.xlu0 %3208 }
 0xf1e   : > { %v3210_v40 = vsel %vm561_vm5, %v3207_v19, %v3209_v58  ;;  %v3211_v22 = vsel %vm561_vm5, %v3209_v58, %v3207_v19 }
 0xf1f   : > { %3286 = vmatprep.subr.bf16.mxu0 %v6259_v42  ;;  %3489 = vmatprep.subr.bf16.mxu1 %v6259_v42  ;;  %v3212_v7 = vmul.f32 %v3210_v40, %v4990_v12  ;;  %v3213_v49 = vmul.f32 %v3211_v22, %v4994_v17  ;;  %v6339_v22 = vld [vmem:[%s6810_s4 + $0x10] sm:$0xff] }
 0xf20   : > { %v3217_v23 = vpop.permute.xlu1 %3216  ;;  %3287 = vmatpush1.bf16.msra.mxu0 %v6257_v0  ;;  %3490 = vmatpush1.bf16.msra.mxu1 %v6257_v0 }
 0xf21   : > { %v3219_v61 = vpop.permute.xlu0 %3218 }
 0xf22   : > { %v3220_v2 = vsel %vm580_vm6, %v3217_v23, %v3219_v61  ;;  %v3221_v56 = vsel %vm580_vm6, %v3219_v61, %v3217_v23  ;;  %v4597_v23 = vcombine.high %v6339_v22, %v6339_v22  ;;  %v4595_v61 = vld [vmem:[%s6811_s5 + $0x10] sm:$0xff] }
 0xf23   : > { %v3222_v24 = vmul.f32 %v3220_v2, %v4999_v5  ;;  %v3223_v59 = vmul.f32 %v3221_v56, %v5002_v18 }
 0xf24   : > { %v3227_v63 = vpop.permute.xlu1 %3226  ;;  %4598 = vmatprep.mubr.msk.bf16.mxu1 %vm858_vm13, %v4597_v23 }
 0xf25   : > { %v6277_v45 = vpack.c.bf16 %v3222_v24, %v3212_v7  ;;  %v6279_v21 = vpack.c.bf16 %v3223_v59, %v3213_v49  ;;  %v3229_v54 = vpop.permute.xlu0 %3228 }
 0xf26   : > { %v3230_v11 = vsel %vm599_vm7, %v3227_v63, %v3229_v54  ;;  %v3231_v53 = vsel %vm599_vm7, %v3229_v54, %v3227_v63 }
 0xf27   : > { %v6286_v9 = vmul.f32 %v6075_v35, %v3230_v11  ;;  %v6289_v26 = vmul.f32 %v6081_v10, %v3231_v53  ;;  %3288 = vmatprep.subr.bf16.mxu0 %v6279_v21  ;;  %3491 = vmatprep.subr.bf16.mxu1 %v6279_v21 }
 0xf28   : > { %3289 = vmatpush1.bf16.msra.mxu0 %v6277_v45  ;;  %3492 = vmatpush1.bf16.msra.mxu1 %v6277_v45 }
 0xf29   : > { %v3264_v32 = vpack.c.bf16 %v6286_v9, %v6286_v9  ;;  %v3265_v33 = vpack.c.bf16 %v6289_v26, %v6289_v26 }
 0xf2b   : > { %4592 = vmatprep.subr.msk.bf16.mxu0 %vm653_vm8, %v3265_v33  ;;  %v3277_v55 = vsel %vm653_vm8, %v3264_v32, 0 }
 0xf2c   : > { %3291 = vmatpush1.bf16.msra.mxu0 %v3277_v55 }
 0xf2d   : > { %4600 = vmatprep.subr.msk.bf16.mxu0 %vm653_vm8, %v3535_v3 }
 0xf2f   : > { %4593 = vmatmul.mubr.msk.bf16.vlgmr.msra.gmra.mrb[20].mxu0 %vm6827_vm9, %v4590_v8 }
 0xf30   : > { %3546 = vmatpush1.bf16.msra.mxu0 %v3540_v20  ;;  %3577 = vmatprep.mubr.bf16.mxu0 %v6825_v39 }
 0xf31   : > { %3778 = vmatprep.subr.bf16.mxu0 %v6221_v60 }
 0xf35   : > { %v3271_v28 = vpop.permute.xlu1 %3270 }
 0xf37   : > { %4601 = vmatmul.mubr.msk.bf16.vlgmr.msra.gmra.mrb[24].mxu0 %vm912_vm10, %v4599_v46 }
 0xf38   : > { %3779 = vmatpush1.bf16.msra.mxu0 %v6219_v52 }
 0xf39   : > { %3780 = vmatprep.subr.bf16.mxu0 %v6241_v25 }
 0xf3c   : > { %3781 = vmatpush1.bf16.msra.mxu0 %v6239_v30 }
 0xf3d   : > { %3782 = vmatprep.subr.bf16.mxu0 %v6259_v42 }
 0xf40   : > { %3783 = vmatpush1.bf16.msra.mxu0 %v6257_v0 }
 0xf41   : > { %3784 = vmatprep.subr.bf16.mxu0 %v6279_v21 }
 0xf44   : > { %3785 = vmatpush1.bf16.msra.mxu0 %v6277_v45 }
0x1002   : > { %v3316_v57 = vpop.f32.mrb[20].mxu0 }
0x1003   : > { %v3317_v51 = vadd.f32 %v3316_v57, %v3271_v28  ;;  %v3318_v29 = vpop.f32.mrb[21].mxu0 }
0x1004   : > { %v3319_v4 = vadd.f32 %v3318_v29, %v3271_v28  ;;  %v3320_v41 = vpop.f32.mrb[22].mxu0 }
0x1005   : > { %vm3323_vm10 = vcmp.ge.f32.partialorder %v3317_v51, 0.0  ;;  %v3325_v31 = vmul.f32 0.2, %v3317_v51  ;;  %v3321_v1 = vpop.f32.mrb[23].mxu0 }
0x1006   : > { %vm3324_vm14 = vcmp.ge.f32.partialorder %v3319_v4, 0.0  ;;  %v3326_v19 = vmul.f32 0.2, %v3319_v4 }
0x1007   : > { %v3327_v58 = vsel %vm3323_vm10, %v3317_v51, %v3325_v31 }
0x1008   : > { %v3328_v40 = vsel %vm3324_vm14, %v3319_v4, %v3326_v19  ;;  %3329 = vrot.lane.b32.xlu0 %v3327_v58, %s4731_s15  ;;  %v3369_v31 = vmul.f32 %v3327_v58, %v4945_v43 }
0x1009   : > { %3331 = vrot.lane.b32.xlu1 %v3328_v40, %s4731_s15  ;;  %v3370_v23 = vmul.f32 %v3328_v40, %v4948_v44 }
0x100c   : > { %3339 = vrot.lane.b32.xlu0 %v3327_v58, %s4730_s14 }
0x100d   : > { %3341 = vrot.lane.b32.xlu1 %v3328_v40, %s4730_s14 }
0x1010   : > { %3349 = vrot.lane.b32.xlu0 %v3327_v58, %s4732_s16 }
0x1011   : > { %3351 = vrot.lane.b32.xlu1 %v3328_v40, %s4732_s16 }
0x1014   : > { %3359 = vrot.lane.b32.xlu0 %v3327_v58, %s4733_s17 }
0x1015   : > { %3361 = vrot.lane.b32.xlu1 %v3328_v40, %s4733_s17 }
0x1018   : > { %3373 = vrot.lane.b32.xlu0 %v3327_v58, %s4734_s18 }
0x1019   : > { %3375 = vrot.lane.b32.xlu1 %v3328_v40, %s4734_s18 }
0x101c   : > { %3383 = vrot.lane.b32.xlu0 %v3327_v58, %s4735_s19 }
0x101d   : > { %3385 = vrot.lane.b32.xlu1 %v3328_v40, %s4735_s19 }
0x1020   : > { %3393 = vrot.lane.b32.xlu0 %v3327_v58, %s4737_s20 }
0x1021   : > { %3395 = vrot.lane.b32.xlu1 %v3328_v40, %s4737_s20 }
0x1024   : > { %3403 = vrot.lane.b32.xlu0 %v3327_v58, %s4738_s21 }
0x1025   : > { %3405 = vrot.lane.b32.xlu1 %v3328_v40, %s4738_s21 }
0x1028   : > { %3473 = vperm.xlu0 %4680, %v4595_v61  }
0x107a   : > { %v3330_v2 = vpop.permute.xlu0 %3329 }
0x107b   : > { %v3332_v56 = vpop.permute.xlu1 %3331 }
0x107c   : > { %v3333_v7 = vsel %vm454_vm0, %v3330_v2, %v3332_v56  ;;  %v3334_v49 = vsel %vm454_vm0, %v3332_v56, %v3330_v2 }
0x107d   : > { %v3335_v24 = vmul.f32 %v3334_v49, %v4896_v15  ;;  %v3336_v59 = vmul.f32 %v3333_v7, %v4899_v16 }
0x107e   : > { %v3340_v63 = vpop.permute.xlu0 %3339 }
0x107f   : > { %v6358_v54 = vpack.c.bf16 %v3335_v24, %v6286_v9  ;;  %v6361_v11 = vpack.c.bf16 %v3336_v59, %v6289_v26  ;;  %v3342_v53 = vpop.permute.xlu1 %3341 }
0x1080   : > { %v3343_v32 = vsel %vm473_vm1, %v3340_v63, %v3342_v53  ;;  %v3344_v33 = vsel %vm473_vm1, %v3342_v53, %v3340_v63 }
0x1081   : > { %3493 = vmatprep.subr.bf16.mxu1 %v6361_v11  ;;  %3786 = vmatprep.subr.bf16.mxu0 %v6361_v11  ;;  %v3345_v50 = vmul.f32 %v3344_v33, %v4890_v13  ;;  %v3346_v8 = vmul.f32 %v3343_v32, %v4893_v14 }
0x1082   : > { %3494 = vmatpush1.bf16.msra.mxu1 %v6358_v54  ;;  %3787 = vmatpush1.bf16.msra.mxu0 %v6358_v54  ;;  %v3350_v9 = vpop.permute.xlu0 %3349 }
0x1083   : > { %v3352_v55 = vpop.permute.xlu1 %3351 }
0x1084   : > { %v3353_v26 = vsel %vm492_vm2, %v3350_v9, %v3352_v55  ;;  %v3354_v3 = vsel %vm492_vm2, %v3352_v55, %v3350_v9 }
0x1085   : > { %v3355_v20 = vmul.f32 %v3354_v3, %v4922_v34  ;;  %v3356_v46 = vmul.f32 %v3353_v26, %v4927_v36 }
0x1086   : > { %v3360_v28 = vpop.permute.xlu0 %3359 }
0x1087   : > { %v6379_v57 = vpack.c.bf16 %v3355_v20, %v3345_v50  ;;  %v6381_v51 = vpack.c.bf16 %v3356_v46, %v3346_v8  ;;  %v3362_v29 = vpop.permute.xlu1 %3361 }
0x1088   : > { %v3363_v4 = vsel %vm511_vm3, %v3360_v28, %v3362_v29  ;;  %v3364_v41 = vsel %vm511_vm3, %v3362_v29, %v3360_v28 }
0x1089   : > { %v3365_v1 = vmul.f32 %v3364_v41, %v4932_v37  ;;  %v3366_v19 = vmul.f32 %v3363_v4, %v4935_v38  ;;  %3495 = vmatprep.subr.bf16.mxu1 %v6381_v51  ;;  %3788 = vmatprep.subr.bf16.mxu0 %v6381_v51 }
0x108a   : > { %3496 = vmatpush1.bf16.msra.mxu1 %v6379_v57  ;;  %3789 = vmatpush1.bf16.msra.mxu0 %v6379_v57  ;;  %v3374_v61 = vpop.permute.xlu0 %3373 }
0x108b   : > { %v6395_v2 = vpack.c.bf16 %v3369_v31, %v3365_v1  ;;  %v6397_v56 = vpack.c.bf16 %v3370_v23, %v3366_v19  ;;  %v3376_v58 = vpop.permute.xlu1 %3375 }
0x108c   : > { %v3377_v40 = vsel %vm542_vm4, %v3374_v61, %v3376_v58  ;;  %v3378_v7 = vsel %vm542_vm4, %v3376_v58, %v3374_v61  ;;  %v4596_v58 = vcombine.low %v6339_v22, %v6339_v22  ;;  %v3579_v22 = vpop.f32.mrb[24].mxu0 }
0x108d   : > { %3497 = vmatprep.subr.bf16.mxu1 %v6397_v56  ;;  %3790 = vmatprep.subr.bf16.mxu0 %v6397_v56  ;;  %v3379_v53 = vmul.f32 %v3377_v40, %v4955_v47  ;;  %v3380_v32 = vmul.f32 %v3378_v7, %v4958_v48  ;;  %v3581_v40 = vpop.f32.mrb[25].mxu0 }
0x108e   : > { %v3384_v49 = vpop.permute.xlu0 %3383  ;;  %3498 = vmatpush1.bf16.msra.mxu1 %v6395_v2  ;;  %3791 = vmatpush1.bf16.msra.mxu0 %v6395_v2  ;;  %v3583_v7 = vpop.f32.mrb[26].mxu0 }
0x108f   : > { %v3386_v24 = vpop.permute.xlu1 %3385 }
0x1090   : > { %v3387_v59 = vsel %vm561_vm5, %v3384_v49, %v3386_v24  ;;  %v3388_v63 = vsel %vm561_vm5, %v3386_v24, %v3384_v49  ;;  %v3584_v49 = vpop.f32.mrb[27].mxu0 }
0x1091   : > { %v3389_v33 = vmul.f32 %v3387_v59, %v4990_v12  ;;  %v3390_v9 = vmul.f32 %v3388_v63, %v4994_v17 }
0x1092   : > { %v3394_v55 = vpop.permute.xlu0 %3393 }
0x1093   : > { %v6415_v26 = vpack.c.bf16 %v3389_v33, %v3379_v53  ;;  %v6417_v3 = vpack.c.bf16 %v3390_v9, %v3380_v32  ;;  %v3396_v50 = vpop.permute.xlu1 %3395 }
0x1094   : > { %v3397_v8 = vsel %vm580_vm6, %v3394_v55, %v3396_v50  ;;  %v3398_v20 = vsel %vm580_vm6, %v3396_v50, %v3394_v55 }
0x1095   : > { %3499 = vmatprep.subr.bf16.mxu1 %v6417_v3  ;;  %3792 = vmatprep.subr.bf16.mxu0 %v6417_v3  ;;  %v3399_v41 = vmul.f32 %v3397_v8, %v4999_v5  ;;  %v3400_v31 = vmul.f32 %v3398_v20, %v5002_v18 }
0x1096   : > { %v3404_v46 = vpop.permute.xlu0 %3403  ;;  %3500 = vmatpush1.bf16.msra.mxu1 %v6415_v26  ;;  %3793 = vmatpush1.bf16.msra.mxu0 %v6415_v26 }
0x1097   : > { %v3406_v28 = vpop.permute.xlu1 %3405 }
0x1098   : > { %v3407_v29 = vsel %vm599_vm7, %v3404_v46, %v3406_v28  ;;  %v3408_v4 = vsel %vm599_vm7, %v3406_v28, %v3404_v46 }
0x1099   : > { %v3409_v1 = vmul.f32 %v6075_v35, %v3407_v29  ;;  %v3410_v19 = vmul.f32 %v6081_v10, %v3408_v4  ;;  %v6494_v29 = vld [vmem:[%s6812_s6 + $0x10] sm:$0xff] }
0x109a   : > { %v4605_v4 = vcombine.high %v6494_v29, %v6494_v29 }
0x109b   : > { %v6435_v23 = vpack.c.bf16 %v3409_v1, %v3399_v41  ;;  %v6437_v61 = vpack.c.bf16 %v3410_v19, %v3400_v31  ;;  %v4603_v41 = vld [vmem:[%s6813_s7 + $0x10] sm:$0xff] }
0x109c   : > { %4607 = vmatprep.mubr.msk.bf16.mxu0 %vm1144_vm11, %v4605_v4 }
0x109d   : > { %3501 = vmatprep.subr.bf16.mxu1 %v6437_v61  ;;  %3794 = vmatprep.subr.bf16.mxu0 %v6437_v61 }
0x109e   : > { %3502 = vmatpush1.bf16.msra.mxu1 %v6435_v23  ;;  %3795 = vmatpush1.bf16.msra.mxu0 %v6435_v23 }
0x109f   : > { %4040 = vmatprep.subr.bf16.mxu1 %v6221_v60 }
0x10a1   : > { %3518 = vmatmul.mubr.bf16.vlgmr.msra.gmra.mrb[28].mxu1 %v4596_v58 }
0x10a2   : > { %4041 = vmatpush1.bf16.msra.mxu1 %v6219_v52 }
0x10a3   : > { %4042 = vmatprep.subr.bf16.mxu1 %v6241_v25 }
0x10a6   : > { %4043 = vmatpush1.bf16.msra.mxu1 %v6239_v30 }
0x10a7   : > { %4044 = vmatprep.subr.bf16.mxu1 %v6259_v42  ;;  %v3474_v24 = vpop.permute.xlu0 %3473 }
0x10aa   : > { %4045 = vmatpush1.bf16.msra.mxu1 %v6257_v0 }
0x10ab   : > { %4046 = vmatprep.subr.bf16.mxu1 %v6279_v21 }
0x10ae   : > { %4047 = vmatpush1.bf16.msra.mxu1 %v6277_v45 }
0x10af   : > { %4048 = vmatprep.subr.bf16.mxu1 %v6361_v11 }
0x10b2   : > { %4049 = vmatpush1.bf16.msra.mxu1 %v6358_v54 }
0x10b3   : > { %4050 = vmatprep.subr.bf16.mxu1 %v6381_v51 }
0x10b6   : > { %4051 = vmatpush1.bf16.msra.mxu1 %v6379_v57 }
0x10b7   : > { %4052 = vmatprep.subr.bf16.mxu1 %v6397_v56 }
0x10ba   : > { %4053 = vmatpush1.bf16.msra.mxu1 %v6395_v2 }
0x10bb   : > { %4054 = vmatprep.subr.bf16.mxu1 %v6417_v3 }
0x10be   : > { %4055 = vmatpush1.bf16.msra.mxu1 %v6415_v26 }
0x10bf   : > { %4056 = vmatprep.subr.bf16.mxu1 %v6437_v61 }
0x10c2   : > { %4057 = vmatpush1.bf16.msra.mxu1 %v6435_v23 }
0x1174   : > { %v3519_v59 = vpop.f32.mrb[28].mxu1 }
0x1175   : > { %v3520_v63 = vadd.f32 %v3519_v59, %v3474_v24  ;;  %v3521_v53 = vpop.f32.mrb[29].mxu1 }
0x1176   : > { %v3522_v32 = vadd.f32 %v3521_v53, %v3474_v24  ;;  %v3523_v33 = vpop.f32.mrb[30].mxu1 }
0x1177   : > { %v3528_v9 = vmul.f32 0.2, %v3520_v63  ;;  %vm3526_vm13 = vcmp.ge.f32.partialorder %v3520_v63, 0.0  ;;  %v3524_v55 = vpop.f32.mrb[31].mxu1 }
0x1178   : > { %v3529_v50 = vmul.f32 0.2, %v3522_v32  ;;  %vm3527_vm9 = vcmp.ge.f32.partialorder %v3522_v32, 0.0 }
0x1179   : > { %v3530_v8 = vsel %vm3526_vm13, %v3520_v63, %v3528_v9 }
0x117a   : > { %v6463_v20 = vadd.f32 %v3579_v22, %v3530_v8  ;;  %v3531_v46 = vsel %vm3527_vm9, %v3522_v32, %v3529_v50 }
0x117b   : > { %v6465_v28 = vadd.f32 %v3581_v40, %v3531_v46 }
0x117c   : > { %3588 = vrot.lane.b32.xlu1 %v6463_v20, %s4731_s15 }
0x117d   : > { %3590 = vrot.lane.b32.xlu0 %v6465_v28, %s4731_s15 }
0x1180   : > { %3598 = vrot.lane.b32.xlu1 %v6463_v20, %s4730_s14 }
0x1181   : > { %3600 = vrot.lane.b32.xlu0 %v6465_v28, %s4730_s14 }
0x1184   : > { %3608 = vrot.lane.b32.xlu1 %v6463_v20, %s4732_s16 }
0x1185   : > { %3610 = vrot.lane.b32.xlu0 %v6465_v28, %s4732_s16 }
0x1188   : > { %3618 = vrot.lane.b32.xlu1 %v6463_v20, %s4733_s17 }
0x1189   : > { %3620 = vrot.lane.b32.xlu0 %v6465_v28, %s4733_s17 }
0x118c   : > { %3632 = vrot.lane.b32.xlu1 %v6463_v20, %s4734_s18 }
0x118d   : > { %3634 = vrot.lane.b32.xlu0 %v6465_v28, %s4734_s18 }
0x1190   : > { %3642 = vrot.lane.b32.xlu1 %v6463_v20, %s4735_s19 }
0x1191   : > { %3644 = vrot.lane.b32.xlu0 %v6465_v28, %s4735_s19 }
0x1194   : > { %3652 = vrot.lane.b32.xlu1 %v6463_v20, %s4737_s20 }
0x1195   : > { %3654 = vrot.lane.b32.xlu0 %v6465_v28, %s4737_s20 }
0x1198   : > { %3662 = vrot.lane.b32.xlu1 %v6463_v20, %s4738_s21 }
0x1199   : > { %3664 = vrot.lane.b32.xlu0 %v6465_v28, %s4738_s21 }
0x119c   : > { %3760 = vperm.xlu1 %4681, %v4603_v41  }
0x11ee   : > { %v3589_v31 = vpop.permute.xlu1 %3588 }
0x11ef   : > { %v3591_v1 = vpop.permute.xlu0 %3590 }
0x11f0   : > { %v3592_v19 = vsel %vm454_vm0, %v3589_v31, %v3591_v1  ;;  %v3593_v58 = vsel %vm454_vm0, %v3591_v1, %v3589_v31 }
0x11f1   : > { %v3594_v24 = vmul.f32 %v3593_v58, %v4896_v15  ;;  %v3595_v59 = vmul.f32 %v3592_v19, %v4899_v16 }
0x11f2   : > { %v3599_v22 = vpop.permute.xlu1 %3598 }
0x11f3   : > { %v3601_v40 = vpop.permute.xlu0 %3600 }
0x11f4   : > { %v3602_v7 = vsel %vm473_vm1, %v3599_v22, %v3601_v40  ;;  %v3603_v49 = vsel %vm473_vm1, %v3601_v40, %v3599_v22 }
0x11f5   : > { %v3604_v63 = vmul.f32 %v3603_v49, %v4890_v13  ;;  %v3605_v53 = vmul.f32 %v3602_v7, %v4893_v14 }
0x11f6   : > { %v3609_v32 = vpop.permute.xlu1 %3608 }
0x11f7   : > { %v6522_v33 = vpack.c.bf16 %v3604_v63, %v3594_v24  ;;  %v3611_v9 = vpop.permute.xlu0 %3610  ;;  %v6524_v55 = vpack.c.bf16 %v3605_v53, %v3595_v59  ;;  %v3628_v59 = vmul.f32 %v6463_v20, %v4945_v43 }
0x11f8   : > { %v3612_v50 = vsel %vm492_vm2, %v3609_v32, %v3611_v9  ;;  %v3613_v8 = vsel %vm492_vm2, %v3611_v9, %v3609_v32 }
0x11f9   : > { %3796 = vmatprep.subr.bf16.mxu0 %v6524_v55  ;;  %4058 = vmatprep.subr.bf16.mxu1 %v6524_v55  ;;  %v3614_v1 = vmul.f32 %v3613_v8, %v4922_v34  ;;  %v3615_v19 = vmul.f32 %v3612_v50, %v4927_v36  ;;  %v3629_v50 = vmul.f32 %v6465_v28, %v4948_v44 }
0x11fa   : > { %3797 = vmatpush1.bf16.msra.mxu0 %v6522_v33  ;;  %4059 = vmatpush1.bf16.msra.mxu1 %v6522_v33  ;;  %v3619_v46 = vpop.permute.xlu1 %3618 }
0x11fb   : > { %v3621_v4 = vpop.permute.xlu0 %3620 }
0x11fc   : > { %v3622_v41 = vsel %vm511_vm3, %v3619_v46, %v3621_v4  ;;  %v3623_v31 = vsel %vm511_vm3, %v3621_v4, %v3619_v46 }
0x11fd   : > { %v3624_v58 = vmul.f32 %v3623_v31, %v4932_v37  ;;  %v3625_v22 = vmul.f32 %v3622_v41, %v4935_v38 }
0x11fe   : > { %v3633_v40 = vpop.permute.xlu1 %3632 }
0x11ff   : > { %v6542_v7 = vpack.c.bf16 %v3624_v58, %v3614_v1  ;;  %v3635_v49 = vpop.permute.xlu0 %3634  ;;  %v6544_v24 = vpack.c.bf16 %v3625_v22, %v3615_v19 }
0x1200   : > { %v3636_v63 = vsel %vm542_vm4, %v3633_v40, %v3635_v49  ;;  %v3637_v53 = vsel %vm542_vm4, %v3635_v49, %v3633_v40 }
0x1201   : > { %v3638_v32 = vmul.f32 %v3636_v63, %v4955_v47  ;;  %v3639_v9 = vmul.f32 %v3637_v53, %v4958_v48  ;;  %3798 = vmatprep.subr.bf16.mxu0 %v6544_v24  ;;  %4060 = vmatprep.subr.bf16.mxu1 %v6544_v24 }
0x1202   : > { %3799 = vmatpush1.bf16.msra.mxu0 %v6542_v7  ;;  %4061 = vmatpush1.bf16.msra.mxu1 %v6542_v7  ;;  %v3643_v8 = vpop.permute.xlu1 %3642 }
0x1203   : > { %v3750_v46 = vpack.c.bf16 %v3638_v32, %v3628_v59  ;;  %v3645_v4 = vpop.permute.xlu0 %3644  ;;  %v3751_v41 = vpack.c.bf16 %v3639_v9, %v3629_v50 }
0x1204   : > { %v3646_v31 = vsel %vm561_vm5, %v3643_v8, %v3645_v4  ;;  %v3647_v1 = vsel %vm561_vm5, %v3645_v4, %v3643_v8 }
0x1205   : > { %3800 = vmatprep.subr.bf16.mxu0 %v3751_v41  ;;  %4062 = vmatprep.subr.bf16.mxu1 %v3751_v41  ;;  %v3648_v49 = vmul.f32 %v3646_v31, %v4990_v12  ;;  %v3649_v59 = vmul.f32 %v3647_v1, %v4994_v17 }
0x1206   : > { %v3653_v19 = vpop.permute.xlu1 %3652  ;;  %3801 = vmatpush1.bf16.msra.mxu0 %v3750_v46  ;;  %4063 = vmatpush1.bf16.msra.mxu1 %v3750_v46 }
0x1207   : > { %v3655_v58 = vpop.permute.xlu0 %3654 }
0x1208   : > { %v3656_v22 = vsel %vm580_vm6, %v3653_v19, %v3655_v58  ;;  %v3657_v40 = vsel %vm580_vm6, %v3655_v58, %v3653_v19 }
0x1209   : > { %v3658_v63 = vmul.f32 %v3656_v22, %v4999_v5  ;;  %v3659_v53 = vmul.f32 %v3657_v40, %v5002_v18 }
0x120a   : > { %v3663_v32 = vpop.permute.xlu1 %3662 }
0x120b   : > { %v3752_v9 = vpack.c.bf16 %v3658_v63, %v3648_v49  ;;  %v3665_v50 = vpop.permute.xlu0 %3664  ;;  %v3753_v8 = vpack.c.bf16 %v3659_v53, %v3649_v59 }
0x120c   : > { %v3666_v4 = vsel %vm599_vm7, %v3663_v32, %v3665_v50  ;;  %v3667_v27 = vsel %vm599_vm7, %v3665_v50, %v3663_v32 }
0x120d   : > { %v6577_v19 = vmul.f32 %v6075_v35, %v3666_v4  ;;  %v6580_v31 = vmul.f32 %v6081_v10, %v3667_v27  ;;  %3802 = vmatprep.subr.bf16.mxu0 %v3753_v8  ;;  %4064 = vmatprep.subr.bf16.mxu1 %v3753_v8  ;;  %v4604_v35 = vcombine.low %v6494_v29, %v6494_v29 }
0x120e   : > { %3803 = vmatpush1.bf16.msra.mxu0 %v3752_v9  ;;  %4065 = vmatpush1.bf16.msra.mxu1 %v3752_v9 }
0x120f   : > { %v3754_v1 = vpack.c.bf16 %v6577_v19, %v6577_v19  ;;  %v3755_v58 = vpack.c.bf16 %v6580_v31, %v6580_v31 }
0x1211   : > { %4606 = vmatprep.subr.msk.bf16.mxu0 %vm653_vm8, %v3755_v58  ;;  %v3773_v22 = vsel %vm653_vm8, %v3754_v1, 0 }
0x1212   : > { %3805 = vmatpush1.bf16.msra.mxu0 %v3773_v22 }
0x1213   : > { %4379 = vmatprep.subr.bf16.mxu0 %v6221_v60 }
0x1215   : > { %3811 = vmatmul.mubr.bf16.vlgmr.msra.gmra.mrb[28].mxu0 %v4604_v35 }
0x1216   : > { %4380 = vmatpush1.bf16.msra.mxu0 %v6219_v52 }
0x1217   : > { %4381 = vmatprep.subr.bf16.mxu0 %v6241_v25 }
0x121a   : > { %4382 = vmatpush1.bf16.msra.mxu0 %v6239_v30 }
0x121b   : > { %4383 = vmatprep.subr.bf16.mxu0 %v6259_v42  ;;  %v3761_v10 = vpop.permute.xlu1 %3760 }
0x121e   : > { %4384 = vmatpush1.bf16.msra.mxu0 %v6257_v0 }
0x121f   : > { %4385 = vmatprep.subr.bf16.mxu0 %v6279_v21 }
0x1222   : > { %4386 = vmatpush1.bf16.msra.mxu0 %v6277_v45 }
0x1223   : > { %4387 = vmatprep.subr.bf16.mxu0 %v6361_v11  ;;  %v6621_v11 = vld [vmem:[%s6814_s8 + $0x18] sm:$0xff] }
0x1226   : > { %4388 = vmatpush1.bf16.msra.mxu0 %v6358_v54 }
0x1227   : > { %4389 = vmatprep.subr.bf16.mxu0 %v6381_v51  ;;  %v6628_v51 = vld [vmem:[%s6816_s10 + $0x18] sm:$0xff] }
0x122a   : > { %4390 = vmatpush1.bf16.msra.mxu0 %v6379_v57  ;;  %v4612_v57 = vcombine.high %v6621_v11, %v6621_v11 }
0x122b   : > { %4391 = vmatprep.subr.bf16.mxu0 %v6397_v56  ;;  %v4610_v56 = vld [vmem:[%s6815_s9 + $0x10] sm:$0xff] }
0x122c   : > { %4072 = vmatprep.mubr.bf16.mxu1 %v4612_v57 }
0x122e   : > { %4392 = vmatpush1.bf16.msra.mxu0 %v6395_v2  ;;  %v4619_v2 = vcombine.high %v6628_v51, %v6628_v51 }
0x122f   : > { %4393 = vmatprep.subr.bf16.mxu0 %v6417_v3 }
0x1230   : > { %4411 = vmatprep.mubr.bf16.mxu0 %v4619_v2 }
0x1232   : > { %4394 = vmatpush1.bf16.msra.mxu0 %v6415_v26 }
0x1233   : > { %4395 = vmatprep.subr.bf16.mxu0 %v6437_v61 }
0x1236   : > { %4396 = vmatpush1.bf16.msra.mxu0 %v6435_v23 }
0x1237   : > { %4397 = vmatprep.subr.bf16.mxu0 %v6524_v55 }
0x123a   : > { %4398 = vmatpush1.bf16.msra.mxu0 %v6522_v33 }
0x123b   : > { %4399 = vmatprep.subr.bf16.mxu0 %v6544_v24 }
0x123e   : > { %4400 = vmatpush1.bf16.msra.mxu0 %v6542_v7 }
0x123f   : > { %4401 = vmatprep.subr.bf16.mxu0 %v3751_v41 }
0x1242   : > { %4402 = vmatpush1.bf16.msra.mxu0 %v3750_v46 }
0x1243   : > { %4403 = vmatprep.subr.bf16.mxu0 %v3753_v8 }
0x1246   : > { %4404 = vmatpush1.bf16.msra.mxu0 %v3752_v9 }
0x12e8   : > { %v3812_v27 = vpop.f32.mrb[28].mxu0 }
0x12e9   : > { %v3813_v52 = vadd.f32 %v3812_v27, %v3761_v10  ;;  %v3814_v60 = vpop.f32.mrb[29].mxu0 }
0x12ea   : > { %v3815_v30 = vadd.f32 %v3814_v60, %v3761_v10  ;;  %v3816_v25 = vpop.f32.mrb[30].mxu0 }
0x12eb   : > { %vm3819_vm11 = vcmp.ge.f32.partialorder %v3813_v52, 0.0  ;;  %v3821_v0 = vmul.f32 0.2, %v3813_v52  ;;  %v3817_v42 = vpop.f32.mrb[31].mxu0 }
0x12ec   : > { %vm3820_vm10 = vcmp.ge.f32.partialorder %v3815_v30, 0.0  ;;  %v3822_v45 = vmul.f32 0.2, %v3815_v30 }
0x12ed   : > { %v3823_v21 = vsel %vm3819_vm11, %v3813_v52, %v3821_v0 }
0x12ee   : > { %v3824_v54 = vsel %vm3820_vm10, %v3815_v30, %v3822_v45  ;;  %3825 = vrot.lane.b32.xlu0 %v3823_v21, %s4731_s15  ;;  %v3865_v35 = vmul.f32 %v3823_v21, %v4945_v43  ;;  %v4611_v45 = vcombine.low %v6621_v11, %v6621_v11 }
0x12ef   : > { %3827 = vrot.lane.b32.xlu1 %v3824_v54, %s4731_s15  ;;  %v3866_v52 = vmul.f32 %v3824_v54, %v4948_v44 }
0x12f2   : > { %3835 = vrot.lane.b32.xlu0 %v3823_v21, %s4730_s14 }
0x12f3   : > { %3837 = vrot.lane.b32.xlu1 %v3824_v54, %s4730_s14 }
0x12f6   : > { %3845 = vrot.lane.b32.xlu0 %v3823_v21, %s4732_s16 }
0x12f7   : > { %3847 = vrot.lane.b32.xlu1 %v3824_v54, %s4732_s16 }
0x12fa   : > { %3855 = vrot.lane.b32.xlu0 %v3823_v21, %s4733_s17 }
0x12fb   : > { %3857 = vrot.lane.b32.xlu1 %v3824_v54, %s4733_s17 }
0x12fe   : > { %3869 = vrot.lane.b32.xlu0 %v3823_v21, %s4734_s18 }
0x12ff   : > { %3871 = vrot.lane.b32.xlu1 %v3824_v54, %s4734_s18 }
0x1302   : > { %3879 = vrot.lane.b32.xlu0 %v3823_v21, %s4735_s19 }
0x1303   : > { %3881 = vrot.lane.b32.xlu1 %v3824_v54, %s4735_s19 }
0x1306   : > { %3889 = vrot.lane.b32.xlu0 %v3823_v21, %s4737_s20 }
0x1307   : > { %3891 = vrot.lane.b32.xlu1 %v3824_v54, %s4737_s20 }
0x130a   : > { %3899 = vrot.lane.b32.xlu0 %v3823_v21, %s4738_s21  ;;  %v4618_v21 = vcombine.low %v6628_v51, %v6628_v51 }
0x130b   : > { %3901 = vrot.lane.b32.xlu1 %v3824_v54, %s4738_s21 }
0x130e   : > { %4024 = vperm.xlu0 %4680, %v4610_v56  }
0x1360   : > { %v3826_v26 = vpop.permute.xlu0 %3825 }
0x1361   : > { %v3828_v3 = vpop.permute.xlu1 %3827 }
0x1362   : > { %v3829_v23 = vsel %vm454_vm0, %v3826_v26, %v3828_v3  ;;  %v3830_v61 = vsel %vm454_vm0, %v3828_v3, %v3826_v26 }
0x1363   : > { %v3831_v29 = vmul.f32 %v3830_v61, %v4896_v15  ;;  %v3832_v33 = vmul.f32 %v3829_v23, %v4899_v16 }
0x1364   : > { %v3836_v55 = vpop.permute.xlu0 %3835 }
0x1365   : > { %v4010_v7 = vpack.c.bf16 %v3831_v29, %v6577_v19  ;;  %v3838_v24 = vpop.permute.xlu1 %3837  ;;  %v4011_v46 = vpack.c.bf16 %v3832_v33, %v6580_v31 }
0x1366   : > { %v3839_v41 = vsel %vm473_vm1, %v3836_v55, %v3838_v24  ;;  %v3840_v40 = vsel %vm473_vm1, %v3838_v24, %v3836_v55 }
0x1367   : > { %4066 = vmatprep.subr.bf16.mxu1 %v4011_v46  ;;  %4405 = vmatprep.subr.bf16.mxu0 %v4011_v46  ;;  %v3841_v32 = vmul.f32 %v3840_v40, %v4890_v13  ;;  %v3842_v9 = vmul.f32 %v3839_v41, %v4893_v14 }
0x1368   : > { %4067 = vmatpush1.bf16.msra.mxu1 %v4010_v7  ;;  %4406 = vmatpush1.bf16.msra.mxu0 %v4010_v7  ;;  %v3846_v49 = vpop.permute.xlu0 %3845 }
0x1369   : > { %v3848_v59 = vpop.permute.xlu1 %3847 }
0x136a   : > { %v3849_v63 = vsel %vm492_vm2, %v3846_v49, %v3848_v59  ;;  %v3850_v53 = vsel %vm492_vm2, %v3848_v59, %v3846_v49 }
0x136b   : > { %v3851_v50 = vmul.f32 %v3850_v53, %v4922_v34  ;;  %v3852_v8 = vmul.f32 %v3849_v63, %v4927_v36  ;;  %v6704_v63 = vld [vmem:[%s6806_s0 + $0x10] ss:$0 sm:$0xff] }
0x136c   : > { %v3856_v4 = vpop.permute.xlu0 %3855 }
0x136d   : > { %v4012_v19 = vpack.c.bf16 %v3851_v50, %v3841_v32  ;;  %v3858_v31 = vpop.permute.xlu1 %3857  ;;  %v4013_v1 = vpack.c.bf16 %v3852_v8, %v3842_v9  ;;  %v6710_v32 = vld [vmem:[%s6806_s0 + $0x18] ss:$0 sm:$0xff] }
0x136e   : > { %v3859_v58 = vsel %vm511_vm3, %v3856_v4, %v3858_v31  ;;  %v3860_v22 = vsel %vm511_vm3, %v3858_v31, %v3856_v4  ;;  %v4710_v4 = vld [vmem:[%s6814_s8 + $0x20] ss:$0 sps:$4 sm:$0xff]  }
0x136f   : > { %v3861_v10 = vmul.f32 %v3860_v22, %v4932_v37  ;;  %v3862_v27 = vmul.f32 %v3859_v58, %v4935_v38  ;;  %4068 = vmatprep.subr.bf16.mxu1 %v4013_v1  ;;  %4407 = vmatprep.subr.bf16.mxu0 %v4013_v1 }
0x1370   : > { %4069 = vmatpush1.bf16.msra.mxu1 %v4012_v19  ;;  %4408 = vmatpush1.bf16.msra.mxu0 %v4012_v19  ;;  %v3870_v60 = vpop.permute.xlu0 %3869 }
0x1371   : > { %v4014_v30 = vpack.c.bf16 %v3865_v35, %v3861_v10  ;;  %v3872_v25 = vpop.permute.xlu1 %3871  ;;  %v4015_v0 = vpack.c.bf16 %v3866_v52, %v3862_v27 }
0x1372   : > { %v3873_v42 = vsel %vm542_vm4, %v3870_v60, %v3872_v25  ;;  %v3874_v54 = vsel %vm542_vm4, %v3872_v25, %v3870_v60 }
0x1373   : > { %4070 = vmatprep.subr.bf16.mxu1 %v4015_v0  ;;  %4409 = vmatprep.subr.bf16.mxu0 %v4015_v0  ;;  %v3875_v56 = vmul.f32 %v3873_v42, %v4955_v47  ;;  %v3876_v11 = vmul.f32 %v3874_v54, %v4958_v48 }
0x1374   : > { %v3880_v57 = vpop.permute.xlu0 %3879  ;;  %4071 = vmatpush1.bf16.msra.mxu1 %v4014_v30  ;;  %4410 = vmatpush1.bf16.msra.mxu0 %v4014_v30 }
0x1375   : > { %v3882_v2 = vpop.permute.xlu1 %3881 }
0x1376   : > { %v3883_v26 = vsel %vm561_vm5, %v3880_v57, %v3882_v2  ;;  %v3884_v3 = vsel %vm561_vm5, %v3882_v2, %v3880_v57 }
0x1377   : > { %v3885_v23 = vmul.f32 %v3883_v26, %v4990_v12  ;;  %v3886_v51 = vmul.f32 %v3884_v3, %v4994_v17  ;;  %4073 = vmatmul.mubr.bf16.vlgmr.msra.gmra.mrb[32].mxu1 %v4611_v45  ;;  %4412 = vmatmul.mubr.bf16.vlgmr.msra.gmra.mrb[32].mxu0 %v4618_v21 }
0x1378   : > { %v3890_v61 = vpop.permute.xlu0 %3889  ;;  %4113 = vmatprep.mubr.bf16.mxu1 %v6825_v39  ;;  %4452 = vmatprep.mubr.bf16.mxu0 %v6825_v39 }
0x1379   : > { %v4016_v29 = vpack.c.bf16 %v3885_v23, %v3875_v56  ;;  %v3892_v33 = vpop.permute.xlu1 %3891  ;;  %v4017_v55 = vpack.c.bf16 %v3886_v51, %v3876_v11 }
0x137a   : > { %v3893_v7 = vsel %vm580_vm6, %v3890_v61, %v3892_v33  ;;  %v3894_v24 = vsel %vm580_vm6, %v3892_v33, %v3890_v61 }
0x137b   : > { %4081 = vmatprep.subr.bf16.mxu1 %v4017_v55  ;;  %4420 = vmatprep.subr.bf16.mxu0 %v4017_v55  ;;  %v3895_v49 = vmul.f32 %v3893_v7, %v4999_v5  ;;  %v3896_v59 = vmul.f32 %v3894_v24, %v5002_v18 }
0x137c   : > { %v3900_v46 = vpop.permute.xlu0 %3899  ;;  %4082 = vmatpush1.bf16.msra.mxu1 %v4016_v29  ;;  %4421 = vmatpush1.bf16.msra.mxu0 %v4016_v29 }
0x137d   : > { %v3902_v41 = vpop.permute.xlu1 %3901 }
0x137e   : > { %v3903_v40 = vsel %vm599_vm7, %v3900_v46, %v3902_v41  ;;  %v3904_v39 = vsel %vm599_vm7, %v3902_v41, %v3900_v46 }
0x137f   : > { %v3905_v53 = vmul.f32 %v6704_v63, %v3903_v40  ;;  %v3906_v9 = vmul.f32 %v6710_v32, %v3904_v39 }
0x1381   : > { %v4018_v50 = vpack.c.bf16 %v3905_v53, %v3895_v49  ;;  %v4019_v8 = vpack.c.bf16 %v3906_v9, %v3896_v59 }
0x1383   : > { %4083 = vmatprep.subr.bf16.mxu1 %v4019_v8  ;;  %4422 = vmatprep.subr.bf16.mxu0 %v4019_v8 }
0x1384   : > { %4084 = vmatpush1.bf16.msra.mxu1 %v4018_v50  ;;  %4423 = vmatpush1.bf16.msra.mxu0 %v4018_v50 }
0x1387   : > { %4614 = vmatmul.mubr.msk.bf16.vlgmr.msra.gmra.mrb[32].mxu1 %vm1411_vm15, %v4710_v4 }
0x138d   : > { %v4025_v19 = vpop.permute.xlu0 %4024 }
0x145a   : > { %v4115_v31 = vpop.f32.mrb[32].mxu1 }
0x145b   : > { %v4635_v1 = vadd.f32 %v4115_v31, %v4025_v19  ;;  %v4117_v58 = vpop.f32.mrb[33].mxu1 }
0x145c   : > { %v4636_v22 = vadd.f32 %v4117_v58, %v4025_v19  ;;  %v4119_v35 = vpop.f32.mrb[34].mxu1 }
0x145d   : > { %vm4122_vm14 = vcmp.ge.f32.partialorder %v4635_v1, 0.0  ;;  %v4124_v10 = vmul.f32 0.2, %v4635_v1  ;;  %v4120_v27 = vpop.f32.mrb[35].mxu1 }
0x145e   : > { %vm4123_vm13 = vcmp.ge.f32.partialorder %v4636_v22, 0.0  ;;  %v4125_v52 = vmul.f32 0.2, %v4636_v22 }
0x145f   : > { %v4126_v60 = vsel %vm4122_vm14, %v4635_v1, %v4124_v10 }
0x1460   : > { %v4128_v30 = vadd.f32 %v4126_v60, %v6463_v20  ;;  %v4127_v25 = vsel %vm4123_vm13, %v4636_v22, %v4125_v52  ;;  %v4617_v20 = vld [vmem:[%s6817_s11 + $0x10] sm:$0xff] }
0x1461   : > { %v4129_v0 = vadd.f32 %v4127_v25, %v6465_v28 }
0x1462   : > { %4130 = vrot.lane.b32.xlu1 %v4128_v30, %s4731_s15  ;;  %v4170_v8 = vmul.f32 %v4128_v30, %v4945_v43 }
0x1463   : > { %4132 = vrot.lane.b32.xlu0 %v4129_v0, %s4731_s15 }
0x1466   : > { %4140 = vrot.lane.b32.xlu1 %v4128_v30, %s4730_s14 }
0x1467   : > { %4142 = vrot.lane.b32.xlu0 %v4129_v0, %s4730_s14 }
0x146a   : > { %4150 = vrot.lane.b32.xlu1 %v4128_v30, %s4732_s16 }
0x146b   : > { %4152 = vrot.lane.b32.xlu0 %v4129_v0, %s4732_s16 }
0x146e   : > { %4160 = vrot.lane.b32.xlu1 %v4128_v30, %s4733_s17 }
0x146f   : > { %4162 = vrot.lane.b32.xlu0 %v4129_v0, %s4733_s17 }
0x1472   : > { %4174 = vrot.lane.b32.xlu1 %v4128_v30, %s4734_s18 }
0x1473   : > { %4176 = vrot.lane.b32.xlu0 %v4129_v0, %s4734_s18  ;;  %s6829_s18 = sshll.u32 %s6831_s26, 4 }
0x1476   : > { %4184 = vrot.lane.b32.xlu1 %v4128_v30, %s4735_s19 }
0x1477   : > { %4186 = vrot.lane.b32.xlu0 %v4129_v0, %s4735_s19 }
0x147a   : > { %4194 = vrot.lane.b32.xlu1 %v4128_v30, %s4737_s20 }
0x147b   : > { %4196 = vrot.lane.b32.xlu0 %v4129_v0, %s4737_s20 }
0x147e   : > { %4204 = vrot.lane.b32.xlu1 %v4128_v30, %s4738_s21 }
0x147f   : > { %4206 = vrot.lane.b32.xlu0 %v4129_v0, %s4738_s21  ;;  %s440_s21 = scalar_lea.vmem %s6819_s13, %s6829_s18 }
0x1482   : > { %4357 = vperm.xlu1 %4681, %v4617_v20  }
0x14d4   : > { %v4131_v28 = vpop.permute.xlu1 %4130 }
0x14d5   : > { %v4133_v42 = vpop.permute.xlu0 %4132 }
0x14d6   : > { %v4134_v45 = vsel %vm454_vm0, %v4131_v28, %v4133_v42  ;;  %v4135_v21 = vsel %vm454_vm0, %v4133_v42, %v4131_v28  ;;  %v4711_v42 = vld [vmem:[%s6816_s10 + $0x20] ss:$0 sps:$4 sm:$0xff]  }
0x14d7   : > { %v4136_v26 = vmul.f32 %v4135_v21, %v4896_v15  ;;  %v4137_v3 = vmul.f32 %v4134_v45, %v4899_v16 }
0x14d8   : > { %v4141_v54 = vpop.permute.xlu1 %4140 }
0x14d9   : > { %v4143_v57 = vpop.permute.xlu0 %4142 }
0x14da   : > { %v4144_v2 = vsel %vm473_vm1, %v4141_v54, %v4143_v57  ;;  %v4145_v56 = vsel %vm473_vm1, %v4143_v57, %v4141_v54 }
0x14db   : > { %v4146_v11 = vmul.f32 %v4145_v56, %v4890_v13  ;;  %v4147_v23 = vmul.f32 %v4144_v2, %v4893_v14 }
0x14dc   : > { %v4151_v51 = vpop.permute.xlu1 %4150 }
0x14dd   : > { %v4343_v61 = vpack.c.bf16 %v4146_v11, %v4136_v26  ;;  %v4153_v29 = vpop.permute.xlu0 %4152  ;;  %v4344_v33 = vpack.c.bf16 %v4147_v23, %v4137_v3  ;;  %v6828_v3 = vld [vmem:[#allocation3_spill] sm:$0xff] }
0x14de   : > { %v4154_v55 = vsel %vm492_vm2, %v4151_v51, %v4153_v29  ;;  %v4155_v7 = vsel %vm492_vm2, %v4153_v29, %v4151_v51 }
0x14df   : > { %4424 = vmatprep.subr.bf16.mxu0 %v4344_v33  ;;  %v4156_v14 = vmul.f32 %v4155_v7, %v4922_v34  ;;  %v4157_v46 = vmul.f32 %v4154_v55, %v4927_v36  ;;  %v4721_v33 = vld [vmem:[%s4825_s30 + $0x8] sm:$0xff] }
0x14e0   : > { %4425 = vmatpush1.bf16.msra.mxu0 %v4343_v61  ;;  %v4161_v24 = vpop.permute.xlu1 %4160  ;;  %v4720_v61 = vld [vmem:[%s4825_s30] sm:$0xff] }
0x14e1   : > { %v4163_v15 = vpop.permute.xlu0 %4162 }
0x14e2   : > { %v4164_v16 = vsel %vm511_vm3, %v4161_v24, %v4163_v15  ;;  %v4165_v13 = vsel %vm511_vm3, %v4163_v15, %v4161_v24 }
0x14e3   : > { %v4166_v41 = vmul.f32 %v4165_v13, %v4932_v37  ;;  %v4167_v40 = vmul.f32 %v4164_v16, %v4935_v38  ;;  %v4171_v37 = vmul.f32 %v4129_v0, %v4948_v44 }
0x14e4   : > { %v4175_v39 = vpop.permute.xlu1 %4174 }
0x14e5   : > { %v4345_v49 = vpack.c.bf16 %v4166_v41, %v4156_v14  ;;  %v4177_v59 = vpop.permute.xlu0 %4176  ;;  %v4346_v53 = vpack.c.bf16 %v4167_v40, %v4157_v46 }
0x14e6   : > { %v4178_v9 = vsel %vm542_vm4, %v4175_v39, %v4177_v59  ;;  %v4179_v50 = vsel %vm542_vm4, %v4177_v59, %v4175_v39 }
0x14e7   : > { %v4180_v34 = vmul.f32 %v4178_v9, %v4955_v47  ;;  %v4181_v36 = vmul.f32 %v4179_v50, %v4958_v48  ;;  %4426 = vmatprep.subr.bf16.mxu0 %v4346_v53 }
0x14e8   : > { %4427 = vmatpush1.bf16.msra.mxu0 %v4345_v49  ;;  %v4185_v38 = vpop.permute.xlu1 %4184 }
0x14e9   : > { %v4347_v4 = vpack.c.bf16 %v4180_v34, %v4170_v8  ;;  %v4187_v19 = vpop.permute.xlu0 %4186  ;;  %v4348_v31 = vpack.c.bf16 %v4181_v36, %v4171_v37 }
0x14ea   : > { %v4188_v1 = vsel %vm561_vm5, %v4185_v38, %v4187_v19  ;;  %v4189_v58 = vsel %vm561_vm5, %v4187_v19, %v4185_v38 }
0x14eb   : > { %4428 = vmatprep.subr.bf16.mxu0 %v4348_v31  ;;  %v4190_v22 = vmul.f32 %v4188_v1, %v4990_v12  ;;  %v4191_v35 = vmul.f32 %v4189_v58, %v4994_v17 }
0x14ec   : > { %v4195_v43 = vpop.permute.xlu1 %4194  ;;  %4429 = vmatpush1.bf16.msra.mxu0 %v4347_v4 }
0x14ed   : > { %v4197_v47 = vpop.permute.xlu0 %4196 }
0x14ee   : > { %v4198_v48 = vsel %vm580_vm6, %v4195_v43, %v4197_v47  ;;  %v4199_v44 = vsel %vm580_vm6, %v4197_v47, %v4195_v43 }
0x14ef   : > { %v4200_v10 = vmul.f32 %v4198_v48, %v4999_v5  ;;  %v4201_v27 = vmul.f32 %v4199_v44, %v5002_v18 }
0x14f0   : > { %v4205_v52 = vpop.permute.xlu1 %4204 }
0x14f1   : > { %v4349_v60 = vpack.c.bf16 %v4200_v10, %v4190_v22  ;;  %v4207_v30 = vpop.permute.xlu0 %4206  ;;  %v4350_v25 = vpack.c.bf16 %v4201_v27, %v4191_v35 }
0x14f2   : > { %v4208_v0 = vsel %vm599_vm7, %v4205_v52, %v4207_v30  ;;  %v4209_v20 = vsel %vm599_vm7, %v4207_v30, %v4205_v52 }
0x14f3   : > { %v4210_v28 = vmul.f32 %v6704_v63, %v4208_v0  ;;  %v4211_v12 = vmul.f32 %v6710_v32, %v4209_v20  ;;  %4430 = vmatprep.subr.bf16.mxu0 %v4350_v25 }
0x14f4   : > { %4431 = vmatpush1.bf16.msra.mxu0 %v4349_v60 }
0x14f5   : > { %v4351_v17 = vpack.c.bf16 %v4210_v28, %v4210_v28  ;;  %v4352_v5 = vpack.c.bf16 %v4211_v12, %v4211_v12 }
0x14f7   : > { %4621 = vmatprep.subr.msk.bf16.mxu0 %vm653_vm8, %v4352_v5  ;;  %v4374_v18 = vsel %vm653_vm8, %v4351_v17, 0 }
0x14f8   : > { %4433 = vmatpush1.bf16.msra.mxu0 %v4374_v18 }
0x14fb   : > { %4622 = vmatmul.mubr.msk.bf16.vlgmr.msra.gmra.mrb[32].mxu0 %vm1743_vm12, %v4711_v42 }
0x1501   : > { %v4358_v6 = vpop.permute.xlu1 %4357 }
0x15ce   : > { %v4454_v63 = vpop.f32.mrb[32].mxu0 }
0x15cf   : > { %v4637_v32 = vadd.f32 %v4454_v63, %v4358_v6  ;;  %v4456_v45 = vpop.f32.mrb[33].mxu0 }
0x15d0   : > { %v4638_v21 = vadd.f32 %v4456_v45, %v4358_v6  ;;  %v4458_v54 = vpop.f32.mrb[34].mxu0 }
0x15d1   : > { %v4461_v57 = vmul.f32 0.2, %v4637_v32  ;;  %v4459_v2 = vpop.f32.mrb[35].mxu0 }
0x15d2   : > { %v4462_v56 = vmul.f32 0.2, %v4638_v21 }
0x15d3   : > { %v4463_v26 = vadd.f32 %v4461_v57, %v6167_v62 }
0x15d4   : > { %v4464_v11 = vadd.f32 %v4462_v56, %v6828_v3 }
0x15d5   : > { %v4465_v23 = vmul.f32 0.2, %v4463_v26 }
0x15d6   : > { %v4466_v51 = vmul.f32 0.2, %v4464_v11 }
0x15d7   : > { %v4467_v29 = vadd.f32 %v4720_v61, %v4465_v23 }
0x15d8   : > { %v4468_v55 = vadd.f32 %v4721_v33, %v4466_v51 }
0x15d9   : > { %4469 = vst [vmem:[%s440_s21] sm:$0xff] %v4467_v29 }
0x15da   : > { %4470 = vst [vmem:[%s440_s21 + $0x8] sm:$0xff] %v4468_v55 }
0x15db PF: > { %s23_s25 = sadd.s32 1, %s4728_s25  }
0x15dc   : > { %p20_p4 = scmp.ge.s32.totalorder %s23_s25, 4  }
0x15de   :  { %22 = sbr.rel (!%p20_p4) target bundleno = 1 (0x1), region = 124 }

</bundles_post_ra>
